<compile_context>
chip_gen: v7x
topology: tpu7x:2x2x1
jax: 0.10.0
libtpu: 0.0.40
codegen_flags: <defaults>
</compile_context>

<pallas_src>
import functools
import math

import jax
import jax.numpy as jnp
from jax.experimental import pallas as pl
from jax.experimental.pallas import tpu as pltpu

# ---- model hyper-parameters (small, consistent with the module) ----
D_MODEL = 32
N_HEAD = 4
D_HEAD = D_MODEL // N_HEAD
D_FF = 64
NUM_LAYERS = 2
EPS = 1e-5
ATT_SCALE = 1.0 / math.sqrt(D_HEAD)
LANES = 128


# ------------------------- packed-slab layout -------------------------
def _build_slices(sizes):
    out, off = {}, 0
    for name, n in sizes:
        out[name] = slice(off, off + n)
        off += n
    return out, off


# weight slab (all weights with D_MODEL input rows); lane layout groups into 128-lane tiles:
#   tile0 = [sa_qkv(96) | sa_wo(32)], tile1 = [ca_wq(32) | ca_wkv(64) | ca_wo(32)], tile2 = [w1(64)]
WA_SLICES, WA_COLS = _build_slices([
    ("sa_qkv", 3 * D_MODEL),   # fused self-attn Q|K|V   (Q pre-scaled by 1/sqrt(d_head))
    ("sa_wo", D_MODEL),        # self-attn output proj
    ("ca_wq", D_MODEL),        # cross-attn Q            (pre-scaled)
    ("ca_wkv", 2 * D_MODEL),   # fused cross-attn K|V
    ("ca_wo", D_MODEL),        # cross-attn output proj
    ("w1", D_FF),              # FFN up
])

# bias / norm-param slab: one parameter per 128-lane-padded sublane row -> aligned row loads
_VEC_LAYOUT = [
    ("sa_bqkv", 3 * D_MODEL), ("sa_bo", D_MODEL),
    ("ca_bq", D_MODEL), ("ca_bkv", 2 * D_MODEL), ("ca_bo", D_MODEL),
    ("b1", D_FF), ("b2", D_MODEL),
    ("n1g", D_MODEL), ("n1b", D_MODEL),
    ("n2g", D_MODEL), ("n2b", D_MODEL),
    ("n3g", D_MODEL), ("n3b", D_MODEL),
]
VEC_ROWS = {name: (i, width) for i, (name, width) in enumerate(_VEC_LAYOUT)}
VEC_NROWS = 16   # 13 used rows, padded to a sublane-tile multiple


# ------------------------- in-kernel helpers -------------------------
def _vp(vec_ref, layer, name):
    """Aligned (1, width) row load of one packed bias / gamma / beta parameter."""
    row, width = VEC_ROWS[name]
    return vec_ref[layer, row:row + 1, 0:width]


def _layernorm(h, g, b):
    mu = jnp.mean(h, axis=-1, keepdims=True)
    var = jnp.mean((h - mu) ** 2, axis=-1, keepdims=True)
    return (h - mu) * jax.lax.rsqrt(var + EPS) * g + b


def _attend(q, k, v, qmask_b, batch, sq, sk):
    """Loop-free multi-head attention.

    q: (batch*sq, D); k, v: (batch*sk, D); qmask_b: (batch, H*sq, D) 0/1 head mask
    (row r of a head block h keeps only columns d with d // D_HEAD == h).
    Heads live along rows, so scores come from one batched einsum, softmax is a plain
    row-softmax over sk lanes, and the PV einsum + head mask + fold-over-heads yields
    the concatenated per-head outputs. All reshapes keep the lane dim fixed and split
    rows at sublane-tile (8) boundaries -> no relayouts, no per-(batch,head) unrolling.
    """
    q3 = q.reshape(batch, sq, D_MODEL)
    k3 = k.reshape(batch, sk, D_MODEL)
    v3 = v.reshape(batch, sk, D_MODEL)

    q_tm = jnp.concatenate([q3] * N_HEAD, axis=1) * qmask_b            # (B, H*sq, D)
    s = jnp.einsum('bqd,bkd->bqk', q_tm, k3,
                   preferred_element_type=jnp.float32)                 # (B, H*sq, sk)
    s = s - jnp.max(s, axis=-1, keepdims=True)
    p = jnp.exp(s)
    p = p * pl.reciprocal(jnp.sum(p, axis=-1, keepdims=True), approx=True)
    ow = jnp.einsum('bqk,bkd->bqd', p, v3,
                    preferred_element_type=jnp.float32) * qmask_b      # (B, H*sq, D)
    ow4 = ow.reshape(batch, N_HEAD, sq, D_MODEL)                       # tile-aligned split
    out = ow4[:, 0]
    for h in range(1, N_HEAD):                                         # fold heads: 3 adds
        out = out + ow4[:, h]
    return out.reshape(batch * sq, D_MODEL)                            # (B*sq, D)


# ------------------------- fused Pallas kernel -------------------------
def fused_decoder_kernel(qmask_ref, x_ref, z_ref, wa_ref, w2_ref, vec_ref, fin_ref,
                         o_ref, *, batch, sx, sz, apply_final_norm):
    x = x_ref[...]     # (B*Sx, D)  batch folded into rows
    z = z_ref[...]     # (B*Sz, D)
    # head-selection mask broadcast hoisted once for the whole kernel (used 4x per layer)
    qmask_b = jnp.broadcast_to(qmask_ref[...], (batch, N_HEAD * sx, D_MODEL))

    num_layers = wa_ref.shape[0]
    for l in range(num_layers):        # static unrolled layer loop, x stays resident
        # ---- self-attention (fused QKV matmul straight from the ref slice) ----
        qkv = jnp.dot(x, wa_ref[l, :, WA_SLICES["sa_qkv"]],
                      preferred_element_type=jnp.float32) + _vp(vec_ref, l, "sa_bqkv")
        q = qkv[:, 0:D_MODEL]
        k = qkv[:, D_MODEL:2 * D_MODEL]
        v = qkv[:, 2 * D_MODEL:3 * D_MODEL]
        att = _attend(q, k, v, qmask_b, batch, sx, sx)
        sa = jnp.dot(att, wa_ref[l, :, WA_SLICES["sa_wo"]],
                     preferred_element_type=jnp.float32) + _vp(vec_ref, l, "sa_bo")
        x = _layernorm(x + sa, _vp(vec_ref, l, "n1g"), _vp(vec_ref, l, "n1b"))

        # ---- cross-attention to encoder memory z (fused KV matmul) ----
        qc = jnp.dot(x, wa_ref[l, :, WA_SLICES["ca_wq"]],
                     preferred_element_type=jnp.float32) + _vp(vec_ref, l, "ca_bq")
        kv = jnp.dot(z, wa_ref[l, :, WA_SLICES["ca_wkv"]],
                     preferred_element_type=jnp.float32) + _vp(vec_ref, l, "ca_bkv")
        kc = kv[:, 0:D_MODEL]
        vc = kv[:, D_MODEL:2 * D_MODEL]
        attc = _attend(qc, kc, vc, qmask_b, batch, sx, sz)
        ca = jnp.dot(attc, wa_ref[l, :, WA_SLICES["ca_wo"]],
                     preferred_element_type=jnp.float32) + _vp(vec_ref, l, "ca_bo")
        x = _layernorm(x + ca, _vp(vec_ref, l, "n2g"), _vp(vec_ref, l, "n2b"))

        # ---- feed-forward (ReLU) ----
        h = jnp.maximum(jnp.dot(x, wa_ref[l, :, WA_SLICES["w1"]],
                                preferred_element_type=jnp.float32) + _vp(vec_ref, l, "b1"),
                        0.0)
        ff = jnp.dot(h, w2_ref[l], preferred_element_type=jnp.float32) + _vp(vec_ref, l, "b2")
        x = _layernorm(x + ff, _vp(vec_ref, l, "n3g"), _vp(vec_ref, l, "n3b"))

    if apply_final_norm:   # torch only applies the final norm when norm is not None (static)
        x = _layernorm(x, fin_ref[0:1, 0:D_MODEL], fin_ref[1:2, 0:D_MODEL])

    o_ref[...] = x


# ------------------------- wrapper -------------------------
def invariant_transformer_decoder_forward(x, z, poses_x, poses_z, packed_params,
                                          norm_gb=None,
                                          x_mask=None, z_mask=None,
                                          x_key_padding_mask=None,
                                          z_key_padding_mask=None,
                                          x_is_causal=None, z_is_causal=False):
    """Mirrors InvariantTransformerDecoder.forward (layer loop + optional final norm),
    fully fused into one pallas_call."""
    del poses_x, poses_z                    # TODO(synk): frame bias unused - layer source not provided
    del x_mask, z_mask, x_key_padding_mask  # TODO(synk): masks unused - layer source not provided
    del z_key_padding_mask, x_is_causal, z_is_causal

    B, Sx, D = x.shape
    _, Sz, _ = z.shape
    assert D == D_MODEL
    wa_slab, w2_slab, vec_slab = packed_params

    # fold batch into rows outside the kernel (free XLA-side reshape)
    x2 = x.reshape(B * Sx, D)
    z2 = z.reshape(B * Sz, D)

    # constant head-selection mask: row r belongs to head r // Sx, column d to head d // D_HEAD
    qmask = (jnp.arange(N_HEAD * Sx)[:, None] // Sx ==
             jnp.arange(D_MODEL)[None, :] // D_HEAD).astype(jnp.float32)   # (H*Sx, D)

    apply_final_norm = norm_gb is not None
    fin = norm_gb if apply_final_norm else jnp.zeros((2, LANES), jnp.float32)

    kernel = functools.partial(fused_decoder_kernel, batch=B, sx=Sx, sz=Sz,
                               apply_final_norm=apply_final_norm)
    vmem = pl.BlockSpec(memory_space=pltpu.MemorySpace.VMEM)

    out2 = pl.pallas_call(
        kernel,
        out_shape=jax.ShapeDtypeStruct((B * Sx, D), jnp.float32),
        in_specs=[vmem] * 7,
        out_specs=vmem,
    )(qmask, x2, z2, wa_slab, w2_slab, vec_slab, fin)

    return out2.reshape(B, Sx, D)


# ------------------------- parameter init & packing -------------------------
def init_layer_params(key):
    ks = jax.random.split(key, 10)
    w = lambda k, s: jax.random.normal(k, s, jnp.float32) * 0.02
    zb = lambda n: jnp.zeros((1, n), jnp.float32)
    ones = lambda: jnp.ones((1, D_MODEL), jnp.float32)
    return dict(
        sa_wq=w(ks[0], (D_MODEL, D_MODEL)), sa_wk=w(ks[1], (D_MODEL, D_MODEL)),
        sa_wv=w(ks[2], (D_MODEL, D_MODEL)), sa_wo=w(ks[3], (D_MODEL, D_MODEL)),
        sa_bq=zb(D_MODEL), sa_bk=zb(D_MODEL), sa_bv=zb(D_MODEL), sa_bo=zb(D_MODEL),
        ca_wq=w(ks[4], (D_MODEL, D_MODEL)), ca_wk=w(ks[5], (D_MODEL, D_MODEL)),
        ca_wv=w(ks[6], (D_MODEL, D_MODEL)), ca_wo=w(ks[7], (D_MODEL, D_MODEL)),
        ca_bq=zb(D_MODEL), ca_bk=zb(D_MODEL), ca_bv=zb(D_MODEL), ca_bo=zb(D_MODEL),
        w1=w(ks[8], (D_MODEL, D_FF)), b1=zb(D_FF),
        w2=w(ks[9], (D_FF, D_MODEL)), b2=zb(D_MODEL),
        n1g=ones(), n1b=zb(D_MODEL),
        n2g=ones(), n2b=zb(D_MODEL),
        n3g=ones(), n3b=zb(D_MODEL),
    )


def pack_params(layer_params_list):
    """Pack per-layer params into 3 lane-dense slabs stacked over layers.
    1/sqrt(d_head) attention scale is folded into Wq / bq here."""
    wa_layers, w2_layers, vec_layers = [], [], []
    for p in layer_params_list:
        sa_qkv = jnp.concatenate([p["sa_wq"] * ATT_SCALE, p["sa_wk"], p["sa_wv"]], axis=1)
        ca_wkv = jnp.concatenate([p["ca_wk"], p["ca_wv"]], axis=1)
        wa = jnp.concatenate(
            [sa_qkv, p["sa_wo"], p["ca_wq"] * ATT_SCALE, ca_wkv, p["ca_wo"], p["w1"]],
            axis=1)                                                   # (D, 320)
        assert wa.shape == (D_MODEL, WA_COLS)

        vec_vals = {
            "sa_bqkv": jnp.concatenate([p["sa_bq"] * ATT_SCALE, p["sa_bk"], p["sa_bv"]], axis=1),
            "sa_bo": p["sa_bo"],
            "ca_bq": p["ca_bq"] * ATT_SCALE,
            "ca_bkv": jnp.concatenate([p["ca_bk"], p["ca_bv"]], axis=1),
            "ca_bo": p["ca_bo"],
            "b1": p["b1"], "b2": p["b2"],
            "n1g": p["n1g"], "n1b": p["n1b"],
            "n2g": p["n2g"], "n2b": p["n2b"],
            "n3g": p["n3g"], "n3b": p["n3b"],
        }
        rows = []
        for name, width in _VEC_LAYOUT:
            v = vec_vals[name]
            assert v.shape == (1, width)
            rows.append(jnp.pad(v, ((0, 0), (0, LANES - width))))     # (1, 128) per param
        rows.append(jnp.zeros((VEC_NROWS - len(rows), LANES), jnp.float32))
        vec = jnp.concatenate(rows, axis=0)                           # (16, 128)

        wa_layers.append(wa)
        w2_layers.append(p["w2"])
        vec_layers.append(vec)
    return (jnp.stack(wa_layers),    # (L, D, 320)
            jnp.stack(w2_layers),    # (L, D_FF, D)
            jnp.stack(vec_layers))   # (L, 16, 128)


# ------------------------- main -------------------------
if __name__ == "__main__":
    key = jax.random.PRNGKey(0)
    B, Sx, Sz = 2, 8, 16
    kx, kz, kp = jax.random.split(key, 3)

    x = jax.random.normal(kx, (B, Sx, D_MODEL), jnp.float32)
    z = jax.random.normal(kz, (B, Sz, D_MODEL), jnp.float32)
    # poses = (rotation frames, translations) - accepted but unused (see TODO above)
    poses_x = (jnp.tile(jnp.eye(3, dtype=jnp.float32), (B, Sx, 1, 1)),
               jnp.zeros((B, Sx, 3), jnp.float32))
    poses_z = (jnp.tile(jnp.eye(3, dtype=jnp.float32), (B, Sz, 1, 1)),
               jnp.zeros((B, Sz, 3), jnp.float32))

    layer_params = [init_layer_params(jax.random.fold_in(kp, i)) for i in range(NUM_LAYERS)]
    packed = pack_params(layer_params)
    # final norm: row 0 = gamma (lanes 0:D), row 1 = beta (lanes 0:D), lane-padded to 128
    norm_gb = jnp.zeros((2, LANES), jnp.float32).at[0, :D_MODEL].set(1.0)

    out = invariant_transformer_decoder_forward(x, z, poses_x, poses_z, packed, norm_gb)
    jax.block_until_ready(out)
    assert out.shape == (B, Sx, D_MODEL) and bool(jnp.all(jnp.isfinite(out)))
    print("KERNEL_OK")
</pallas_src>

<mosaic_0001>
module attributes {stable_mosaic.version = 11 : i64} {
  func.func @fused_decoder_kernel(%arg0: memref<32x32xf32, #tpu.memory_space<vmem>>, %arg1: memref<16x32xf32, #tpu.memory_space<vmem>>, %arg2: memref<32x32xf32, #tpu.memory_space<vmem>>, %arg3: memref<2x32x320xf32, #tpu.memory_space<vmem>>, %arg4: memref<2x64x32xf32, #tpu.memory_space<vmem>>, %arg5: memref<2x16x128xf32, #tpu.memory_space<vmem>>, %arg6: memref<2x128xf32, #tpu.memory_space<vmem>>, %arg7: memref<16x32xf32, #tpu.memory_space<vmem>>) attributes {dimension_semantics = [], scalar_prefetch = 0 : i64, scratch_operands = 0 : i64, tpu.core_type = #tpu.core_type<tc>} {
    %c0 = arith.constant 0 : index
    %c0_0 = arith.constant 0 : index
    %0 = vector.load %arg1[%c0, %c0_0] : memref<16x32xf32, #tpu.memory_space<vmem>>, vector<16x32xf32>
    %c0_1 = arith.constant 0 : index
    %c0_2 = arith.constant 0 : index
    %1 = vector.load %arg2[%c0_1, %c0_2] : memref<32x32xf32, #tpu.memory_space<vmem>>, vector<32x32xf32>
    %c0_3 = arith.constant 0 : index
    %c0_4 = arith.constant 0 : index
    %2 = vector.load %arg0[%c0_3, %c0_4] : memref<32x32xf32, #tpu.memory_space<vmem>>, vector<32x32xf32>
    %3 = vector.shape_cast %2 : vector<32x32xf32> to vector<1x32x32xf32>
    %4 = vector.broadcast %3 : vector<1x32x32xf32> to vector<2x32x32xf32>
    %c0_5 = arith.constant 0 : index
    %c0_6 = arith.constant 0 : index
    %c0_7 = arith.constant 0 : index
    %5 = vector.load %arg3[%c0_5, %c0_6, %c0_7] : memref<2x32x320xf32, #tpu.memory_space<vmem>>, vector<1x32x96xf32>
    %6 = vector.shape_cast %5 : vector<1x32x96xf32> to vector<32x96xf32>
    %cst = arith.constant dense<0.000000e+00> : vector<16x96xf32>
    %7 = tpu.matmul %0, %6, %cst {dimension_numbers = #tpu.dot_dimension_numbers<[1], [0], [0], [1], [0, 0, 1, 1], [], []>} : vector<16x32xf32>, vector<32x96xf32>, vector<16x96xf32> -> vector<16x96xf32>
    %c0_8 = arith.constant 0 : index
    %c0_9 = arith.constant 0 : index
    %c0_10 = arith.constant 0 : index
    %8 = vector.load %arg5[%c0_8, %c0_9, %c0_10] : memref<2x16x128xf32, #tpu.memory_space<vmem>>, vector<1x1x96xf32>
    %9 = vector.shape_cast %8 : vector<1x1x96xf32> to vector<1x96xf32>
    %10 = vector.broadcast %9 : vector<1x96xf32> to vector<16x96xf32>
    %11 = arith.addf %7, %10 : vector<16x96xf32>
    %12 = vector.extract_strided_slice %11 {offsets = [0, 0], sizes = [16, 32], strides = [1, 1]} : vector<16x96xf32> to vector<16x32xf32>
    %13 = vector.extract_strided_slice %11 {offsets = [0, 32], sizes = [16, 32], strides = [1, 1]} : vector<16x96xf32> to vector<16x32xf32>
    %14 = vector.extract_strided_slice %11 {offsets = [0, 64], sizes = [16, 32], strides = [1, 1]} : vector<16x96xf32> to vector<16x32xf32>
    %15 = vector.shape_cast %12 : vector<16x32xf32> to vector<2x8x32xf32>
    %16 = vector.shape_cast %13 : vector<16x32xf32> to vector<2x8x32xf32>
    %17 = vector.shape_cast %14 : vector<16x32xf32> to vector<2x8x32xf32>
    %18 = tpu.concatenate %15, %15, %15, %15 in 1 : vector<2x8x32xf32>, vector<2x8x32xf32>, vector<2x8x32xf32>, vector<2x8x32xf32> -> vector<2x32x32xf32>
    %19 = arith.mulf %18, %4 : vector<2x32x32xf32>
    "tpu.trace_start"() <{level = 10 : i32, message = "bqd,bkd->bqk"}> : () -> ()
    %cst_11 = arith.constant dense<0.000000e+00> : vector<2x32x8xf32>
    %20 = tpu.matmul %19, %16, %cst_11 {dimension_numbers = #tpu.dot_dimension_numbers<[2], [2], [1], [1], [0, 0, 0, 1, 1, 1], [0], [0]>} : vector<2x32x32xf32>, vector<2x8x32xf32>, vector<2x32x8xf32> -> vector<2x32x8xf32>
    "tpu.trace_stop"() : () -> ()
    %cst_12 = arith.constant dense<0xFF800000> : vector<2x32xf32>
    %21 = vector.multi_reduction <maximumf>, %20, %cst_12 [2] : vector<2x32x8xf32> to vector<2x32xf32>
    %22 = vector.shape_cast %21 : vector<2x32xf32> to vector<2x32x1xf32>
    %23 = vector.broadcast %22 : vector<2x32x1xf32> to vector<2x32x8xf32>
    %24 = arith.subf %20, %23 : vector<2x32x8xf32>
    %25 = math.exp %24 : vector<2x32x8xf32>
    %cst_13 = arith.constant dense<0.000000e+00> : vector<2x32xf32>
    %26 = vector.multi_reduction <add>, %25, %cst_13 [2] : vector<2x32x8xf32> to vector<2x32xf32>
    %27 = vector.shape_cast %26 : vector<2x32xf32> to vector<2x32x1xf32>
    %28 = tpu.reciprocal %27 {approx = true} : vector<2x32x1xf32> -> vector<2x32x1xf32>
    %29 = vector.broadcast %28 : vector<2x32x1xf32> to vector<2x32x8xf32>
    %30 = arith.mulf %25, %29 : vector<2x32x8xf32>
    "tpu.trace_start"() <{level = 10 : i32, message = "bqk,bkd->bqd"}> : () -> ()
    %cst_14 = arith.constant dense<0.000000e+00> : vector<2x32x32xf32>
    %31 = tpu.matmul %30, %17, %cst_14 {dimension_numbers = #tpu.dot_dimension_numbers<[2], [1], [1], [2], [0, 0, 0, 1, 1, 2], [0], [0]>} : vector<2x32x8xf32>, vector<2x8x32xf32>, vector<2x32x32xf32> -> vector<2x32x32xf32>
    "tpu.trace_stop"() : () -> ()
    %32 = arith.mulf %31, %4 : vector<2x32x32xf32>
    %33 = vector.shape_cast %32 : vector<2x32x32xf32> to vector<2x4x8x32xf32>
    %34 = vector.extract_strided_slice %33 {offsets = [0, 0, 0, 0], sizes = [2, 1, 8, 32], strides = [1, 1, 1, 1]} : vector<2x4x8x32xf32> to vector<2x1x8x32xf32>
    %35 = vector.shape_cast %34 : vector<2x1x8x32xf32> to vector<2x8x32xf32>
    %36 = vector.extract_strided_slice %33 {offsets = [0, 1, 0, 0], sizes = [2, 1, 8, 32], strides = [1, 1, 1, 1]} : vector<2x4x8x32xf32> to vector<2x1x8x32xf32>
    %37 = vector.shape_cast %36 : vector<2x1x8x32xf32> to vector<2x8x32xf32>
    %38 = arith.addf %35, %37 : vector<2x8x32xf32>
    %39 = vector.extract_strided_slice %33 {offsets = [0, 2, 0, 0], sizes = [2, 1, 8, 32], strides = [1, 1, 1, 1]} : vector<2x4x8x32xf32> to vector<2x1x8x32xf32>
    %40 = vector.shape_cast %39 : vector<2x1x8x32xf32> to vector<2x8x32xf32>
    %41 = arith.addf %38, %40 : vector<2x8x32xf32>
    %42 = vector.extract_strided_slice %33 {offsets = [0, 3, 0, 0], sizes = [2, 1, 8, 32], strides = [1, 1, 1, 1]} : vector<2x4x8x32xf32> to vector<2x1x8x32xf32>
    %43 = vector.shape_cast %42 : vector<2x1x8x32xf32> to vector<2x8x32xf32>
    %44 = arith.addf %41, %43 : vector<2x8x32xf32>
    %45 = vector.shape_cast %44 : vector<2x8x32xf32> to vector<16x32xf32>
    %c0_15 = arith.constant 0 : index
    %c0_16 = arith.constant 0 : index
    %c96 = arith.constant 96 : index
    %46 = vector.load %arg3[%c0_15, %c0_16, %c96] : memref<2x32x320xf32, #tpu.memory_space<vmem>>, vector<1x32x32xf32>
    %47 = vector.shape_cast %46 : vector<1x32x32xf32> to vector<32x32xf32>
    %cst_17 = arith.constant dense<0.000000e+00> : vector<16x32xf32>
    %48 = tpu.matmul %45, %47, %cst_17 {dimension_numbers = #tpu.dot_dimension_numbers<[1], [0], [0], [1], [0, 0, 1, 1], [], []>} : vector<16x32xf32>, vector<32x32xf32>, vector<16x32xf32> -> vector<16x32xf32>
    %c0_18 = arith.constant 0 : index
    %c1 = arith.constant 1 : index
    %c0_19 = arith.constant 0 : index
    %49 = vector.load %arg5[%c0_18, %c1, %c0_19] : memref<2x16x128xf32, #tpu.memory_space<vmem>>, vector<1x1x32xf32>
    %50 = vector.shape_cast %49 : vector<1x1x32xf32> to vector<1x32xf32>
    %51 = vector.broadcast %50 : vector<1x32xf32> to vector<16x32xf32>
    %52 = arith.addf %48, %51 : vector<16x32xf32>
    %53 = arith.addf %0, %52 : vector<16x32xf32>
    %c0_20 = arith.constant 0 : index
    %c7 = arith.constant 7 : index
    %c0_21 = arith.constant 0 : index
    %54 = vector.load %arg5[%c0_20, %c7, %c0_21] : memref<2x16x128xf32, #tpu.memory_space<vmem>>, vector<1x1x32xf32>
    %55 = vector.shape_cast %54 : vector<1x1x32xf32> to vector<1x32xf32>
    %c0_22 = arith.constant 0 : index
    %c8 = arith.constant 8 : index
    %c0_23 = arith.constant 0 : index
    %56 = vector.load %arg5[%c0_22, %c8, %c0_23] : memref<2x16x128xf32, #tpu.memory_space<vmem>>, vector<1x1x32xf32>
    %57 = vector.shape_cast %56 : vector<1x1x32xf32> to vector<1x32xf32>
    %cst_24 = arith.constant dense<0.000000e+00> : vector<16xf32>
    %58 = vector.multi_reduction <add>, %53, %cst_24 [1] : vector<16x32xf32> to vector<16xf32>
    %59 = vector.shape_cast %58 : vector<16xf32> to vector<16x1xf32>
    %cst_25 = arith.constant 3.200000e+01 : f32
    %60 = vector.broadcast %cst_25 : f32 to vector<16x1xf32>
    %61 = arith.divf %59, %60 : vector<16x1xf32>
    %62 = vector.broadcast %61 : vector<16x1xf32> to vector<16x32xf32>
    %63 = arith.subf %53, %62 : vector<16x32xf32>
    %64 = arith.mulf %63, %63 : vector<16x32xf32>
    %cst_26 = arith.constant dense<0.000000e+00> : vector<16xf32>
    %65 = vector.multi_reduction <add>, %64, %cst_26 [1] : vector<16x32xf32> to vector<16xf32>
    %66 = vector.shape_cast %65 : vector<16xf32> to vector<16x1xf32>
    %cst_27 = arith.constant 3.200000e+01 : f32
    %67 = vector.broadcast %cst_27 : f32 to vector<16x1xf32>
    %68 = arith.divf %66, %67 : vector<16x1xf32>
    %69 = vector.broadcast %61 : vector<16x1xf32> to vector<16x32xf32>
    %70 = arith.subf %53, %69 : vector<16x32xf32>
    %cst_28 = arith.constant 9.99999974E-6 : f32
    %71 = vector.broadcast %cst_28 : f32 to vector<16x1xf32>
    %72 = arith.addf %68, %71 : vector<16x1xf32>
    %73 = math.rsqrt %72 : vector<16x1xf32>
    %74 = vector.broadcast %73 : vector<16x1xf32> to vector<16x32xf32>
    %75 = arith.mulf %70, %74 : vector<16x32xf32>
    %76 = vector.broadcast %55 : vector<1x32xf32> to vector<16x32xf32>
    %77 = arith.mulf %75, %76 : vector<16x32xf32>
    %78 = vector.broadcast %57 : vector<1x32xf32> to vector<16x32xf32>
    %79 = arith.addf %77, %78 : vector<16x32xf32>
    %c0_29 = arith.constant 0 : index
    %c0_30 = arith.constant 0 : index
    %c128 = arith.constant 128 : index
    %80 = vector.load %arg3[%c0_29, %c0_30, %c128] : memref<2x32x320xf32, #tpu.memory_space<vmem>>, vector<1x32x32xf32>
    %81 = vector.shape_cast %80 : vector<1x32x32xf32> to vector<32x32xf32>
    %cst_31 = arith.constant dense<0.000000e+00> : vector<16x32xf32>
    %82 = tpu.matmul %79, %81, %cst_31 {dimension_numbers = #tpu.dot_dimension_numbers<[1], [0], [0], [1], [0, 0, 1, 1], [], []>} : vector<16x32xf32>, vector<32x32xf32>, vector<16x32xf32> -> vector<16x32xf32>
    %c0_32 = arith.constant 0 : index
    %c2 = arith.constant 2 : index
    %c0_33 = arith.constant 0 : index
    %83 = vector.load %arg5[%c0_32, %c2, %c0_33] : memref<2x16x128xf32, #tpu.memory_space<vmem>>, vector<1x1x32xf32>
    %84 = vector.shape_cast %83 : vector<1x1x32xf32> to vector<1x32xf32>
    %85 = vector.broadcast %84 : vector<1x32xf32> to vector<16x32xf32>
    %86 = arith.addf %82, %85 : vector<16x32xf32>
    %c0_34 = arith.constant 0 : index
    %c0_35 = arith.constant 0 : index
    %c160 = arith.constant 160 : index
    %87 = vector.load %arg3[%c0_34, %c0_35, %c160] : memref<2x32x320xf32, #tpu.memory_space<vmem>>, vector<1x32x64xf32>
    %88 = vector.shape_cast %87 : vector<1x32x64xf32> to vector<32x64xf32>
    %cst_36 = arith.constant dense<0.000000e+00> : vector<32x64xf32>
    %89 = tpu.matmul %1, %88, %cst_36 {dimension_numbers = #tpu.dot_dimension_numbers<[1], [0], [0], [1], [0, 0, 1, 1], [], []>} : vector<32x32xf32>, vector<32x64xf32>, vector<32x64xf32> -> vector<32x64xf32>
    %c0_37 = arith.constant 0 : index
    %c3 = arith.constant 3 : index
    %c0_38 = arith.constant 0 : index
    %90 = vector.load %arg5[%c0_37, %c3, %c0_38] : memref<2x16x128xf32, #tpu.memory_space<vmem>>, vector<1x1x64xf32>
    %91 = vector.shape_cast %90 : vector<1x1x64xf32> to vector<1x64xf32>
    %92 = vector.broadcast %91 : vector<1x64xf32> to vector<32x64xf32>
    %93 = arith.addf %89, %92 : vector<32x64xf32>
    %94 = vector.extract_strided_slice %93 {offsets = [0, 0], sizes = [32, 32], strides = [1, 1]} : vector<32x64xf32> to vector<32x32xf32>
    %95 = vector.extract_strided_slice %93 {offsets = [0, 32], sizes = [32, 32], strides = [1, 1]} : vector<32x64xf32> to vector<32x32xf32>
    %96 = vector.shape_cast %86 : vector<16x32xf32> to vector<2x8x32xf32>
    %97 = vector.shape_cast %94 : vector<32x32xf32> to vector<2x16x32xf32>
    %98 = vector.shape_cast %95 : vector<32x32xf32> to vector<2x16x32xf32>
    %99 = tpu.concatenate %96, %96, %96, %96 in 1 : vector<2x8x32xf32>, vector<2x8x32xf32>, vector<2x8x32xf32>, vector<2x8x32xf32> -> vector<2x32x32xf32>
    %100 = arith.mulf %99, %4 : vector<2x32x32xf32>
    "tpu.trace_start"() <{level = 10 : i32, message = "bqd,bkd->bqk"}> : () -> ()
    %cst_39 = arith.constant dense<0.000000e+00> : vector<2x32x16xf32>
    %101 = tpu.matmul %100, %97, %cst_39 {dimension_numbers = #tpu.dot_dimension_numbers<[2], [2], [1], [1], [0, 0, 0, 1, 1, 1], [0], [0]>} : vector<2x32x32xf32>, vector<2x16x32xf32>, vector<2x32x16xf32> -> vector<2x32x16xf32>
    "tpu.trace_stop"() : () -> ()
    %cst_40 = arith.constant dense<0xFF800000> : vector<2x32xf32>
    %102 = vector.multi_reduction <maximumf>, %101, %cst_40 [2] : vector<2x32x16xf32> to vector<2x32xf32>
    %103 = vector.shape_cast %102 : vector<2x32xf32> to vector<2x32x1xf32>
    %104 = vector.broadcast %103 : vector<2x32x1xf32> to vector<2x32x16xf32>
    %105 = arith.subf %101, %104 : vector<2x32x16xf32>
    %106 = math.exp %105 : vector<2x32x16xf32>
    %cst_41 = arith.constant dense<0.000000e+00> : vector<2x32xf32>
    %107 = vector.multi_reduction <add>, %106, %cst_41 [2] : vector<2x32x16xf32> to vector<2x32xf32>
    %108 = vector.shape_cast %107 : vector<2x32xf32> to vector<2x32x1xf32>
    %109 = tpu.reciprocal %108 {approx = true} : vector<2x32x1xf32> -> vector<2x32x1xf32>
    %110 = vector.broadcast %109 : vector<2x32x1xf32> to vector<2x32x16xf32>
    %111 = arith.mulf %106, %110 : vector<2x32x16xf32>
    "tpu.trace_start"() <{level = 10 : i32, message = "bqk,bkd->bqd"}> : () -> ()
    %cst_42 = arith.constant dense<0.000000e+00> : vector<2x32x32xf32>
    %112 = tpu.matmul %111, %98, %cst_42 {dimension_numbers = #tpu.dot_dimension_numbers<[2], [1], [1], [2], [0, 0, 0, 1, 1, 2], [0], [0]>} : vector<2x32x16xf32>, vector<2x16x32xf32>, vector<2x32x32xf32> -> vector<2x32x32xf32>
    "tpu.trace_stop"() : () -> ()
    %113 = arith.mulf %112, %4 : vector<2x32x32xf32>
    %114 = vector.shape_cast %113 : vector<2x32x32xf32> to vector<2x4x8x32xf32>
    %115 = vector.extract_strided_slice %114 {offsets = [0, 0, 0, 0], sizes = [2, 1, 8, 32], strides = [1, 1, 1, 1]} : vector<2x4x8x32xf32> to vector<2x1x8x32xf32>
    %116 = vector.shape_cast %115 : vector<2x1x8x32xf32> to vector<2x8x32xf32>
    %117 = vector.extract_strided_slice %114 {offsets = [0, 1, 0, 0], sizes = [2, 1, 8, 32], strides = [1, 1, 1, 1]} : vector<2x4x8x32xf32> to vector<2x1x8x32xf32>
    %118 = vector.shape_cast %117 : vector<2x1x8x32xf32> to vector<2x8x32xf32>
    %119 = arith.addf %116, %118 : vector<2x8x32xf32>
    %120 = vector.extract_strided_slice %114 {offsets = [0, 2, 0, 0], sizes = [2, 1, 8, 32], strides = [1, 1, 1, 1]} : vector<2x4x8x32xf32> to vector<2x1x8x32xf32>
    %121 = vector.shape_cast %120 : vector<2x1x8x32xf32> to vector<2x8x32xf32>
    %122 = arith.addf %119, %121 : vector<2x8x32xf32>
    %123 = vector.extract_strided_slice %114 {offsets = [0, 3, 0, 0], sizes = [2, 1, 8, 32], strides = [1, 1, 1, 1]} : vector<2x4x8x32xf32> to vector<2x1x8x32xf32>
    %124 = vector.shape_cast %123 : vector<2x1x8x32xf32> to vector<2x8x32xf32>
    %125 = arith.addf %122, %124 : vector<2x8x32xf32>
    %126 = vector.shape_cast %125 : vector<2x8x32xf32> to vector<16x32xf32>
    %c0_43 = arith.constant 0 : index
    %c0_44 = arith.constant 0 : index
    %c224 = arith.constant 224 : index
    %127 = vector.load %arg3[%c0_43, %c0_44, %c224] : memref<2x32x320xf32, #tpu.memory_space<vmem>>, vector<1x32x32xf32>
    %128 = vector.shape_cast %127 : vector<1x32x32xf32> to vector<32x32xf32>
    %cst_45 = arith.constant dense<0.000000e+00> : vector<16x32xf32>
    %129 = tpu.matmul %126, %128, %cst_45 {dimension_numbers = #tpu.dot_dimension_numbers<[1], [0], [0], [1], [0, 0, 1, 1], [], []>} : vector<16x32xf32>, vector<32x32xf32>, vector<16x32xf32> -> vector<16x32xf32>
    %c0_46 = arith.constant 0 : index
    %c4 = arith.constant 4 : index
    %c0_47 = arith.constant 0 : index
    %130 = vector.load %arg5[%c0_46, %c4, %c0_47] : memref<2x16x128xf32, #tpu.memory_space<vmem>>, vector<1x1x32xf32>
    %131 = vector.shape_cast %130 : vector<1x1x32xf32> to vector<1x32xf32>
    %132 = vector.broadcast %131 : vector<1x32xf32> to vector<16x32xf32>
    %133 = arith.addf %129, %132 : vector<16x32xf32>
    %134 = arith.addf %79, %133 : vector<16x32xf32>
    %c0_48 = arith.constant 0 : index
    %c9 = arith.constant 9 : index
    %c0_49 = arith.constant 0 : index
    %135 = vector.load %arg5[%c0_48, %c9, %c0_49] : memref<2x16x128xf32, #tpu.memory_space<vmem>>, vector<1x1x32xf32>
    %136 = vector.shape_cast %135 : vector<1x1x32xf32> to vector<1x32xf32>
    %c0_50 = arith.constant 0 : index
    %c10 = arith.constant 10 : index
    %c0_51 = arith.constant 0 : index
    %137 = vector.load %arg5[%c0_50, %c10, %c0_51] : memref<2x16x128xf32, #tpu.memory_space<vmem>>, vector<1x1x32xf32>
    %138 = vector.shape_cast %137 : vector<1x1x32xf32> to vector<1x32xf32>
    %cst_52 = arith.constant dense<0.000000e+00> : vector<16xf32>
    %139 = vector.multi_reduction <add>, %134, %cst_52 [1] : vector<16x32xf32> to vector<16xf32>
    %140 = vector.shape_cast %139 : vector<16xf32> to vector<16x1xf32>
    %cst_53 = arith.constant 3.200000e+01 : f32
    %141 = vector.broadcast %cst_53 : f32 to vector<16x1xf32>
    %142 = arith.divf %140, %141 : vector<16x1xf32>
    %143 = vector.broadcast %142 : vector<16x1xf32> to vector<16x32xf32>
    %144 = arith.subf %134, %143 : vector<16x32xf32>
    %145 = arith.mulf %144, %144 : vector<16x32xf32>
    %cst_54 = arith.constant dense<0.000000e+00> : vector<16xf32>
    %146 = vector.multi_reduction <add>, %145, %cst_54 [1] : vector<16x32xf32> to vector<16xf32>
    %147 = vector.shape_cast %146 : vector<16xf32> to vector<16x1xf32>
    %cst_55 = arith.constant 3.200000e+01 : f32
    %148 = vector.broadcast %cst_55 : f32 to vector<16x1xf32>
    %149 = arith.divf %147, %148 : vector<16x1xf32>
    %150 = vector.broadcast %142 : vector<16x1xf32> to vector<16x32xf32>
    %151 = arith.subf %134, %150 : vector<16x32xf32>
    %cst_56 = arith.constant 9.99999974E-6 : f32
    %152 = vector.broadcast %cst_56 : f32 to vector<16x1xf32>
    %153 = arith.addf %149, %152 : vector<16x1xf32>
    %154 = math.rsqrt %153 : vector<16x1xf32>
    %155 = vector.broadcast %154 : vector<16x1xf32> to vector<16x32xf32>
    %156 = arith.mulf %151, %155 : vector<16x32xf32>
    %157 = vector.broadcast %136 : vector<1x32xf32> to vector<16x32xf32>
    %158 = arith.mulf %156, %157 : vector<16x32xf32>
    %159 = vector.broadcast %138 : vector<1x32xf32> to vector<16x32xf32>
    %160 = arith.addf %158, %159 : vector<16x32xf32>
    %c0_57 = arith.constant 0 : index
    %c0_58 = arith.constant 0 : index
    %c256 = arith.constant 256 : index
    %161 = vector.load %arg3[%c0_57, %c0_58, %c256] : memref<2x32x320xf32, #tpu.memory_space<vmem>>, vector<1x32x64xf32>
    %162 = vector.shape_cast %161 : vector<1x32x64xf32> to vector<32x64xf32>
    %cst_59 = arith.constant dense<0.000000e+00> : vector<16x64xf32>
    %163 = tpu.matmul %160, %162, %cst_59 {dimension_numbers = #tpu.dot_dimension_numbers<[1], [0], [0], [1], [0, 0, 1, 1], [], []>} : vector<16x32xf32>, vector<32x64xf32>, vector<16x64xf32> -> vector<16x64xf32>
    %c0_60 = arith.constant 0 : index
    %c5 = arith.constant 5 : index
    %c0_61 = arith.constant 0 : index
    %164 = vector.load %arg5[%c0_60, %c5, %c0_61] : memref<2x16x128xf32, #tpu.memory_space<vmem>>, vector<1x1x64xf32>
    %165 = vector.shape_cast %164 : vector<1x1x64xf32> to vector<1x64xf32>
    %166 = vector.broadcast %165 : vector<1x64xf32> to vector<16x64xf32>
    %167 = arith.addf %163, %166 : vector<16x64xf32>
    %cst_62 = arith.constant 0.000000e+00 : f32
    %168 = vector.broadcast %cst_62 : f32 to vector<16x64xf32>
    %169 = arith.maximumf %167, %168 : vector<16x64xf32>
    %c0_63 = arith.constant 0 : index
    %c0_64 = arith.constant 0 : index
    %c0_65 = arith.constant 0 : index
    %170 = vector.load %arg4[%c0_63, %c0_64, %c0_65] : memref<2x64x32xf32, #tpu.memory_space<vmem>>, vector<1x64x32xf32>
    %171 = vector.shape_cast %170 : vector<1x64x32xf32> to vector<64x32xf32>
    %cst_66 = arith.constant dense<0.000000e+00> : vector<16x32xf32>
    %172 = tpu.matmul %169, %171, %cst_66 {dimension_numbers = #tpu.dot_dimension_numbers<[1], [0], [0], [1], [0, 0, 1, 1], [], []>} : vector<16x64xf32>, vector<64x32xf32>, vector<16x32xf32> -> vector<16x32xf32>
    %c0_67 = arith.constant 0 : index
    %c6 = arith.constant 6 : index
    %c0_68 = arith.constant 0 : index
    %173 = vector.load %arg5[%c0_67, %c6, %c0_68] : memref<2x16x128xf32, #tpu.memory_space<vmem>>, vector<1x1x32xf32>
    %174 = vector.shape_cast %173 : vector<1x1x32xf32> to vector<1x32xf32>
    %175 = vector.broadcast %174 : vector<1x32xf32> to vector<16x32xf32>
    %176 = arith.addf %172, %175 : vector<16x32xf32>
    %177 = arith.addf %160, %176 : vector<16x32xf32>
    %c0_69 = arith.constant 0 : index
    %c11 = arith.constant 11 : index
    %c0_70 = arith.constant 0 : index
    %178 = vector.load %arg5[%c0_69, %c11, %c0_70] : memref<2x16x128xf32, #tpu.memory_space<vmem>>, vector<1x1x32xf32>
    %179 = vector.shape_cast %178 : vector<1x1x32xf32> to vector<1x32xf32>
    %c0_71 = arith.constant 0 : index
    %c12 = arith.constant 12 : index
    %c0_72 = arith.constant 0 : index
    %180 = vector.load %arg5[%c0_71, %c12, %c0_72] : memref<2x16x128xf32, #tpu.memory_space<vmem>>, vector<1x1x32xf32>
    %181 = vector.shape_cast %180 : vector<1x1x32xf32> to vector<1x32xf32>
    %cst_73 = arith.constant dense<0.000000e+00> : vector<16xf32>
    %182 = vector.multi_reduction <add>, %177, %cst_73 [1] : vector<16x32xf32> to vector<16xf32>
    %183 = vector.shape_cast %182 : vector<16xf32> to vector<16x1xf32>
    %cst_74 = arith.constant 3.200000e+01 : f32
    %184 = vector.broadcast %cst_74 : f32 to vector<16x1xf32>
    %185 = arith.divf %183, %184 : vector<16x1xf32>
    %186 = vector.broadcast %185 : vector<16x1xf32> to vector<16x32xf32>
    %187 = arith.subf %177, %186 : vector<16x32xf32>
    %188 = arith.mulf %187, %187 : vector<16x32xf32>
    %cst_75 = arith.constant dense<0.000000e+00> : vector<16xf32>
    %189 = vector.multi_reduction <add>, %188, %cst_75 [1] : vector<16x32xf32> to vector<16xf32>
    %190 = vector.shape_cast %189 : vector<16xf32> to vector<16x1xf32>
    %cst_76 = arith.constant 3.200000e+01 : f32
    %191 = vector.broadcast %cst_76 : f32 to vector<16x1xf32>
    %192 = arith.divf %190, %191 : vector<16x1xf32>
    %193 = vector.broadcast %185 : vector<16x1xf32> to vector<16x32xf32>
    %194 = arith.subf %177, %193 : vector<16x32xf32>
    %cst_77 = arith.constant 9.99999974E-6 : f32
    %195 = vector.broadcast %cst_77 : f32 to vector<16x1xf32>
    %196 = arith.addf %192, %195 : vector<16x1xf32>
    %197 = math.rsqrt %196 : vector<16x1xf32>
    %198 = vector.broadcast %197 : vector<16x1xf32> to vector<16x32xf32>
    %199 = arith.mulf %194, %198 : vector<16x32xf32>
    %200 = vector.broadcast %179 : vector<1x32xf32> to vector<16x32xf32>
    %201 = arith.mulf %199, %200 : vector<16x32xf32>
    %202 = vector.broadcast %181 : vector<1x32xf32> to vector<16x32xf32>
    %203 = arith.addf %201, %202 : vector<16x32xf32>
    %c1_78 = arith.constant 1 : index
    %c0_79 = arith.constant 0 : index
    %c0_80 = arith.constant 0 : index
    %204 = vector.load %arg3[%c1_78, %c0_79, %c0_80] : memref<2x32x320xf32, #tpu.memory_space<vmem>>, vector<1x32x96xf32>
    %205 = vector.shape_cast %204 : vector<1x32x96xf32> to vector<32x96xf32>
    %cst_81 = arith.constant dense<0.000000e+00> : vector<16x96xf32>
    %206 = tpu.matmul %203, %205, %cst_81 {dimension_numbers = #tpu.dot_dimension_numbers<[1], [0], [0], [1], [0, 0, 1, 1], [], []>} : vector<16x32xf32>, vector<32x96xf32>, vector<16x96xf32> -> vector<16x96xf32>
    %c1_82 = arith.constant 1 : index
    %c0_83 = arith.constant 0 : index
    %c0_84 = arith.constant 0 : index
    %207 = vector.load %arg5[%c1_82, %c0_83, %c0_84] : memref<2x16x128xf32, #tpu.memory_space<vmem>>, vector<1x1x96xf32>
    %208 = vector.shape_cast %207 : vector<1x1x96xf32> to vector<1x96xf32>
    %209 = vector.broadcast %208 : vector<1x96xf32> to vector<16x96xf32>
    %210 = arith.addf %206, %209 : vector<16x96xf32>
    %211 = vector.extract_strided_slice %210 {offsets = [0, 0], sizes = [16, 32], strides = [1, 1]} : vector<16x96xf32> to vector<16x32xf32>
    %212 = vector.extract_strided_slice %210 {offsets = [0, 32], sizes = [16, 32], strides = [1, 1]} : vector<16x96xf32> to vector<16x32xf32>
    %213 = vector.extract_strided_slice %210 {offsets = [0, 64], sizes = [16, 32], strides = [1, 1]} : vector<16x96xf32> to vector<16x32xf32>
    %214 = vector.shape_cast %211 : vector<16x32xf32> to vector<2x8x32xf32>
    %215 = vector.shape_cast %212 : vector<16x32xf32> to vector<2x8x32xf32>
    %216 = vector.shape_cast %213 : vector<16x32xf32> to vector<2x8x32xf32>
    %217 = tpu.concatenate %214, %214, %214, %214 in 1 : vector<2x8x32xf32>, vector<2x8x32xf32>, vector<2x8x32xf32>, vector<2x8x32xf32> -> vector<2x32x32xf32>
    %218 = arith.mulf %217, %4 : vector<2x32x32xf32>
    "tpu.trace_start"() <{level = 10 : i32, message = "bqd,bkd->bqk"}> : () -> ()
    %cst_85 = arith.constant dense<0.000000e+00> : vector<2x32x8xf32>
    %219 = tpu.matmul %218, %215, %cst_85 {dimension_numbers = #tpu.dot_dimension_numbers<[2], [2], [1], [1], [0, 0, 0, 1, 1, 1], [0], [0]>} : vector<2x32x32xf32>, vector<2x8x32xf32>, vector<2x32x8xf32> -> vector<2x32x8xf32>
    "tpu.trace_stop"() : () -> ()
    %cst_86 = arith.constant dense<0xFF800000> : vector<2x32xf32>
    %220 = vector.multi_reduction <maximumf>, %219, %cst_86 [2] : vector<2x32x8xf32> to vector<2x32xf32>
    %221 = vector.shape_cast %220 : vector<2x32xf32> to vector<2x32x1xf32>
    %222 = vector.broadcast %221 : vector<2x32x1xf32> to vector<2x32x8xf32>
    %223 = arith.subf %219, %222 : vector<2x32x8xf32>
    %224 = math.exp %223 : vector<2x32x8xf32>
    %cst_87 = arith.constant dense<0.000000e+00> : vector<2x32xf32>
    %225 = vector.multi_reduction <add>, %224, %cst_87 [2] : vector<2x32x8xf32> to vector<2x32xf32>
    %226 = vector.shape_cast %225 : vector<2x32xf32> to vector<2x32x1xf32>
    %227 = tpu.reciprocal %226 {approx = true} : vector<2x32x1xf32> -> vector<2x32x1xf32>
    %228 = vector.broadcast %227 : vector<2x32x1xf32> to vector<2x32x8xf32>
    %229 = arith.mulf %224, %228 : vector<2x32x8xf32>
    "tpu.trace_start"() <{level = 10 : i32, message = "bqk,bkd->bqd"}> : () -> ()
    %cst_88 = arith.constant dense<0.000000e+00> : vector<2x32x32xf32>
    %230 = tpu.matmul %229, %216, %cst_88 {dimension_numbers = #tpu.dot_dimension_numbers<[2], [1], [1], [2], [0, 0, 0, 1, 1, 2], [0], [0]>} : vector<2x32x8xf32>, vector<2x8x32xf32>, vector<2x32x32xf32> -> vector<2x32x32xf32>
    "tpu.trace_stop"() : () -> ()
    %231 = arith.mulf %230, %4 : vector<2x32x32xf32>
    %232 = vector.shape_cast %231 : vector<2x32x32xf32> to vector<2x4x8x32xf32>
    %233 = vector.extract_strided_slice %232 {offsets = [0, 0, 0, 0], sizes = [2, 1, 8, 32], strides = [1, 1, 1, 1]} : vector<2x4x8x32xf32> to vector<2x1x8x32xf32>
    %234 = vector.shape_cast %233 : vector<2x1x8x32xf32> to vector<2x8x32xf32>
    %235 = vector.extract_strided_slice %232 {offsets = [0, 1, 0, 0], sizes = [2, 1, 8, 32], strides = [1, 1, 1, 1]} : vector<2x4x8x32xf32> to vector<2x1x8x32xf32>
    %236 = vector.shape_cast %235 : vector<2x1x8x32xf32> to vector<2x8x32xf32>
    %237 = arith.addf %234, %236 : vector<2x8x32xf32>
    %238 = vector.extract_strided_slice %232 {offsets = [0, 2, 0, 0], sizes = [2, 1, 8, 32], strides = [1, 1, 1, 1]} : vector<2x4x8x32xf32> to vector<2x1x8x32xf32>
    %239 = vector.shape_cast %238 : vector<2x1x8x32xf32> to vector<2x8x32xf32>
    %240 = arith.addf %237, %239 : vector<2x8x32xf32>
    %241 = vector.extract_strided_slice %232 {offsets = [0, 3, 0, 0], sizes = [2, 1, 8, 32], strides = [1, 1, 1, 1]} : vector<2x4x8x32xf32> to vector<2x1x8x32xf32>
    %242 = vector.shape_cast %241 : vector<2x1x8x32xf32> to vector<2x8x32xf32>
    %243 = arith.addf %240, %242 : vector<2x8x32xf32>
    %244 = vector.shape_cast %243 : vector<2x8x32xf32> to vector<16x32xf32>
    %c1_89 = arith.constant 1 : index
    %c0_90 = arith.constant 0 : index
    %c96_91 = arith.constant 96 : index
    %245 = vector.load %arg3[%c1_89, %c0_90, %c96_91] : memref<2x32x320xf32, #tpu.memory_space<vmem>>, vector<1x32x32xf32>
    %246 = vector.shape_cast %245 : vector<1x32x32xf32> to vector<32x32xf32>
    %cst_92 = arith.constant dense<0.000000e+00> : vector<16x32xf32>
    %247 = tpu.matmul %244, %246, %cst_92 {dimension_numbers = #tpu.dot_dimension_numbers<[1], [0], [0], [1], [0, 0, 1, 1], [], []>} : vector<16x32xf32>, vector<32x32xf32>, vector<16x32xf32> -> vector<16x32xf32>
    %c1_93 = arith.constant 1 : index
    %c1_94 = arith.constant 1 : index
    %c0_95 = arith.constant 0 : index
    %248 = vector.load %arg5[%c1_93, %c1_94, %c0_95] : memref<2x16x128xf32, #tpu.memory_space<vmem>>, vector<1x1x32xf32>
    %249 = vector.shape_cast %248 : vector<1x1x32xf32> to vector<1x32xf32>
    %250 = vector.broadcast %249 : vector<1x32xf32> to vector<16x32xf32>
    %251 = arith.addf %247, %250 : vector<16x32xf32>
    %252 = arith.addf %203, %251 : vector<16x32xf32>
    %c1_96 = arith.constant 1 : index
    %c7_97 = arith.constant 7 : index
    %c0_98 = arith.constant 0 : index
    %253 = vector.load %arg5[%c1_96, %c7_97, %c0_98] : memref<2x16x128xf32, #tpu.memory_space<vmem>>, vector<1x1x32xf32>
    %254 = vector.shape_cast %253 : vector<1x1x32xf32> to vector<1x32xf32>
    %c1_99 = arith.constant 1 : index
    %c8_100 = arith.constant 8 : index
    %c0_101 = arith.constant 0 : index
    %255 = vector.load %arg5[%c1_99, %c8_100, %c0_101] : memref<2x16x128xf32, #tpu.memory_space<vmem>>, vector<1x1x32xf32>
    %256 = vector.shape_cast %255 : vector<1x1x32xf32> to vector<1x32xf32>
    %cst_102 = arith.constant dense<0.000000e+00> : vector<16xf32>
    %257 = vector.multi_reduction <add>, %252, %cst_102 [1] : vector<16x32xf32> to vector<16xf32>
    %258 = vector.shape_cast %257 : vector<16xf32> to vector<16x1xf32>
    %cst_103 = arith.constant 3.200000e+01 : f32
    %259 = vector.broadcast %cst_103 : f32 to vector<16x1xf32>
    %260 = arith.divf %258, %259 : vector<16x1xf32>
    %261 = vector.broadcast %260 : vector<16x1xf32> to vector<16x32xf32>
    %262 = arith.subf %252, %261 : vector<16x32xf32>
    %263 = arith.mulf %262, %262 : vector<16x32xf32>
    %cst_104 = arith.constant dense<0.000000e+00> : vector<16xf32>
    %264 = vector.multi_reduction <add>, %263, %cst_104 [1] : vector<16x32xf32> to vector<16xf32>
    %265 = vector.shape_cast %264 : vector<16xf32> to vector<16x1xf32>
    %cst_105 = arith.constant 3.200000e+01 : f32
    %266 = vector.broadcast %cst_105 : f32 to vector<16x1xf32>
    %267 = arith.divf %265, %266 : vector<16x1xf32>
    %268 = vector.broadcast %260 : vector<16x1xf32> to vector<16x32xf32>
    %269 = arith.subf %252, %268 : vector<16x32xf32>
    %cst_106 = arith.constant 9.99999974E-6 : f32
    %270 = vector.broadcast %cst_106 : f32 to vector<16x1xf32>
    %271 = arith.addf %267, %270 : vector<16x1xf32>
    %272 = math.rsqrt %271 : vector<16x1xf32>
    %273 = vector.broadcast %272 : vector<16x1xf32> to vector<16x32xf32>
    %274 = arith.mulf %269, %273 : vector<16x32xf32>
    %275 = vector.broadcast %254 : vector<1x32xf32> to vector<16x32xf32>
    %276 = arith.mulf %274, %275 : vector<16x32xf32>
    %277 = vector.broadcast %256 : vector<1x32xf32> to vector<16x32xf32>
    %278 = arith.addf %276, %277 : vector<16x32xf32>
    %c1_107 = arith.constant 1 : index
    %c0_108 = arith.constant 0 : index
    %c128_109 = arith.constant 128 : index
    %279 = vector.load %arg3[%c1_107, %c0_108, %c128_109] : memref<2x32x320xf32, #tpu.memory_space<vmem>>, vector<1x32x32xf32>
    %280 = vector.shape_cast %279 : vector<1x32x32xf32> to vector<32x32xf32>
    %cst_110 = arith.constant dense<0.000000e+00> : vector<16x32xf32>
    %281 = tpu.matmul %278, %280, %cst_110 {dimension_numbers = #tpu.dot_dimension_numbers<[1], [0], [0], [1], [0, 0, 1, 1], [], []>} : vector<16x32xf32>, vector<32x32xf32>, vector<16x32xf32> -> vector<16x32xf32>
    %c1_111 = arith.constant 1 : index
    %c2_112 = arith.constant 2 : index
    %c0_113 = arith.constant 0 : index
    %282 = vector.load %arg5[%c1_111, %c2_112, %c0_113] : memref<2x16x128xf32, #tpu.memory_space<vmem>>, vector<1x1x32xf32>
    %283 = vector.shape_cast %282 : vector<1x1x32xf32> to vector<1x32xf32>
    %284 = vector.broadcast %283 : vector<1x32xf32> to vector<16x32xf32>
    %285 = arith.addf %281, %284 : vector<16x32xf32>
    %c1_114 = arith.constant 1 : index
    %c0_115 = arith.constant 0 : index
    %c160_116 = arith.constant 160 : index
    %286 = vector.load %arg3[%c1_114, %c0_115, %c160_116] : memref<2x32x320xf32, #tpu.memory_space<vmem>>, vector<1x32x64xf32>
    %287 = vector.shape_cast %286 : vector<1x32x64xf32> to vector<32x64xf32>
    %cst_117 = arith.constant dense<0.000000e+00> : vector<32x64xf32>
    %288 = tpu.matmul %1, %287, %cst_117 {dimension_numbers = #tpu.dot_dimension_numbers<[1], [0], [0], [1], [0, 0, 1, 1], [], []>} : vector<32x32xf32>, vector<32x64xf32>, vector<32x64xf32> -> vector<32x64xf32>
    %c1_118 = arith.constant 1 : index
    %c3_119 = arith.constant 3 : index
    %c0_120 = arith.constant 0 : index
    %289 = vector.load %arg5[%c1_118, %c3_119, %c0_120] : memref<2x16x128xf32, #tpu.memory_space<vmem>>, vector<1x1x64xf32>
    %290 = vector.shape_cast %289 : vector<1x1x64xf32> to vector<1x64xf32>
    %291 = vector.broadcast %290 : vector<1x64xf32> to vector<32x64xf32>
    %292 = arith.addf %288, %291 : vector<32x64xf32>
    %293 = vector.extract_strided_slice %292 {offsets = [0, 0], sizes = [32, 32], strides = [1, 1]} : vector<32x64xf32> to vector<32x32xf32>
    %294 = vector.extract_strided_slice %292 {offsets = [0, 32], sizes = [32, 32], strides = [1, 1]} : vector<32x64xf32> to vector<32x32xf32>
    %295 = vector.shape_cast %285 : vector<16x32xf32> to vector<2x8x32xf32>
    %296 = vector.shape_cast %293 : vector<32x32xf32> to vector<2x16x32xf32>
    %297 = vector.shape_cast %294 : vector<32x32xf32> to vector<2x16x32xf32>
    %298 = tpu.concatenate %295, %295, %295, %295 in 1 : vector<2x8x32xf32>, vector<2x8x32xf32>, vector<2x8x32xf32>, vector<2x8x32xf32> -> vector<2x32x32xf32>
    %299 = arith.mulf %298, %4 : vector<2x32x32xf32>
    "tpu.trace_start"() <{level = 10 : i32, message = "bqd,bkd->bqk"}> : () -> ()
    %cst_121 = arith.constant dense<0.000000e+00> : vector<2x32x16xf32>
    %300 = tpu.matmul %299, %296, %cst_121 {dimension_numbers = #tpu.dot_dimension_numbers<[2], [2], [1], [1], [0, 0, 0, 1, 1, 1], [0], [0]>} : vector<2x32x32xf32>, vector<2x16x32xf32>, vector<2x32x16xf32> -> vector<2x32x16xf32>
    "tpu.trace_stop"() : () -> ()
    %cst_122 = arith.constant dense<0xFF800000> : vector<2x32xf32>
    %301 = vector.multi_reduction <maximumf>, %300, %cst_122 [2] : vector<2x32x16xf32> to vector<2x32xf32>
    %302 = vector.shape_cast %301 : vector<2x32xf32> to vector<2x32x1xf32>
    %303 = vector.broadcast %302 : vector<2x32x1xf32> to vector<2x32x16xf32>
    %304 = arith.subf %300, %303 : vector<2x32x16xf32>
    %305 = math.exp %304 : vector<2x32x16xf32>
    %cst_123 = arith.constant dense<0.000000e+00> : vector<2x32xf32>
    %306 = vector.multi_reduction <add>, %305, %cst_123 [2] : vector<2x32x16xf32> to vector<2x32xf32>
    %307 = vector.shape_cast %306 : vector<2x32xf32> to vector<2x32x1xf32>
    %308 = tpu.reciprocal %307 {approx = true} : vector<2x32x1xf32> -> vector<2x32x1xf32>
    %309 = vector.broadcast %308 : vector<2x32x1xf32> to vector<2x32x16xf32>
    %310 = arith.mulf %305, %309 : vector<2x32x16xf32>
    "tpu.trace_start"() <{level = 10 : i32, message = "bqk,bkd->bqd"}> : () -> ()
    %cst_124 = arith.constant dense<0.000000e+00> : vector<2x32x32xf32>
    %311 = tpu.matmul %310, %297, %cst_124 {dimension_numbers = #tpu.dot_dimension_numbers<[2], [1], [1], [2], [0, 0, 0, 1, 1, 2], [0], [0]>} : vector<2x32x16xf32>, vector<2x16x32xf32>, vector<2x32x32xf32> -> vector<2x32x32xf32>
    "tpu.trace_stop"() : () -> ()
    %312 = arith.mulf %311, %4 : vector<2x32x32xf32>
    %313 = vector.shape_cast %312 : vector<2x32x32xf32> to vector<2x4x8x32xf32>
    %314 = vector.extract_strided_slice %313 {offsets = [0, 0, 0, 0], sizes = [2, 1, 8, 32], strides = [1, 1, 1, 1]} : vector<2x4x8x32xf32> to vector<2x1x8x32xf32>
    %315 = vector.shape_cast %314 : vector<2x1x8x32xf32> to vector<2x8x32xf32>
    %316 = vector.extract_strided_slice %313 {offsets = [0, 1, 0, 0], sizes = [2, 1, 8, 32], strides = [1, 1, 1, 1]} : vector<2x4x8x32xf32> to vector<2x1x8x32xf32>
    %317 = vector.shape_cast %316 : vector<2x1x8x32xf32> to vector<2x8x32xf32>
    %318 = arith.addf %315, %317 : vector<2x8x32xf32>
    %319 = vector.extract_strided_slice %313 {offsets = [0, 2, 0, 0], sizes = [2, 1, 8, 32], strides = [1, 1, 1, 1]} : vector<2x4x8x32xf32> to vector<2x1x8x32xf32>
    %320 = vector.shape_cast %319 : vector<2x1x8x32xf32> to vector<2x8x32xf32>
    %321 = arith.addf %318, %320 : vector<2x8x32xf32>
    %322 = vector.extract_strided_slice %313 {offsets = [0, 3, 0, 0], sizes = [2, 1, 8, 32], strides = [1, 1, 1, 1]} : vector<2x4x8x32xf32> to vector<2x1x8x32xf32>
    %323 = vector.shape_cast %322 : vector<2x1x8x32xf32> to vector<2x8x32xf32>
    %324 = arith.addf %321, %323 : vector<2x8x32xf32>
    %325 = vector.shape_cast %324 : vector<2x8x32xf32> to vector<16x32xf32>
    %c1_125 = arith.constant 1 : index
    %c0_126 = arith.constant 0 : index
    %c224_127 = arith.constant 224 : index
    %326 = vector.load %arg3[%c1_125, %c0_126, %c224_127] : memref<2x32x320xf32, #tpu.memory_space<vmem>>, vector<1x32x32xf32>
    %327 = vector.shape_cast %326 : vector<1x32x32xf32> to vector<32x32xf32>
    %cst_128 = arith.constant dense<0.000000e+00> : vector<16x32xf32>
    %328 = tpu.matmul %325, %327, %cst_128 {dimension_numbers = #tpu.dot_dimension_numbers<[1], [0], [0], [1], [0, 0, 1, 1], [], []>} : vector<16x32xf32>, vector<32x32xf32>, vector<16x32xf32> -> vector<16x32xf32>
    %c1_129 = arith.constant 1 : index
    %c4_130 = arith.constant 4 : index
    %c0_131 = arith.constant 0 : index
    %329 = vector.load %arg5[%c1_129, %c4_130, %c0_131] : memref<2x16x128xf32, #tpu.memory_space<vmem>>, vector<1x1x32xf32>
    %330 = vector.shape_cast %329 : vector<1x1x32xf32> to vector<1x32xf32>
    %331 = vector.broadcast %330 : vector<1x32xf32> to vector<16x32xf32>
    %332 = arith.addf %328, %331 : vector<16x32xf32>
    %333 = arith.addf %278, %332 : vector<16x32xf32>
    %c1_132 = arith.constant 1 : index
    %c9_133 = arith.constant 9 : index
    %c0_134 = arith.constant 0 : index
    %334 = vector.load %arg5[%c1_132, %c9_133, %c0_134] : memref<2x16x128xf32, #tpu.memory_space<vmem>>, vector<1x1x32xf32>
    %335 = vector.shape_cast %334 : vector<1x1x32xf32> to vector<1x32xf32>
    %c1_135 = arith.constant 1 : index
    %c10_136 = arith.constant 10 : index
    %c0_137 = arith.constant 0 : index
    %336 = vector.load %arg5[%c1_135, %c10_136, %c0_137] : memref<2x16x128xf32, #tpu.memory_space<vmem>>, vector<1x1x32xf32>
    %337 = vector.shape_cast %336 : vector<1x1x32xf32> to vector<1x32xf32>
    %cst_138 = arith.constant dense<0.000000e+00> : vector<16xf32>
    %338 = vector.multi_reduction <add>, %333, %cst_138 [1] : vector<16x32xf32> to vector<16xf32>
    %339 = vector.shape_cast %338 : vector<16xf32> to vector<16x1xf32>
    %cst_139 = arith.constant 3.200000e+01 : f32
    %340 = vector.broadcast %cst_139 : f32 to vector<16x1xf32>
    %341 = arith.divf %339, %340 : vector<16x1xf32>
    %342 = vector.broadcast %341 : vector<16x1xf32> to vector<16x32xf32>
    %343 = arith.subf %333, %342 : vector<16x32xf32>
    %344 = arith.mulf %343, %343 : vector<16x32xf32>
    %cst_140 = arith.constant dense<0.000000e+00> : vector<16xf32>
    %345 = vector.multi_reduction <add>, %344, %cst_140 [1] : vector<16x32xf32> to vector<16xf32>
    %346 = vector.shape_cast %345 : vector<16xf32> to vector<16x1xf32>
    %cst_141 = arith.constant 3.200000e+01 : f32
    %347 = vector.broadcast %cst_141 : f32 to vector<16x1xf32>
    %348 = arith.divf %346, %347 : vector<16x1xf32>
    %349 = vector.broadcast %341 : vector<16x1xf32> to vector<16x32xf32>
    %350 = arith.subf %333, %349 : vector<16x32xf32>
    %cst_142 = arith.constant 9.99999974E-6 : f32
    %351 = vector.broadcast %cst_142 : f32 to vector<16x1xf32>
    %352 = arith.addf %348, %351 : vector<16x1xf32>
    %353 = math.rsqrt %352 : vector<16x1xf32>
    %354 = vector.broadcast %353 : vector<16x1xf32> to vector<16x32xf32>
    %355 = arith.mulf %350, %354 : vector<16x32xf32>
    %356 = vector.broadcast %335 : vector<1x32xf32> to vector<16x32xf32>
    %357 = arith.mulf %355, %356 : vector<16x32xf32>
    %358 = vector.broadcast %337 : vector<1x32xf32> to vector<16x32xf32>
    %359 = arith.addf %357, %358 : vector<16x32xf32>
    %c1_143 = arith.constant 1 : index
    %c0_144 = arith.constant 0 : index
    %c256_145 = arith.constant 256 : index
    %360 = vector.load %arg3[%c1_143, %c0_144, %c256_145] : memref<2x32x320xf32, #tpu.memory_space<vmem>>, vector<1x32x64xf32>
    %361 = vector.shape_cast %360 : vector<1x32x64xf32> to vector<32x64xf32>
    %cst_146 = arith.constant dense<0.000000e+00> : vector<16x64xf32>
    %362 = tpu.matmul %359, %361, %cst_146 {dimension_numbers = #tpu.dot_dimension_numbers<[1], [0], [0], [1], [0, 0, 1, 1], [], []>} : vector<16x32xf32>, vector<32x64xf32>, vector<16x64xf32> -> vector<16x64xf32>
    %c1_147 = arith.constant 1 : index
    %c5_148 = arith.constant 5 : index
    %c0_149 = arith.constant 0 : index
    %363 = vector.load %arg5[%c1_147, %c5_148, %c0_149] : memref<2x16x128xf32, #tpu.memory_space<vmem>>, vector<1x1x64xf32>
    %364 = vector.shape_cast %363 : vector<1x1x64xf32> to vector<1x64xf32>
    %365 = vector.broadcast %364 : vector<1x64xf32> to vector<16x64xf32>
    %366 = arith.addf %362, %365 : vector<16x64xf32>
    %cst_150 = arith.constant 0.000000e+00 : f32
    %367 = vector.broadcast %cst_150 : f32 to vector<16x64xf32>
    %368 = arith.maximumf %366, %367 : vector<16x64xf32>
    %c1_151 = arith.constant 1 : index
    %c0_152 = arith.constant 0 : index
    %c0_153 = arith.constant 0 : index
    %369 = vector.load %arg4[%c1_151, %c0_152, %c0_153] : memref<2x64x32xf32, #tpu.memory_space<vmem>>, vector<1x64x32xf32>
    %370 = vector.shape_cast %369 : vector<1x64x32xf32> to vector<64x32xf32>
    %cst_154 = arith.constant dense<0.000000e+00> : vector<16x32xf32>
    %371 = tpu.matmul %368, %370, %cst_154 {dimension_numbers = #tpu.dot_dimension_numbers<[1], [0], [0], [1], [0, 0, 1, 1], [], []>} : vector<16x64xf32>, vector<64x32xf32>, vector<16x32xf32> -> vector<16x32xf32>
    %c1_155 = arith.constant 1 : index
    %c6_156 = arith.constant 6 : index
    %c0_157 = arith.constant 0 : index
    %372 = vector.load %arg5[%c1_155, %c6_156, %c0_157] : memref<2x16x128xf32, #tpu.memory_space<vmem>>, vector<1x1x32xf32>
    %373 = vector.shape_cast %372 : vector<1x1x32xf32> to vector<1x32xf32>
    %374 = vector.broadcast %373 : vector<1x32xf32> to vector<16x32xf32>
    %375 = arith.addf %371, %374 : vector<16x32xf32>
    %376 = arith.addf %359, %375 : vector<16x32xf32>
    %c1_158 = arith.constant 1 : index
    %c11_159 = arith.constant 11 : index
    %c0_160 = arith.constant 0 : index
    %377 = vector.load %arg5[%c1_158, %c11_159, %c0_160] : memref<2x16x128xf32, #tpu.memory_space<vmem>>, vector<1x1x32xf32>
    %378 = vector.shape_cast %377 : vector<1x1x32xf32> to vector<1x32xf32>
    %c1_161 = arith.constant 1 : index
    %c12_162 = arith.constant 12 : index
    %c0_163 = arith.constant 0 : index
    %379 = vector.load %arg5[%c1_161, %c12_162, %c0_163] : memref<2x16x128xf32, #tpu.memory_space<vmem>>, vector<1x1x32xf32>
    %380 = vector.shape_cast %379 : vector<1x1x32xf32> to vector<1x32xf32>
    %cst_164 = arith.constant dense<0.000000e+00> : vector<16xf32>
    %381 = vector.multi_reduction <add>, %376, %cst_164 [1] : vector<16x32xf32> to vector<16xf32>
    %382 = vector.shape_cast %381 : vector<16xf32> to vector<16x1xf32>
    %cst_165 = arith.constant 3.200000e+01 : f32
    %383 = vector.broadcast %cst_165 : f32 to vector<16x1xf32>
    %384 = arith.divf %382, %383 : vector<16x1xf32>
    %385 = vector.broadcast %384 : vector<16x1xf32> to vector<16x32xf32>
    %386 = arith.subf %376, %385 : vector<16x32xf32>
    %387 = arith.mulf %386, %386 : vector<16x32xf32>
    %cst_166 = arith.constant dense<0.000000e+00> : vector<16xf32>
    %388 = vector.multi_reduction <add>, %387, %cst_166 [1] : vector<16x32xf32> to vector<16xf32>
    %389 = vector.shape_cast %388 : vector<16xf32> to vector<16x1xf32>
    %cst_167 = arith.constant 3.200000e+01 : f32
    %390 = vector.broadcast %cst_167 : f32 to vector<16x1xf32>
    %391 = arith.divf %389, %390 : vector<16x1xf32>
    %392 = vector.broadcast %384 : vector<16x1xf32> to vector<16x32xf32>
    %393 = arith.subf %376, %392 : vector<16x32xf32>
    %cst_168 = arith.constant 9.99999974E-6 : f32
    %394 = vector.broadcast %cst_168 : f32 to vector<16x1xf32>
    %395 = arith.addf %391, %394 : vector<16x1xf32>
    %396 = math.rsqrt %395 : vector<16x1xf32>
    %397 = vector.broadcast %396 : vector<16x1xf32> to vector<16x32xf32>
    %398 = arith.mulf %393, %397 : vector<16x32xf32>
    %399 = vector.broadcast %378 : vector<1x32xf32> to vector<16x32xf32>
    %400 = arith.mulf %398, %399 : vector<16x32xf32>
    %401 = vector.broadcast %380 : vector<1x32xf32> to vector<16x32xf32>
    %402 = arith.addf %400, %401 : vector<16x32xf32>
    %c0_169 = arith.constant 0 : index
    %c0_170 = arith.constant 0 : index
    %403 = vector.load %arg6[%c0_169, %c0_170] : memref<2x128xf32, #tpu.memory_space<vmem>>, vector<1x32xf32>
    %c1_171 = arith.constant 1 : index
    %c0_172 = arith.constant 0 : index
    %404 = vector.load %arg6[%c1_171, %c0_172] : memref<2x128xf32, #tpu.memory_space<vmem>>, vector<1x32xf32>
    %cst_173 = arith.constant dense<0.000000e+00> : vector<16xf32>
    %405 = vector.multi_reduction <add>, %402, %cst_173 [1] : vector<16x32xf32> to vector<16xf32>
    %406 = vector.shape_cast %405 : vector<16xf32> to vector<16x1xf32>
    %cst_174 = arith.constant 3.200000e+01 : f32
    %407 = vector.broadcast %cst_174 : f32 to vector<16x1xf32>
    %408 = arith.divf %406, %407 : vector<16x1xf32>
    %409 = vector.broadcast %408 : vector<16x1xf32> to vector<16x32xf32>
    %410 = arith.subf %402, %409 : vector<16x32xf32>
    %411 = arith.mulf %410, %410 : vector<16x32xf32>
    %cst_175 = arith.constant dense<0.000000e+00> : vector<16xf32>
    %412 = vector.multi_reduction <add>, %411, %cst_175 [1] : vector<16x32xf32> to vector<16xf32>
    %413 = vector.shape_cast %412 : vector<16xf32> to vector<16x1xf32>
    %cst_176 = arith.constant 3.200000e+01 : f32
    %414 = vector.broadcast %cst_176 : f32 to vector<16x1xf32>
    %415 = arith.divf %413, %414 : vector<16x1xf32>
    %416 = vector.broadcast %408 : vector<16x1xf32> to vector<16x32xf32>
    %417 = arith.subf %402, %416 : vector<16x32xf32>
    %cst_177 = arith.constant 9.99999974E-6 : f32
    %418 = vector.broadcast %cst_177 : f32 to vector<16x1xf32>
    %419 = arith.addf %415, %418 : vector<16x1xf32>
    %420 = math.rsqrt %419 : vector<16x1xf32>
    %421 = vector.broadcast %420 : vector<16x1xf32> to vector<16x32xf32>
    %422 = arith.mulf %417, %421 : vector<16x32xf32>
    %423 = vector.broadcast %403 : vector<1x32xf32> to vector<16x32xf32>
    %424 = arith.mulf %422, %423 : vector<16x32xf32>
    %425 = vector.broadcast %404 : vector<1x32xf32> to vector<16x32xf32>
    %426 = arith.addf %424, %425 : vector<16x32xf32>
    %c0_178 = arith.constant 0 : index
    %c0_179 = arith.constant 0 : index
    %427 = vector.load %arg7[%c0_178, %c0_179] : memref<16x32xf32, #tpu.memory_space<vmem>>, vector<16x32xf32>
    tpu.vector_store %arg7[%c0_178, %c0_179], %426 {strides = array<i32>} : memref<16x32xf32, #tpu.memory_space<vmem>>, vector<16x32xf32>,
    return
  }
}

</mosaic_0001>

<bundles_post_ra>
// kernel: tpu_custom_call.1
= control target key start
LH: loop header
LB: loop body
LE: loop exit
PB: predicated region body
PF: predicated region fallthrough
CT: control target
= control target key end

     0   :  { %12 = vsyncpa [#allocation3], 0  ;;  %s5854_s0 = inlined_call_operand.hbm [shape: f32[32,32], index: 0, kind: input, shape index: {}]   ;;  %s5855_s1 = inlined_call_operand.hbm [shape: f32[16,32], index: 1, kind: input, shape index: {}]   ;;  %s5856_s2 = inlined_call_operand.hbm [shape: f32[32,32], index: 2, kind: input, shape index: {}]   ;;  %s5857_s3 = inlined_call_operand.vmem [shape: f32[2,32,320], index: 3, kind: input, shape index: {}]   ;;  %s5858_s4 = inlined_call_operand.vmem [shape: f32[2,64,32], index: 4, kind: input, shape index: {}]   ;;  %s5859_s5 = inlined_call_operand.hbm [shape: f32[2,16,128], index: 5, kind: input, shape index: {}]   ;;  %s5860_s6 = inlined_call_operand.vmem [shape: f32[2,128], index: 6, kind: input, shape index: {}]   ;;  %s5861_s7 = inlined_call_operand.hbm [shape: f32[16,32], index: 7, kind: output, shape index: {}]  }
   0x1   :  { %13 = vsyncpa [#allocation6], 0 }
   0x2   :  { %14 = vsyncpa [#allocation9], 0 }
   0x3   :  { %15 = vsyncpa [#allocation4], 0  ;;  %s5073_s24 = smov [#allocation5]   ;;  %s5074_s26 = smov [#allocation2]  }
   0x4   :  { %s33_s25 = sshll.u32 %s5073_s24, 4  ;;  %s21_s27 = sshll.u32 %s5074_s26, 4  ;;  %s34_s25 = int_to_ptr.vmem [resolvable:$true] %s33_s25  ;;  %s5123_s27 = int_to_ptr.vmem [resolvable:$true] %s21_s27 }
   0x5   :  { %s4955_s30 = scalar_lea.hbm %s5855_s1, 256 }
   0x6   :  { %p4956_p0 = scmp.ne.s32.totalorder %s5855_s1, %s4955_s30  ;;  %p4959_p1 = scmp.lt.u32.totalorder %s4955_s30, %s5855_s1 }
   0x8   :  { %p4961_p2 = pnand %p4959_p1, %p4956_p0 }
   0xa   :  { %4964 = shalt.err (!%p4961_p2)
}
   0xb   :  { %s4965_s12 = scalar_lea.vmem %s34_s25, 256  ;;  %p4970_p4 = scmp.lt.s32.totalorder %s34_s25, %s34_s25 }
   0xc   :  { %p4966_p3 = scmp.ne.s32.totalorder %s34_s25, %s4965_s12  ;;  %p4971_p5 = scmp.lt.s32.totalorder %s4965_s12, %s4965_s12 }
   0xe   :  { %p4972_p6 = por %p4971_p5, %p4970_p4 }
  0x10   :  { %p4973_p7 = pnand %p4972_p6, %p4966_p3 }
  0x12   :  { %4976 = shalt.err (!%p4973_p7)
}
  0x13   :  { %s5075_s13 = smov 128   ;;  %s5076_s14 = smov 8  }
  0x14   :  { %39 = dma.hbm_to_vmem [thread:$0]  %s5855_s1, 256, %s34_s25, [#allocation6], %s5075_s13, %s5075_s13, %s5076_s14  }
  0x15   :  { %s4977_s19 = scalar_lea.hbm %s5854_s0, 512 }
  0x16   :  { %p4978_p8 = scmp.ne.s32.totalorder %s5854_s0, %s4977_s19  ;;  %p4981_p9 = scmp.lt.u32.totalorder %s4977_s19, %s5854_s0 }
  0x18   :  { %p4983_p10 = pnand %p4981_p9, %p4978_p8 }
  0x1a   :  { %4986 = shalt.err (!%p4983_p10)
}
  0x1b   :  { %s4987_s24 = scalar_lea.vmem %s5123_s27, 512  ;;  %p4992_p12 = scmp.lt.s32.totalorder %s5123_s27, %s5123_s27 }
  0x1c   :  { %p4988_p11 = scmp.ne.s32.totalorder %s5123_s27, %s4987_s24  ;;  %p4993_p13 = scmp.lt.s32.totalorder %s4987_s24, %s4987_s24 }
  0x1e   :  { %p4994_p0 = por %p4993_p13, %p4992_p12 }
  0x20   :  { %p4995_p1 = pnand %p4994_p0, %p4988_p11 }
  0x22   :  { %4998 = shalt.err (!%p4995_p1)
}
  0x23   :  { %27 = dma.hbm_to_vmem [thread:$0]  %s5854_s0, 512, %s5123_s27, [#allocation3], %s5075_s13, %s5075_s13, %s5076_s14  }
  0x24   :  { %s5077_s26 = smov [#allocation7]   ;;  %s5078_s29 = smov [#allocation8]  }
  0x25   :  { %s45_s28 = sshll.u32 %s5077_s26, 4  ;;  %s61_s30 = sshll.u32 %s5078_s29, 4  ;;  %s46_s28 = int_to_ptr.vmem [resolvable:$true] %s45_s28  ;;  %s5160_s30 = int_to_ptr.vmem [resolvable:$true] %s61_s30 }
  0x26   :  { %s4999_s10 = scalar_lea.hbm %s5856_s2, 512 }
  0x27   :  { %p5000_p2 = scmp.ne.s32.totalorder %s5856_s2, %s4999_s10  ;;  %p5003_p3 = scmp.lt.u32.totalorder %s4999_s10, %s5856_s2 }
  0x29   :  { %p5005_p4 = pnand %p5003_p3, %p5000_p2 }
  0x2b   :  { %5008 = shalt.err (!%p5005_p4)
}
  0x2c   :  { %s5009_s0 = scalar_lea.vmem %s46_s28, 512  ;;  %p5014_p6 = scmp.lt.s32.totalorder %s46_s28, %s46_s28 }
  0x2d   :  { %p5010_p5 = scmp.ne.s32.totalorder %s46_s28, %s5009_s0  ;;  %p5015_p7 = scmp.lt.s32.totalorder %s5009_s0, %s5009_s0 }
  0x2f   :  { %p5016_p8 = por %p5015_p7, %p5014_p6 }
  0x31   :  { %p5017_p9 = pnand %p5016_p8, %p5010_p5 }
  0x33   :  { %5020 = shalt.err (!%p5017_p9)
}
  0x34   :  { %51 = dma.hbm_to_vmem [thread:$0]  %s5856_s2, 512, %s46_s28, [#allocation6], %s5075_s13, %s5075_s13, %s5076_s14  }
  0x35   :  { %s5021_s20 = scalar_lea.hbm %s5859_s5, 512 }
  0x36   :  { %p5022_p10 = scmp.ne.s32.totalorder %s5859_s5, %s5021_s20  ;;  %p5025_p11 = scmp.lt.u32.totalorder %s5021_s20, %s5859_s5 }
  0x38   :  { %p5027_p12 = pnand %p5025_p11, %p5022_p10 }
  0x3a   :  { %5030 = shalt.err (!%p5027_p12)
}
  0x3b   :  { %s5031_s1 = scalar_lea.vmem %s5160_s30, 512  ;;  %p5036_p0 = scmp.lt.s32.totalorder %s5160_s30, %s5160_s30 }
  0x3c   :  { %p5032_p13 = scmp.ne.s32.totalorder %s5160_s30, %s5031_s1  ;;  %p5037_p1 = scmp.lt.s32.totalorder %s5031_s1, %s5031_s1 }
  0x3e   :  { %p5038_p2 = por %p5037_p1, %p5036_p0 }
  0x40   :  { %p5039_p3 = pnand %p5038_p2, %p5032_p13 }
  0x42   :  { %5042 = shalt.err (!%p5039_p3)
}
  0x43   :  { %67 = dma.hbm_to_vmem [thread:$0]  %s5859_s5, 512, %s5160_s30, [#allocation9], %s5075_s13, %s5075_s13, %s5076_s14  }
  0x44   :  { %5065 = dma.done.wait [#allocation3], 512  }
  0x45   :  { %5066 = vsyncadd [#allocation3], 4294966784 }
  0x46   :  { %5067 = dma.done.wait [#allocation6], 768  }
  0x47   :  { %5068 = vsyncadd [#allocation6], 4294966528 }
  0x48   :  { %5069 = dma.done.wait [#allocation9], 512  }
  0x49   :  { %5070 = vsyncadd [#allocation9], 4294966784  ;;  %vm101_vm0 = vcmask 261120   ;;  %v5200_v0 = vld [vmem:[%s5857_s3] sm:$0xff]  ;;  %v5205_v1 = vld [vmem:[%s5857_s3 + $0x18] sm:$0xff]  ;;  %s5079_s11 = smov 96  }
  0x4a   :  { %v5210_v2 = vld [vmem:[%s5857_s3 + $0x30] sm:$0xff]  ;;  %v4533_v3 = vpack.c.bf16 %v5205_v1, %v5200_v0  ;;  %v5217_v4 = vld [vmem:[%s5857_s3 + $0x48] sm:$0xff]  ;;  %v5219_v5 = vld [vmem:[#allocation5] sm:$0xff]  ;;  %vm395_vm1 = vcmask 64512   ;;  %s5080_s12 = smov 64   ;;  %s5081_s15 = smov 32  }
  0x4b   :  { %v4537_v6 = vpack.c.bf16 %v5217_v4, %v5210_v2  ;;  %4221 = vmatprep.mubr.msk.f32.mxu1 %vm101_vm0, %v5219_v5  ;;  %v5225_v7 = vld [vmem:[#allocation5 + $0x8] sm:$0xff]  ;;  %v3865_v8 = vld [vmem:[#allocation8] ss:$0 sm:$0xff]  ;;  %v5229_v10 = vld [vmem:[#allocation2] sm:$0xff]  ;;  %vm1269_vm3 = vcmask 130048   ;;  %vm1831_vm4 = vcmask 523264  }
  0x4c   :  { %4534 = vmatprep.subr.bf16.mxu1 %v4533_v3  ;;  %v5245_v17 = vld [vmem:[#allocation2 + $0x8] sm:$0xff]  ;;  %v5248_v18 = vld [vmem:[#allocation2 + $0x10] sm:$0xff]  ;;  %v5255_v22 = vld [vmem:[#allocation2 + $0x18] sm:$0xff] }
  0x4d   :  { %4536 = vmatpush3.bf16.msra.mxu1 %v4533_v3  ;;  %vm5369_vm2 = vmpackc.low %vm101_vm0, %vm101_vm0 }
  0x4e   :  { %4538 = vmatprep.subr.bf16.mxu1 %v4537_v6 }
  0x51   :  { %4540 = vmatpush3.bf16.msra.mxu1 %v4537_v6 }
  0x54   :  { %4222 = vmatmul.mubr.msk.f32.vlgmr.msra.gmra.mrb[0].mxu1 %vm101_vm0, %v5225_v7 }
 0x127   :  { %v4223_v9 = vpop.f32.mrb[0].mxu1 }
 0x128   :  { %v5231_v11 = vadd.f32 %v4223_v9, %v3865_v8  ;;  %v174_v12 = vpop.f32.mrb[1].mxu1 }
 0x129   :  { %v5233_v13 = vadd.f32 %v3865_v8, %v174_v12 }
 0x12a   :  { %v187_v14 = vmul.f32 %v5231_v11, %v5229_v10  ;;  %v188_v24 = vmul.f32 %v5231_v11, %v5245_v17  ;;  %v189_v25 = vmul.f32 %v5231_v11, %v5248_v18  ;;  %v190_v26 = vmul.f32 %v5231_v11, %v5255_v22 }
 0x12b   :  { %192 = vrot.lane.b32.xlu0 %v5233_v13, %s5079_s11  ;;  %v183_v15 = vmul.f32 %v5233_v13, %v5229_v10  ;;  %v184_v19 = vmul.f32 %v5233_v13, %v5245_v17  ;;  %v185_v21 = vmul.f32 %v5233_v13, %v5248_v18  ;;  %v186_v23 = vmul.f32 %v5233_v13, %v5255_v22 }
 0x12c   :  { %4234 = vmatprep.mubr.msk.f32.mxu0 %vm101_vm0, %v187_v14 }
 0x12d   :  { %4226 = vmatprep.mubr.msk.f32.mxu1 %vm101_vm0, %v183_v15 }
 0x12f   :  { %294 = vrot.lane.b32.xlu0 %v5231_v11, %s5079_s11 }
 0x19d   :  { %v193_v16 = vpop.permute.xlu0 %192 }
 0x19e   :  { %4224 = vmatprep.subr.msk.mxu1 %vm101_vm0, %v193_v16 }
 0x19f   :  { %4225 = vmatpush3.xpose.msk.msra.mxu1 %vm101_vm0, %v193_v16 }
 0x1a1   :  { %v295_v20 = vpop.permute.xlu0 %294 }
 0x1a2   :  { %4227 = vmatmul.mubr.msk.f32.vlgmr.msra.gmra.mrb[2].mxu1 %vm101_vm0, %v184_v19  ;;  %4232 = vmatprep.subr.msk.mxu0 %vm101_vm0, %v295_v20 }
 0x1a3   :  { %4229 = vmatprep.mubr.msk.f32.mxu1 %vm101_vm0, %v185_v21  ;;  %4233 = vmatpush3.xpose.msk.msra.mxu0 %vm101_vm0, %v295_v20 }
 0x1a6   :  { %4230 = vmatmul.mubr.msk.f32.gmra.mrb[4].mxu1 %vm101_vm0, %v186_v23  ;;  %4235 = vmatmul.mubr.msk.f32.vlgmr.msra.gmra.mrb[0].mxu0 %vm101_vm0, %v188_v24 }
 0x1a7   :  { %4237 = vmatprep.mubr.msk.f32.mxu0 %vm101_vm0, %v189_v25 }
 0x1aa   :  { %4238 = vmatmul.mubr.msk.f32.gmra.mrb[2].mxu0 %vm101_vm0, %v190_v26 }
 0x275   :  { %v4228_v27 = vpop.f32.mrb[2].mxu1 }
 0x276   :  { %v274_v28 = vpop.f32.mrb[3].mxu1  ;;  %v399_v29 = vsel %vm395_vm1, %v4228_v27, -inf }
 0x277   :  { %400 = vmax.xlane.f32.xlu1 %v399_v29  ;;  %v396_v38 = vsel %vm395_vm1, %v274_v28, -inf }
 0x279   :  { %v4231_v30 = vpop.f32.mrb[4].mxu1  ;;  %v4236_v31 = vpop.f32.mrb[0].mxu0 }
 0x27a   :  { %v284_v32 = vpop.f32.mrb[5].mxu1  ;;  %v376_v33 = vpop.f32.mrb[1].mxu0  ;;  %v411_v34 = vsel %vm395_vm1, %v4236_v31, -inf  ;;  %v405_v39 = vsel %vm395_vm1, %v4231_v30, -inf }
 0x27b   :  { %412 = vmax.xlane.f32.xlu1 %v411_v34  ;;  %v408_v35 = vsel %vm395_vm1, %v376_v33, -inf  ;;  %v402_v41 = vsel %vm395_vm1, %v284_v32, -inf }
 0x27c   :  { %409 = vmax.xlane.f32.xlu0 %v408_v35 }
 0x27d   :  { %v4239_v36 = vpop.f32.mrb[2].mxu0 }
 0x27e   :  { %v386_v37 = vpop.f32.mrb[3].mxu0  ;;  %v417_v42 = vsel %vm395_vm1, %v4239_v36, -inf }
 0x27f   :  { %397 = vmax.xlane.f32.xlu1 %v396_v38  ;;  %v414_v40 = vsel %vm395_vm1, %v386_v37, -inf }
 0x283   :  { %406 = vmax.xlane.f32.xlu1 %v405_v39 }
 0x287   :  { %415 = vmax.xlane.f32.xlu1 %v414_v40 }
 0x28b   :  { %403 = vmax.xlane.f32.xlu1 %v402_v41 }
 0x28f   :  { %418 = vmax.xlane.f32.xlu1 %v417_v42 }
 0x304   :  { %v401_v43 = vpop.xlane.xlu1 %400 }
 0x305   :  { %v421_v44 = vsub.f32 %v4228_v27, %v401_v43 }
 0x307   :  { %v430_v45 = vmul.f32 1.442695, %v421_v44 }
 0x308   :  { %v413_v46 = vpop.xlane.xlu1 %412 }
 0x309   :  { %4791 = vpow2.f32 %v430_v45  ;;  %v425_v47 = vsub.f32 %v4236_v31, %v413_v46  ;;  %v410_v48 = vpop.xlane.xlu0 %409  ;;  %v4711_v31 = vpack.i.bf16 %v5205_v1, %v5200_v0 }
 0x30a   :  { %v424_v49 = vsub.f32 %v376_v33, %v410_v48 }
 0x30b   :  { %v438_v50 = vmul.f32 1.442695, %v425_v47 }
 0x30c   :  { %v436_v51 = vmul.f32 1.442695, %v424_v49  ;;  %v398_v52 = vpop.xlane.xlu1 %397 }
 0x30d   :  { %4793 = vpow2.f32 %v438_v50  ;;  %v420_v53 = vsub.f32 %v274_v28, %v398_v52 }
 0x30e   :  { %4795 = vpow2.f32 %v436_v51 }
 0x30f   :  { %v428_v54 = vmul.f32 1.442695, %v420_v53 }
 0x310   :  { %v407_v55 = vpop.xlane.xlu1 %406 }
 0x311   :  { %4797 = vpow2.f32 %v428_v54  ;;  %v423_v12 = vsub.f32 %v4231_v30, %v407_v55 }
 0x313   :  { %v5281_v56 = vpop.eup %4791  ;;  %v434_v20 = vmul.f32 1.442695, %v423_v12 }
 0x314   :  { %v416_v57 = vpop.xlane.xlu1 %415  ;;  %v447_v58 = vsel %vm395_vm1, %v5281_v56, 0.0 }
 0x315   :  { %v426_v59 = vsub.f32 %v386_v37, %v416_v57  ;;  %448 = vadd.xlane.f32.xlu1 %v447_v58 }
 0x317   :  { %v5285_v60 = vpop.eup %4793  ;;  %v440_v61 = vmul.f32 1.442695, %v426_v59 }
 0x318   :  { %v4796_v62 = vpop.eup %4795  ;;  %v404_v63 = vpop.xlane.xlu1 %403  ;;  %v459_v3 = vsel %vm395_vm1, %v5285_v60, 0.0 }
 0x319   :  { %4799 = vpow2.f32 %v440_v61  ;;  %v422_v6 = vsub.f32 %v284_v32, %v404_v63  ;;  %460 = vadd.xlane.f32.xlu0 %v459_v3  ;;  %v456_v8 = vsel %vm395_vm1, %v4796_v62, 0.0  ;;  %v4716_v32 = vpack.i.bf16 %v5217_v4, %v5210_v2 }
 0x31a   :  { %457 = vadd.xlane.f32.xlu1 %v456_v8 }
 0x31b   :  { %v4798_v9 = vpop.eup %4797  ;;  %v432_v14 = vmul.f32 1.442695, %v422_v6 }
 0x31c   :  { %v419_v15 = vpop.xlane.xlu1 %418  ;;  %v444_v16 = vsel %vm395_vm1, %v4798_v9, 0.0 }
 0x31d   :  { %4801 = vpow2.f32 %v432_v14  ;;  %v427_v19 = vsub.f32 %v4239_v36, %v419_v15 }
 0x31e   :  { %445 = vadd.xlane.f32.xlu1 %v444_v16 }
 0x31f   :  { %v442_v21 = vmul.f32 1.442695, %v427_v19 }
 0x321   :  { %4803 = vpow2.f32 %v442_v21 }
 0x322   :  { %4805 = vpow2.f32 %v434_v20 }
 0x323   :  { %v4800_v23 = vpop.eup %4799 }
 0x324   :  { %v462_v24 = vsel %vm395_vm1, %v4800_v23, 0.0 }
 0x325   :  { %463 = vadd.xlane.f32.xlu1 %v462_v24 }
 0x327   :  { %v4802_v25 = vpop.eup %4801 }
 0x328   :  { %v450_v26 = vsel %vm395_vm1, %v4802_v25, 0.0 }
 0x329   :  { %451 = vadd.xlane.f32.xlu1 %v450_v26 }
 0x32b   :  { %v4804_v27 = vpop.eup %4803 }
 0x32c   :  { %v465_v28 = vsel %vm395_vm1, %v4804_v27, 0.0  ;;  %v4806_v29 = vpop.eup %4805 }
 0x32d   :  { %466 = vadd.xlane.f32.xlu0 %v465_v28  ;;  %v453_v30 = vsel %vm395_vm1, %v4806_v29, 0.0 }
 0x331   :  { %454 = vadd.xlane.f32.xlu0 %v453_v30 }
 0x33a   :  { %484 = vrot.lane.b32.xlu1 %v5233_v13, %s5080_s12 }
 0x33e   :  { %4712 = vrot.lane.b32.xlu1 %v4711_v31, %s5081_s15  ;;  %v3886_v31 = vld [vmem:[#allocation8 + $0x1] ss:$0 sm:$0xff] }
 0x342   :  { %4717 = vrot.lane.b32.xlu1 %v4716_v32, %s5081_s15 }
 0x347   :  { %584 = vrot.lane.b32.xlu0 %v5231_v11, %s5080_s12 }
 0x3a2   :  { %v449_v33 = vpop.xlane.xlu1 %448 }
 0x3a6   :  { %v461_v36 = vpop.xlane.xlu0 %460 }
 0x3a7   :  { %v458_v34 = vpop.xlane.xlu1 %457 }
 0x3a8   :  { %4807 = vrcp.f32 %v458_v34 }
 0x3ab   :  { %v446_v35 = vpop.xlane.xlu1 %445 }
 0x3ac   :  { %4809 = vrcp.f32 %v446_v35 }
 0x3ad   :  { %4811 = vrcp.f32 %v449_v33 }
 0x3ae   :  { %4813 = vrcp.f32 %v461_v36 }
 0x3b2   :  { %v4808_v13 = vpop.eup %4807  ;;  %v464_v11 = vpop.xlane.xlu1 %463 }
 0x3b3   :  { %v480_v37 = vmul.f32 %v4808_v13, %v4796_v62  ;;  %4815 = vrcp.f32 %v464_v11 }
 0x3b5   :  { %4250 = vmatprep.mubr.msk.f32.mxu0 %vm395_vm1, %v480_v37 }
 0x3b6   :  { %v4810_v0 = vpop.eup %4809  ;;  %v452_v1 = vpop.xlane.xlu1 %451 }
 0x3b7   :  { %4817 = vrcp.f32 %v452_v1  ;;  %v476_v2 = vmul.f32 %v4810_v0, %v4798_v9  ;;  %v4812_v4 = vpop.eup %4811  ;;  %v847_v0 = vld [vmem:[%s5857_s3 + $0x8] sm:$0xff]  ;;  %v848_v1 = vld [vmem:[%s5857_s3 + $0x20] sm:$0xff] }
 0x3b8   :  { %v477_v40 = vmul.f32 %v4812_v4, %v5281_v56  ;;  %v4814_v42 = vpop.eup %4813 }
 0x3b9   :  { %4242 = vmatprep.mubr.msk.f32.mxu1 %vm395_vm1, %v476_v2  ;;  %v481_v47 = vmul.f32 %v4814_v42, %v5285_v60  ;;  %v5335_v2 = vpack.i.bf16 %v848_v1, %v847_v0 }
 0x3ba   :  { %v467_v38 = vpop.xlane.xlu0 %466  ;;  %v485_v39 = vpop.permute.xlu1 %484 }
 0x3bb   :  { %4819 = vrcp.f32 %v467_v38  ;;  %4240 = vmatprep.subr.mxu1 %v485_v39 }
 0x3bc   :  { %4241 = vmatpush3.msra.mxu1 %v485_v39 }
 0x3bd   :  { %4243 = vmatmul.mubr.msk.f32.vlgmr.msra.gmra.mrb[6].mxu1 %vm395_vm1, %v477_v40  ;;  %v4816_v43 = vpop.eup %4815 }
 0x3be   :  { %v455_v41 = vpop.xlane.xlu0 %454  ;;  %v482_v48 = vmul.f32 %v4816_v43, %v4800_v23  ;;  %v4713_v53 = vpop.permute.xlu1 %4712 }
 0x3bf   :  { %4821 = vrcp.f32 %v455_v41  ;;  %v4715_v54 = vunpack.i.h.bf16 %v4713_v53  ;;  %v4714_v55 = vunpack.i.l.bf16 %v4713_v53  ;;  %v4549_v53 = vpack.c.bf16 %v848_v1, %v847_v0  ;;  %v3891_v0 = vld [vmem:[#allocation8 + $0x2] ss:$0 sm:$0xff] }
 0x3c1   :  { %v4818_v44 = vpop.eup %4817  ;;  %v4541_v56 = vpack.c.bf16 %v4715_v54, %v4714_v55 }
 0x3c2   :  { %v585_v45 = vpop.permute.xlu0 %584  ;;  %v478_v46 = vmul.f32 %v4818_v44, %v4802_v25  ;;  %v4718_v57 = vpop.permute.xlu1 %4717 }
 0x3c3   :  { %4248 = vmatprep.subr.mxu0 %v585_v45  ;;  %v4720_v58 = vunpack.i.h.bf16 %v4718_v57  ;;  %v4719_v59 = vunpack.i.l.bf16 %v4718_v57  ;;  %4542 = vmatprep.subr.bf16.mxu1 %v4541_v56 }
 0x3c4   :  { %4245 = vmatprep.mubr.msk.f32.mxu1 %vm395_vm1, %v478_v46  ;;  %4249 = vmatpush3.msra.mxu0 %v585_v45 }
 0x3c5   :  { %v4820_v49 = vpop.eup %4819  ;;  %4251 = vmatmul.mubr.msk.f32.vlgmr.msra.gmra.mrb[4].mxu0 %vm395_vm1, %v481_v47  ;;  %4544 = vmatpush3.bf16.msra.mxu1 %v4541_v56  ;;  %v4545_v60 = vpack.c.bf16 %v4720_v58, %v4719_v59 }
 0x3c6   :  { %4253 = vmatprep.mubr.msk.f32.mxu0 %vm395_vm1, %v482_v48  ;;  %v483_v50 = vmul.f32 %v4820_v49, %v4804_v27  ;;  %v849_v48 = vld [vmem:[%s5857_s3 + $0x38] sm:$0xff]  ;;  %v850_v49 = vld [vmem:[%s5857_s3 + $0x50] sm:$0xff]  ;;  %4550 = vmatprep.subr.bf16.mxu0 %v4549_v53 }
 0x3c7   :  { %4546 = vmatprep.subr.bf16.mxu1 %v4545_v60  ;;  %4552 = vmatpush3.bf16.msra.mxu0 %v4549_v53  ;;  %v4553_v54 = vpack.c.bf16 %v850_v49, %v849_v48 }
 0x3c9   :  { %v4822_v51 = vpop.eup %4821  ;;  %4254 = vmatmul.mubr.msk.f32.gmra.mrb[6].mxu0 %vm395_vm1, %v483_v50  ;;  %4548 = vmatpush3.bf16.msra.mxu1 %v4545_v60 }
 0x3ca   :  { %v479_v52 = vmul.f32 %v4822_v51, %v4806_v29  ;;  %v5347_v51 = vpack.i.bf16 %v850_v49, %v849_v48  ;;  %4554 = vmatprep.subr.bf16.mxu0 %v4553_v54 }
 0x3cb   :  { %4556 = vmatpush3.bf16.msra.mxu0 %v4553_v54 }
 0x3cc   :  { %4246 = vmatmul.mubr.msk.f32.gmra.mrb[8].mxu1 %vm395_vm1, %v479_v52  ;;  %v84_v52 = vld [vmem:[#allocation7] sm:$0xff] }
 0x490   :  { %v4244_v61 = vpop.f32.mrb[6].mxu1 }
 0x491   :  { %v685_v62 = vmul.f32 %v4244_v61, %v5245_v17  ;;  %v565_v63 = vpop.f32.mrb[7].mxu1 }
 0x492   :  { %v684_v3 = vmul.f32 %v565_v63, %v5229_v10 }
 0x494   :  { %v692_v6 = vadd.f32 %v685_v62, %v684_v3 }
 0x498   :  { %v4252_v8 = vpop.f32.mrb[4].mxu0 }
 0x499   :  { %v689_v9 = vmul.f32 %v4252_v8, %v5245_v17  ;;  %v665_v12 = vpop.f32.mrb[5].mxu0 }
 0x49a   :  { %v688_v14 = vmul.f32 %v665_v12, %v5229_v10 }
 0x49c   :  { %v693_v15 = vadd.f32 %v689_v9, %v688_v14  ;;  %v4255_v16 = vpop.f32.mrb[6].mxu0  ;;  %v86_v9 = vld [vmem:[#allocation7 + $0x10] sm:$0xff]  ;;  %v87_v14 = vld [vmem:[#allocation7 + $0x18] sm:$0xff] }
 0x49d   :  { %v675_v19 = vpop.f32.mrb[7].mxu0  ;;  %v691_v23 = vmul.f32 %v4255_v16, %v5255_v22 }
 0x49e   :  { %v690_v20 = vmul.f32 %v675_v19, %v5248_v18 }
 0x49f   :  { %v4247_v21 = vpop.f32.mrb[8].mxu1 }
 0x4a0   :  { %v695_v24 = vadd.f32 %v693_v15, %v690_v20  ;;  %v575_v25 = vpop.f32.mrb[9].mxu1  ;;  %v687_v28 = vmul.f32 %v4247_v21, %v5255_v22  ;;  %v3889_v15 = vld [vmem:[#allocation8 + $0x7] ss:$0 sm:$0xff]  ;;  %v3890_v21 = vld [vmem:[#allocation8 + $0x8] ss:$0 sm:$0xff] }
 0x4a1   :  { %v686_v26 = vmul.f32 %v575_v25, %v5248_v18 }
 0x4a2   :  { %v697_v27 = vadd.f32 %v695_v24, %v691_v23 }
 0x4a3   :  { %v694_v29 = vadd.f32 %v692_v6, %v686_v26  ;;  %v85_v6 = vld [vmem:[#allocation7 + $0x8] sm:$0xff]  ;;  %v3894_v26 = vld [vmem:[#allocation8 + $0x3] ss:$0 sm:$0xff] }
 0x4a5   :  { %v696_v30 = vadd.f32 %v694_v29, %v687_v28 }
 0x4a7   :  { %4264 = vmatprep.mubr.msk.f32.mxu1 %vm101_vm0, %v696_v30 }
 0x4a8   :  { %4265 = vmatmul.mubr.msk.f32.vlgmr.msra.gmra.mrb[10].mxu1 %vm101_vm0, %v697_v27 }
 0x4a9   :  { %4286 = vmatprep.mubr.msk.f32.mxu1 %vm101_vm0, %v84_v52 }
 0x57b   :  { %v4266_v32 = vpop.f32.mrb[10].mxu1 }
 0x57c   :  { %v801_v33 = vadd.f32 %v4266_v32, %v3886_v31  ;;  %v795_v34 = vpop.f32.mrb[11].mxu1 }
 0x57d   :  { %v796_v35 = vadd.f32 %v3886_v31, %v795_v34 }
 0x57e   :  { %v805_v13 = vadd.f32 %v801_v33, %v5225_v7 }
 0x57f   :  { %v804_v36 = vadd.f32 %v796_v35, %v5219_v5 }
 0x580   :  { %v811_v11 = vsel %vm101_vm0, %v805_v13, 0.0 }
 0x581   :  { %812 = vadd.xlane.f32.xlu1 %v811_v11  ;;  %v808_v37 = vsel %vm101_vm0, %v804_v36, 0.0 }
 0x582   :  { %809 = vadd.xlane.f32.xlu0 %v808_v37 }
 0x592   :  { %4722 = vrot.lane.b32.xlu1 %v5335_v2, %s5079_s11 }
 0x60e   :  { %v813_v5 = vpop.xlane.xlu1 %812 }
 0x60f   :  { %v816_v7 = vmul.f32 0.03125, %v813_v5  ;;  %v810_v4 = vpop.xlane.xlu0 %809 }
 0x610   :  { %v815_v38 = vmul.f32 0.03125, %v810_v4 }
 0x611   :  { %v818_v39 = vsub.f32 %v805_v13, %v816_v7 }
 0x612   :  { %v817_v40 = vsub.f32 %v804_v36, %v815_v38  ;;  %v4723_v45 = vpop.permute.xlu1 %4722 }
 0x613   :  { %v820_v41 = vmul.f32 %v818_v39, %v818_v39  ;;  %v4725_v46 = vunpack.i.h.bf16 %v4723_v45  ;;  %v4724_v47 = vunpack.i.l.bf16 %v4723_v45 }
 0x614   :  { %v819_v43 = vmul.f32 %v817_v40, %v817_v40 }
 0x615   :  { %v824_v42 = vsel %vm101_vm0, %v820_v41, 0.0  ;;  %v4557_v50 = vpack.c.bf16 %v4725_v46, %v4724_v47 }
 0x616   :  { %825 = vadd.xlane.f32.xlu0 %v824_v42  ;;  %v821_v44 = vsel %vm101_vm0, %v819_v43, 0.0 }
 0x617   :  { %4558 = vmatprep.subr.bf16.mxu1 %v4557_v50 }
 0x618   :  { %4560 = vmatpush3.bf16.msra.mxu1 %v4557_v50 }
 0x61a   :  { %822 = vadd.xlane.f32.xlu0 %v821_v44 }
 0x630   :  { %4727 = vrot.lane.b32.xlu0 %v5347_v51, %s5079_s11 }
 0x6a3   :  { %v826_v55 = vpop.xlane.xlu0 %825 }
 0x6a4   :  { %v828_v56 = vmul.f32 0.03125, %v826_v55 }
 0x6a6   :  { %v830_v57 = vadd.f32 1e-05, %v828_v56 }
 0x6a7   :  { %v823_v58 = vpop.xlane.xlu0 %822 }
 0x6a8   :  { %4823 = vrsqrt.f32 %v830_v57  ;;  %v827_v59 = vmul.f32 0.03125, %v823_v58 }
 0x6aa   :  { %v829_v60 = vadd.f32 1e-05, %v827_v59 }
 0x6ab   :  { %v4728_v61 = vpop.permute.xlu0 %4727 }
 0x6ac   :  { %4825 = vrsqrt.f32 %v829_v60  ;;  %v4730_v62 = vunpack.i.h.bf16 %v4728_v61  ;;  %v4729_v63 = vunpack.i.l.bf16 %v4728_v61 }
 0x6ae   :  { %v4561_v3 = vpack.c.bf16 %v4730_v62, %v4729_v63 }
 0x6b0   :  { %4562 = vmatprep.subr.bf16.mxu1 %v4561_v3 }
 0x6b1   :  { %4564 = vmatpush3.bf16.msra.mxu1 %v4561_v3 }
 0x6b2   :  { %v4824_v8 = vpop.eup %4823 }
 0x6b3   :  { %v834_v12 = vmul.f32 %v4824_v8, %v818_v39 }
 0x6b4   :  { %4287 = vmatmul.mubr.msk.f32.vlgmr.msra.gmra.mrb[12].mxu1 %vm101_vm0, %v85_v6 }
 0x6b5   :  { %4289 = vmatprep.mubr.msk.f32.mxu1 %vm101_vm0, %v86_v9  ;;  %v840_v20 = vmul.f32 %v3889_v15, %v834_v12 }
 0x6b6   :  { %v4826_v16 = vpop.eup %4825 }
 0x6b7   :  { %v833_v19 = vmul.f32 %v4826_v16, %v817_v40  ;;  %v5357_v25 = vadd.f32 %v3890_v21, %v840_v20 }
 0x6b8   :  { %4290 = vmatmul.mubr.msk.f32.gmra.mrb[14].mxu1 %vm101_vm0, %v87_v14 }
 0x6b9   :  { %v839_v23 = vmul.f32 %v3889_v15, %v833_v19 }
 0x6bb   :  { %v5355_v24 = vadd.f32 %v3890_v21, %v839_v23 }
 0x6bd   :  { %4275 = vmatprep.mubr.msk.f32.mxu0 %vm101_vm0, %v5355_v24 }
 0x6be   :  { %4276 = vmatmul.mubr.msk.f32.vlgmr.msra.gmra.mrb[8].mxu0 %vm101_vm0, %v5357_v25 }
 0x787   :  { %v4288_v27 = vpop.f32.mrb[12].mxu1 }
 0x788   :  { %v5363_v28 = vadd.f32 %v4288_v27, %v3894_v26  ;;  %v1036_v29 = vpop.f32.mrb[13].mxu1 }
 0x789   :  { %v5365_v30 = vadd.f32 %v3894_v26, %v1036_v29 }
 0x78b   :  { %v4731_v32 = vpack.i.bf16 %v5363_v28, %v5365_v30  ;;  %v4565_v33 = vpack.c.bf16 %v5363_v28, %v5365_v30  ;;  %v4291_v34 = vpop.f32.mrb[14].mxu1 }
 0x78c   :  { %v5377_v35 = vadd.f32 %v4291_v34, %v3894_v26  ;;  %v1046_v13 = vpop.f32.mrb[15].mxu1 }
 0x78d   :  { %v5379_v36 = vadd.f32 %v3894_v26, %v1046_v13  ;;  %4567 = vmatprep.subr.msk.bf16.mxu0 %vm5369_vm2, %v4565_v33 }
 0x78e   :  { %4570 = vmatpush3.bf16.xpose.msk.msra.mxu0 %vm5369_vm2, %v4565_v33 }
 0x78f   :  { %v4736_v11 = vpack.i.bf16 %v5377_v35, %v5379_v36  ;;  %v4571_v37 = vpack.c.bf16 %v5377_v35, %v5379_v36 }
 0x791   :  { %v4277_v1 = vpop.f32.mrb[8].mxu0  ;;  %4573 = vmatprep.subr.msk.bf16.mxu1 %vm5369_vm2, %v4571_v37 }
 0x792   :  { %v934_v5 = vadd.f32 %v4277_v1, %v3891_v0  ;;  %v928_v7 = vpop.f32.mrb[9].mxu0  ;;  %4576 = vmatpush3.bf16.xpose.msk.msra.mxu1 %vm5369_vm2, %v4571_v37 }
 0x793   :  { %v929_v4 = vadd.f32 %v3891_v0, %v928_v7 }
 0x794   :  { %v1059_v38 = vmul.f32 %v934_v5, %v5229_v10  ;;  %v1060_v41 = vmul.f32 %v934_v5, %v5245_v17  ;;  %v1061_v43 = vmul.f32 %v934_v5, %v5248_v18  ;;  %v1062_v45 = vmul.f32 %v934_v5, %v5255_v22 }
 0x795   :  { %v1056_v39 = vmul.f32 %v929_v4, %v5245_v17  ;;  %v1055_v40 = vmul.f32 %v929_v4, %v5229_v10  ;;  %v1057_v42 = vmul.f32 %v929_v4, %v5248_v18  ;;  %v1058_v44 = vmul.f32 %v929_v4, %v5255_v22 }
 0x796   :  { %4306 = vmatprep.mubr.msk.f32.mxu1 %vm101_vm0, %v1059_v38 }
 0x797   :  { %4296 = vmatprep.mubr.msk.f32.mxu0 %vm101_vm0, %v1055_v40 }
 0x798   :  { %4297 = vmatmul.mubr.msk.f32.vlgmr.msra.gmra.mrb[10].mxu0 %vm101_vm0, %v1056_v39 }
 0x799   :  { %4299 = vmatprep.mubr.msk.f32.mxu0 %vm101_vm0, %v1057_v42  ;;  %4307 = vmatmul.mubr.msk.f32.vlgmr.msra.gmra.mrb[16].mxu1 %vm101_vm0, %v1060_v41 }
 0x79a   :  { %4309 = vmatprep.mubr.msk.f32.mxu1 %vm101_vm0, %v1061_v43 }
 0x79c   :  { %4300 = vmatmul.mubr.msk.f32.gmra.mrb[12].mxu0 %vm101_vm0, %v1058_v44 }
 0x79d   :  { %4310 = vmatmul.mubr.msk.f32.gmra.mrb[18].mxu1 %vm101_vm0, %v1062_v45 }
 0x86b   :  { %v4298_v46 = vpop.f32.mrb[10].mxu0 }
 0x86c   :  { %v1147_v47 = vpop.f32.mrb[11].mxu0  ;;  %v4308_v48 = vpop.f32.mrb[16].mxu1  ;;  %v1273_v57 = vsel %vm1269_vm3, %v4298_v46, -inf }
 0x86d   :  { %v1250_v49 = vpop.f32.mrb[17].mxu1  ;;  %v1285_v50 = vsel %vm1269_vm3, %v4308_v48, -inf  ;;  %v1270_v58 = vsel %vm1269_vm3, %v1147_v47, -inf }
 0x86e   :  { %1286 = vmax.xlane.f32.xlu0 %v1285_v50  ;;  %v1282_v52 = vsel %vm1269_vm3, %v1250_v49, -inf }
 0x86f   :  { %1283 = vmax.xlane.f32.xlu1 %v1282_v52  ;;  %v4301_v53 = vpop.f32.mrb[12].mxu0 }
 0x870   :  { %v1157_v54 = vpop.f32.mrb[13].mxu0  ;;  %v4311_v55 = vpop.f32.mrb[18].mxu1  ;;  %v1279_v59 = vsel %vm1269_vm3, %v4301_v53, -inf }
 0x871   :  { %v1260_v56 = vpop.f32.mrb[19].mxu1  ;;  %v1276_v60 = vsel %vm1269_vm3, %v1157_v54, -inf  ;;  %v1291_v61 = vsel %vm1269_vm3, %v4311_v55, -inf }
 0x872   :  { %1274 = vmax.xlane.f32.xlu0 %v1273_v57  ;;  %v1288_v62 = vsel %vm1269_vm3, %v1260_v56, -inf }
 0x873   :  { %1271 = vmax.xlane.f32.xlu1 %v1270_v58 }
 0x876   :  { %1280 = vmax.xlane.f32.xlu0 %v1279_v59 }
 0x877   :  { %1277 = vmax.xlane.f32.xlu1 %v1276_v60 }
 0x87a   :  { %1292 = vmax.xlane.f32.xlu0 %v1291_v61 }
 0x87b   :  { %1289 = vmax.xlane.f32.xlu1 %v1288_v62 }
 0x8fb   :  { %v1287_v63 = vpop.xlane.xlu0 %1286 }
 0x8fc   :  { %v1299_v3 = vsub.f32 %v4308_v48, %v1287_v63  ;;  %v1284_v6 = vpop.xlane.xlu1 %1283 }
 0x8fd   :  { %v1298_v8 = vsub.f32 %v1250_v49, %v1284_v6 }
 0x8fe   :  { %v1312_v9 = vmul.f32 1.442695, %v1299_v3 }
 0x8ff   :  { %v1310_v12 = vmul.f32 1.442695, %v1298_v8  ;;  %v1275_v14 = vpop.xlane.xlu0 %1274 }
 0x900   :  { %4827 = vpow2.f32 %v1312_v9  ;;  %v1295_v15 = vsub.f32 %v4298_v46, %v1275_v14  ;;  %v1272_v16 = vpop.xlane.xlu1 %1271 }
 0x901   :  { %4829 = vpow2.f32 %v1310_v12  ;;  %v1294_v19 = vsub.f32 %v1147_v47, %v1272_v16 }
 0x902   :  { %v1304_v20 = vmul.f32 1.442695, %v1295_v15 }
 0x903   :  { %v1302_v21 = vmul.f32 1.442695, %v1294_v19  ;;  %v1281_v23 = vpop.xlane.xlu0 %1280 }
 0x904   :  { %4831 = vpow2.f32 %v1304_v20  ;;  %v1278_v26 = vpop.xlane.xlu1 %1277  ;;  %v1297_v27 = vsub.f32 %v4301_v53, %v1281_v23 }
 0x905   :  { %4833 = vpow2.f32 %v1302_v21  ;;  %v1296_v29 = vsub.f32 %v1157_v54, %v1278_v26 }
 0x906   :  { %v1308_v1 = vmul.f32 1.442695, %v1297_v27 }
 0x907   :  { %v1293_v33 = vpop.xlane.xlu0 %1292  ;;  %v1306_v4 = vmul.f32 1.442695, %v1296_v29 }
 0x908   :  { %v1301_v34 = vsub.f32 %v4311_v55, %v1293_v33  ;;  %v1290_v13 = vpop.xlane.xlu1 %1289 }
 0x909   :  { %v1300_v37 = vsub.f32 %v1260_v56, %v1290_v13 }
 0x90a   :  { %v5417_v0 = vpop.eup %4827  ;;  %v1316_v5 = vmul.f32 1.442695, %v1301_v34 }
 0x90b   :  { %v4830_v7 = vpop.eup %4829  ;;  %v1314_v38 = vmul.f32 1.442695, %v1300_v37  ;;  %v1333_v39 = vsel %vm1269_vm3, %v5417_v0, 0.0 }
 0x90c   :  { %4835 = vpow2.f32 %v1316_v5  ;;  %1334 = vadd.xlane.f32.xlu0 %v1333_v39  ;;  %v1330_v40 = vsel %vm1269_vm3, %v4830_v7, 0.0 }
 0x90d   :  { %4837 = vpow2.f32 %v1314_v38  ;;  %1331 = vadd.xlane.f32.xlu1 %v1330_v40 }
 0x90e   :  { %v5422_v41 = vpop.eup %4831  ;;  %4839 = vpow2.f32 %v1308_v1 }
 0x90f   :  { %v4834_v42 = vpop.eup %4833  ;;  %4841 = vpow2.f32 %v1306_v4  ;;  %v1321_v43 = vsel %vm1269_vm3, %v5422_v41, 0.0 }
 0x910   :  { %1322 = vadd.xlane.f32.xlu0 %v1321_v43  ;;  %v1318_v44 = vsel %vm1269_vm3, %v4834_v42, 0.0 }
 0x911   :  { %1319 = vadd.xlane.f32.xlu1 %v1318_v44 }
 0x916   :  { %v5427_v45 = vpop.eup %4835 }
 0x917   :  { %v4838_v46 = vpop.eup %4837  ;;  %v1339_v47 = vsel %vm1269_vm3, %v5427_v45, 0.0 }
 0x918   :  { %v4840_v48 = vpop.eup %4839  ;;  %1340 = vadd.xlane.f32.xlu0 %v1339_v47  ;;  %v1336_v49 = vsel %vm1269_vm3, %v4838_v46, 0.0 }
 0x919   :  { %v4842_v50 = vpop.eup %4841  ;;  %1337 = vadd.xlane.f32.xlu1 %v1336_v49  ;;  %v1327_v52 = vsel %vm1269_vm3, %v4840_v48, 0.0 }
 0x91a   :  { %v1324_v53 = vsel %vm1269_vm3, %v4842_v50, 0.0 }
 0x91c   :  { %1328 = vadd.xlane.f32.xlu0 %v1327_v52 }
 0x91d   :  { %1325 = vadd.xlane.f32.xlu1 %v1324_v53 }
 0x92e   :  { %4732 = vrot.lane.b32.xlu1 %v4731_v32, %s5079_s11 }
 0x932   :  { %4737 = vrot.lane.b32.xlu0 %v4736_v11, %s5079_s11  ;;  %4742 = vrot.lane.b32.xlu1 %v5335_v2, %s5081_s15 }
 0x936   :  { %4747 = vrot.lane.b32.xlu1 %v5347_v51, %s5081_s15 }
 0x999   :  { %v1335_v55 = vpop.xlane.xlu0 %1334 }
 0x99a   :  { %v1332_v54 = vpop.xlane.xlu1 %1331 }
 0x99b   :  { %4843 = vrcp.f32 %v1332_v54 }
 0x99d   :  { %v1323_v57 = vpop.xlane.xlu0 %1322 }
 0x99e   :  { %v1320_v56 = vpop.xlane.xlu1 %1319 }
 0x99f   :  { %4845 = vrcp.f32 %v1320_v56 }
 0x9a0   :  { %4847 = vrcp.f32 %v1335_v55 }
 0x9a1   :  { %4849 = vrcp.f32 %v1323_v57 }
 0x9a5   :  { %v4844_v58 = vpop.eup %4843  ;;  %v1341_v28 = vpop.xlane.xlu0 %1340 }
 0x9a6   :  { %v1338_v30 = vpop.xlane.xlu1 %1337  ;;  %v1354_v32 = vmul.f32 %v4844_v58, %v4830_v7 }
 0x9a7   :  { %4851 = vrcp.f32 %v1338_v30 }
 0x9a8   :  { %4326 = vmatprep.mubr.msk.f32.mxu1 %vm1269_vm3, %v1354_v32  ;;  %4853 = vrcp.f32 %v1341_v28 }
 0x9a9   :  { %v4846_v35 = vpop.eup %4845  ;;  %v1329_v2 = vpop.xlane.xlu0 %1328 }
 0x9aa   :  { %v1326_v36 = vpop.xlane.xlu1 %1325  ;;  %v1350_v51 = vmul.f32 %v4846_v35, %v4834_v42  ;;  %v4848_v3 = vpop.eup %4847 }
 0x9ab   :  { %4855 = vrcp.f32 %v1326_v36  ;;  %v4850_v8 = vpop.eup %4849  ;;  %v1355_v15 = vmul.f32 %v4848_v3, %v5417_v0 }
 0x9ac   :  { %4857 = vrcp.f32 %v1329_v2  ;;  %4316 = vmatprep.mubr.msk.f32.mxu0 %vm1269_vm3, %v1350_v51  ;;  %v1351_v19 = vmul.f32 %v4850_v8, %v5422_v41 }
 0x9ad   :  { %v4738_v11 = vpop.permute.xlu0 %4737 }
 0x9ae   :  { %v4740_v59 = vunpack.i.h.bf16 %v4738_v11  ;;  %v4739_v60 = vunpack.i.l.bf16 %v4738_v11  ;;  %v4733_v61 = vpop.permute.xlu1 %4732 }
 0x9af   :  { %v4735_v62 = vunpack.i.h.bf16 %v4733_v61  ;;  %v4734_v63 = vunpack.i.l.bf16 %v4733_v61 }
 0x9b0   :  { %v4581_v6 = vpack.c.bf16 %v4740_v59, %v4739_v60 }
 0x9b1   :  { %v4577_v9 = vpack.c.bf16 %v4735_v62, %v4734_v63  ;;  %v4852_v12 = vpop.eup %4851 }
 0x9b2   :  { %4582 = vmatprep.subr.bf16.mxu1 %v4581_v6  ;;  %v4854_v14 = vpop.eup %4853  ;;  %v1356_v20 = vmul.f32 %v4852_v12, %v4838_v46  ;;  %v4743_v29 = vpop.permute.xlu1 %4742  ;;  %v1729_v12 = vld [vmem:[%s5857_s3 + $0x58] sm:$0xff] }
 0x9b3   :  { %4578 = vmatprep.subr.bf16.mxu0 %v4577_v9  ;;  %4584 = vmatpush3.bf16.msra.mxu1 %v4581_v6  ;;  %v1357_v26 = vmul.f32 %v4854_v14, %v5427_v45  ;;  %v4745_v33 = vunpack.i.h.bf16 %v4743_v29  ;;  %v4744_v34 = vunpack.i.l.bf16 %v4743_v29  ;;  %v1727_v6 = vld [vmem:[%s5857_s3 + $0x28] sm:$0xff] }
 0x9b4   :  { %4580 = vmatpush3.bf16.msra.mxu0 %v4577_v9  ;;  %v1728_v9 = vld [vmem:[%s5857_s3 + $0x40] sm:$0xff] }
 0x9b5   :  { %v4856_v16 = vpop.eup %4855  ;;  %v4585_v13 = vpack.c.bf16 %v4745_v33, %v4744_v34  ;;  %v4597_v14 = vpack.c.bf16 %v1729_v12, %v1728_v9 }
 0x9b6   :  { %v4858_v21 = vpop.eup %4857  ;;  %4327 = vmatmul.mubr.msk.f32.vlgmr.msra.gmra.mrb[20].mxu1 %vm1269_vm3, %v1355_v15  ;;  %v1352_v23 = vmul.f32 %v4856_v16, %v4842_v50  ;;  %v4748_v37 = vpop.permute.xlu1 %4747  ;;  %v1818_v15 = vld [vmem:[%s5858_s4] sm:$0xff]  ;;  %v1819_v16 = vld [vmem:[%s5858_s4 + $0x8] sm:$0xff] }
 0x9b7   :  { %4317 = vmatmul.mubr.msk.f32.vlgmr.msra.gmra.mrb[14].mxu0 %vm1269_vm3, %v1351_v19  ;;  %4329 = vmatprep.mubr.msk.f32.mxu1 %vm1269_vm3, %v1356_v20  ;;  %v1353_v27 = vmul.f32 %v4858_v21, %v4840_v48  ;;  %v4750_v0 = vunpack.i.h.bf16 %v4748_v37  ;;  %v4749_v1 = vunpack.i.l.bf16 %v4748_v37  ;;  %v1820_v19 = vld [vmem:[%s5858_s4 + $0x10] sm:$0xff]  ;;  %v4601_v20 = vpack.c.bf16 %v1819_v16, %v1818_v15  ;;  %v1821_v21 = vld [vmem:[%s5858_s4 + $0x18] sm:$0xff] }
 0x9b8   :  { %4319 = vmatprep.mubr.msk.f32.mxu0 %vm1269_vm3, %v1352_v23  ;;  %4586 = vmatprep.subr.bf16.mxu0 %v4585_v13  ;;  %v4605_v23 = vpack.c.bf16 %v1821_v21, %v1820_v19  ;;  %v3930_v21 = vld [vmem:[#allocation8 + $0xb] ss:$0 sm:$0xff] }
 0x9b9   :  { %4588 = vmatpush3.bf16.msra.mxu0 %v4585_v13  ;;  %v4589_v5 = vpack.c.bf16 %v4750_v0, %v4749_v1 }
 0x9ba   :  { %4330 = vmatmul.mubr.msk.f32.gmra.mrb[22].mxu1 %vm1269_vm3, %v1357_v26  ;;  %v1822_v26 = vld [vmem:[%s5858_s4 + $0x20] sm:$0xff] }
 0x9bb   :  { %4320 = vmatmul.mubr.msk.f32.gmra.mrb[16].mxu0 %vm1269_vm3, %v1353_v27  ;;  %4590 = vmatprep.subr.bf16.mxu0 %v4589_v5  ;;  %v1823_v27 = vld [vmem:[%s5858_s4 + $0x28] sm:$0xff] }
 0x9bc   :  { %v4609_v29 = vpack.c.bf16 %v1823_v27, %v1822_v26 }
 0x9bd   :  { %4592 = vmatpush3.bf16.msra.mxu0 %v4589_v5 }
 0x9be   :  { %4602 = vmatprep.subr.bf16.mxu0 %v4601_v20 }
 0xa89   :  { %v4328_v7 = vpop.f32.mrb[20].mxu1 }
 0xa8a   :  { %v1569_v4 = vmul.f32 %v4328_v7, %v5245_v17  ;;  %v4318_v38 = vpop.f32.mrb[14].mxu0  ;;  %v1545_v39 = vpop.f32.mrb[21].mxu1  ;;  %v3922_v7 = vld [vmem:[#allocation8 + $0x9] ss:$0 sm:$0xff] }
 0xa8b   :  { %v1565_v40 = vmul.f32 %v4318_v38, %v5245_v17  ;;  %v1568_v41 = vmul.f32 %v1545_v39, %v5229_v10  ;;  %v1442_v42 = vpop.f32.mrb[15].mxu0  ;;  %v3923_v38 = vld [vmem:[#allocation8 + $0xa] ss:$0 sm:$0xff] }
 0xa8c   :  { %v1564_v43 = vmul.f32 %v1442_v42, %v5229_v10  ;;  %v3919_v10 = vld [vmem:[#allocation8 + $0x4] ss:$0 sm:$0xff] }
 0xa8d   :  { %v1573_v44 = vadd.f32 %v1569_v4, %v1568_v41  ;;  %v4331_v45 = vpop.f32.mrb[22].mxu1 }
 0xa8e   :  { %v1572_v46 = vadd.f32 %v1565_v40, %v1564_v43  ;;  %v4321_v47 = vpop.f32.mrb[16].mxu0  ;;  %v1555_v48 = vpop.f32.mrb[23].mxu1  ;;  %v1571_v53 = vmul.f32 %v4331_v45, %v5255_v22  ;;  %v1824_v45 = vld [vmem:[%s5858_s4 + $0x30] sm:$0xff] }
 0xa8f   :  { %v1570_v49 = vmul.f32 %v1555_v48, %v5248_v18  ;;  %v1452_v50 = vpop.f32.mrb[17].mxu0  ;;  %v1567_v17 = vmul.f32 %v4321_v47, %v5255_v22  ;;  %v3924_v48 = vld [vmem:[#allocation8 + $0x5] ss:$0 sm:$0xff] }
 0xa90   :  { %v1566_v52 = vmul.f32 %v1452_v50, %v5248_v18 }
 0xa91   :  { %v1575_v54 = vadd.f32 %v1573_v44, %v1570_v49 }
 0xa92   :  { %v1574_v55 = vadd.f32 %v1572_v46, %v1566_v52  ;;  %v1825_v46 = vld [vmem:[%s5858_s4 + $0x38] sm:$0xff] }
 0xa93   :  { %v1577_v56 = vadd.f32 %v1575_v54, %v1571_v53  ;;  %v4613_v47 = vpack.c.bf16 %v1825_v46, %v1824_v45  ;;  %v5575_v46 = vld [vmem:[#allocation2 + $0x10] sm:$0xff] }
 0xa94   :  { %v1576_v57 = vadd.f32 %v1574_v55, %v1567_v17  ;;  %v3927_v55 = vld [vmem:[#allocation8 + $0x6] ss:$0 sm:$0xff] }
 0xa96   :  { %4340 = vmatprep.mubr.msk.f32.mxu0 %vm101_vm0, %v1576_v57 }
 0xa97   :  { %4341 = vmatmul.mubr.msk.f32.vlgmr.msra.gmra.mrb[18].mxu0 %vm101_vm0, %v1577_v56 }
 0xa98   :  { %4604 = vmatpush3.bf16.msra.mxu0 %v4601_v20 }
 0xa99   :  { %4606 = vmatprep.subr.bf16.mxu0 %v4605_v23 }
 0xa9c   :  { %4608 = vmatpush3.bf16.msra.mxu0 %v4605_v23 }
 0xa9d   :  { %4610 = vmatprep.subr.bf16.mxu0 %v4609_v29 }
 0xaa0   :  { %4612 = vmatpush3.bf16.msra.mxu0 %v4609_v29  ;;  %v3931_v29 = vld [vmem:[#allocation8 + $0xc] ss:$0 sm:$0xff] }
 0xaa1   :  { %4614 = vmatprep.subr.bf16.mxu0 %v4613_v47 }
 0xaa4   :  { %4616 = vmatpush3.bf16.msra.mxu0 %v4613_v47 }
 0xb6a   :  { %v4342_v58 = vpop.f32.mrb[18].mxu0 }
 0xb6b   :  { %v1681_v28 = vadd.f32 %v4342_v58, %v3919_v10  ;;  %v1675_v30 = vpop.f32.mrb[19].mxu0 }
 0xb6c   :  { %v1676_v32 = vadd.f32 %v3919_v10, %v1675_v30 }
 0xb6d   :  { %v1685_v35 = vadd.f32 %v1681_v28, %v5357_v25 }
 0xb6e   :  { %v1684_v18 = vadd.f32 %v1676_v32, %v5355_v24  ;;  %v1726_v24 = vld [vmem:[%s5857_s3 + $0x10] sm:$0xff] }
 0xb6f   :  { %v1691_v2 = vsel %vm101_vm0, %v1685_v35, 0.0  ;;  %v4593_v8 = vpack.c.bf16 %v1727_v6, %v1726_v24  ;;  %v5532_v24 = vld [vmem:[%s5857_s3 + $0x90] sm:$0xff]  ;;  %v5537_v6 = vld [vmem:[%s5857_s3 + $0xa8] sm:$0xff] }
 0xb70   :  { %1692 = vadd.xlane.f32.xlu1 %v1691_v2  ;;  %v1688_v22 = vsel %vm101_vm0, %v1684_v18, 0.0 }
 0xb71   :  { %1689 = vadd.xlane.f32.xlu0 %v1688_v22  ;;  %4594 = vmatprep.subr.bf16.mxu1 %v4593_v8 }
 0xb72   :  { %4596 = vmatpush3.bf16.msra.mxu1 %v4593_v8  ;;  %v4621_v8 = vpack.c.bf16 %v5537_v6, %v5532_v24 }
 0xb73   :  { %4598 = vmatprep.subr.bf16.mxu1 %v4597_v14 }
 0xb76   :  { %4600 = vmatpush3.bf16.msra.mxu1 %v4597_v14 }
 0xbfd   :  { %v1693_v36 = vpop.xlane.xlu1 %1692 }
 0xbfe   :  { %v1695_v51 = vmul.f32 0.03125, %v1693_v36  ;;  %v1690_v11 = vpop.xlane.xlu0 %1689 }
 0xbff   :  { %v1694_v59 = vmul.f32 0.03125, %v1690_v11 }
 0xc00   :  { %v1697_v60 = vsub.f32 %v1685_v35, %v1695_v51 }
 0xc01   :  { %v1696_v61 = vsub.f32 %v1684_v18, %v1694_v59 }
 0xc02   :  { %v1699_v3 = vmul.f32 %v1697_v60, %v1697_v60 }
 0xc03   :  { %v1698_v62 = vmul.f32 %v1696_v61, %v1696_v61 }
 0xc04   :  { %v1703_v25 = vsel %vm101_vm0, %v1699_v3, 0.0  ;;  %v5525_v3 = vld [vmem:[%s5857_s3 + $0x78] sm:$0xff] }
 0xc05   :  { %v1700_v63 = vsel %vm101_vm0, %v1698_v62, 0.0 }
 0xc06   :  { %1701 = vadd.xlane.f32.xlu0 %v1700_v63  ;;  %v5520_v63 = vld [vmem:[%s5857_s3 + $0x60] sm:$0xff] }
 0xc0a   :  { %1704 = vadd.xlane.f32.xlu0 %v1703_v25  ;;  %v4617_v25 = vpack.c.bf16 %v5525_v3, %v5520_v63 }
 0xc0c   :  { %4618 = vmatprep.subr.bf16.mxu1 %v4617_v25 }
 0xc93   :  { %v1702_v33 = vpop.xlane.xlu0 %1701 }
 0xc94   :  { %v1706_v34 = vmul.f32 0.03125, %v1702_v33 }
 0xc96   :  { %v1708_v13 = vadd.f32 1e-05, %v1706_v34 }
 0xc97   :  { %v1705_v37 = vpop.xlane.xlu0 %1704 }
 0xc98   :  { %4859 = vrsqrt.f32 %v1708_v13  ;;  %v1707_v0 = vmul.f32 0.03125, %v1705_v37 }
 0xc9a   :  { %v1709_v1 = vadd.f32 1e-05, %v1707_v0  ;;  %v3936_v0 = vld [vmem:[#allocation8 + $0x10] ss:$0 sm:$0xff] }
 0xc9c   :  { %4861 = vrsqrt.f32 %v1709_v1 }
 0xca2   :  { %v4860_v5 = vpop.eup %4859 }
 0xca3   :  { %v1712_v4 = vmul.f32 %v4860_v5, %v1696_v61 }
 0xca5   :  { %v1718_v39 = vmul.f32 %v3922_v7, %v1712_v4 }
 0xca6   :  { %v4862_v40 = vpop.eup %4861 }
 0xca7   :  { %v1713_v41 = vmul.f32 %v4862_v40, %v1697_v60  ;;  %v1724_v42 = vadd.f32 %v3923_v38, %v1718_v39 }
 0xca9   :  { %v1719_v43 = vmul.f32 %v3922_v7, %v1713_v41  ;;  %4351 = vmatprep.mubr.msk.f32.mxu1 %vm101_vm0, %v1724_v42 }
 0xcab   :  { %v1725_v44 = vadd.f32 %v3923_v38, %v1719_v43  ;;  %v5555_v38 = vld [vmem:[#allocation2] sm:$0xff]  ;;  %v5569_v43 = vld [vmem:[#allocation2 + $0x8] sm:$0xff] }
 0xcad   :  { %4352 = vmatmul.mubr.msk.f32.vlgmr.msra.gmra.mrb[24].mxu1 %vm101_vm0, %v1725_v44 }
 0xcae   :  { %4620 = vmatpush3.bf16.msra.mxu1 %v4617_v25 }
 0xcaf   :  { %4622 = vmatprep.subr.bf16.mxu1 %v4621_v8 }
 0xcb2   :  { %4624 = vmatpush3.bf16.msra.mxu1 %v4621_v8 }
 0xd80   :  { %v4353_v49 = vpop.f32.mrb[24].mxu1 }
 0xd81   :  { %v1813_v50 = vadd.f32 %v4353_v49, %v3924_v48  ;;  %v1807_v52 = vpop.f32.mrb[25].mxu1  ;;  %v5585_v49 = vld [vmem:[#allocation2 + $0x18] sm:$0xff] }
 0xd82   :  { %v1808_v53 = vadd.f32 %v3924_v48, %v1807_v52 }
 0xd83   :  { %v1817_v17 = vmax.f32 %v1813_v50, 0.0 }
 0xd84   :  { %v1816_v54 = vmax.f32 %v1808_v53, 0.0 }
 0xd86   :  { %4370 = vmatprep.mubr.msk.f32.mxu0 %vm1831_vm4, %v1816_v54 }
 0xd87   :  { %4371 = vmatmul.mubr.msk.f32.vlgmr.msra.gmra.mrb[20].mxu0 %vm1831_vm4, %v1817_v17 }
 0xe5a   :  { %v4372_v56 = vpop.f32.mrb[20].mxu0 }
 0xe5b   :  { %v1910_v57 = vadd.f32 %v4372_v56, %v3927_v55  ;;  %v1904_v10 = vpop.f32.mrb[21].mxu0 }
 0xe5c   :  { %v1905_v58 = vadd.f32 %v3927_v55, %v1904_v10 }
 0xe5d   :  { %v1914_v28 = vadd.f32 %v1910_v57, %v1725_v44 }
 0xe5e   :  { %v1913_v30 = vadd.f32 %v1905_v58, %v1724_v42 }
 0xe5f   :  { %v1920_v32 = vsel %vm101_vm0, %v1914_v28, 0.0 }
 0xe60   :  { %1921 = vadd.xlane.f32.xlu0 %v1920_v32  ;;  %v1917_v35 = vsel %vm101_vm0, %v1913_v30, 0.0 }
 0xe61   :  { %1918 = vadd.xlane.f32.xlu1 %v1917_v35 }
 0xeed   :  { %v1922_v18 = vpop.xlane.xlu0 %1921 }
 0xeee   :  { %v1924_v2 = vmul.f32 0.03125, %v1922_v18  ;;  %v1919_v22 = vpop.xlane.xlu1 %1918 }
 0xeef   :  { %v1923_v36 = vmul.f32 0.03125, %v1919_v22 }
 0xef0   :  { %v1926_v51 = vsub.f32 %v1914_v28, %v1924_v2 }
 0xef1   :  { %v1925_v11 = vsub.f32 %v1913_v30, %v1923_v36 }
 0xef2   :  { %v1928_v59 = vmul.f32 %v1926_v51, %v1926_v51 }
 0xef3   :  { %v1927_v60 = vmul.f32 %v1925_v11, %v1925_v11 }
 0xef4   :  { %v1932_v61 = vsel %vm101_vm0, %v1928_v59, 0.0 }
 0xef5   :  { %1933 = vadd.xlane.f32.xlu0 %v1932_v61  ;;  %v1929_v62 = vsel %vm101_vm0, %v1927_v60, 0.0 }
 0xef6   :  { %1930 = vadd.xlane.f32.xlu1 %v1929_v62 }
 0xf82   :  { %v1934_v9 = vpop.xlane.xlu0 %1933 }
 0xf83   :  { %v1936_v12 = vmul.f32 0.03125, %v1934_v9  ;;  %v1931_v14 = vpop.xlane.xlu1 %1930 }
 0xf84   :  { %v1935_v15 = vmul.f32 0.03125, %v1931_v14 }
 0xf85   :  { %v1938_v16 = vadd.f32 1e-05, %v1936_v12 }
 0xf86   :  { %v1937_v19 = vadd.f32 1e-05, %v1935_v15 }
 0xf87   :  { %4863 = vrsqrt.f32 %v1938_v16 }
 0xf88   :  { %4865 = vrsqrt.f32 %v1937_v19 }
 0xf91   :  { %v4864_v20 = vpop.eup %4863 }
 0xf92   :  { %v4866_v23 = vpop.eup %4865  ;;  %v1942_v26 = vmul.f32 %v4864_v20, %v1926_v51 }
 0xf93   :  { %v1941_v27 = vmul.f32 %v4866_v23, %v1925_v11 }
 0xf94   :  { %v1948_v33 = vmul.f32 %v3930_v21, %v1942_v26 }
 0xf95   :  { %v1947_v34 = vmul.f32 %v3930_v21, %v1941_v27 }
 0xf96   :  { %v5543_v37 = vadd.f32 %v3931_v29, %v1948_v33 }
 0xf97   :  { %v5541_v13 = vadd.f32 %v3931_v29, %v1947_v34 }
 0xf99   :  { %4381 = vmatprep.mubr.msk.f32.mxu1 %vm101_vm0, %v5541_v13 }
 0xf9a   :  { %4382 = vmatmul.mubr.msk.f32.vlgmr.msra.gmra.mrb[26].mxu1 %vm101_vm0, %v5543_v37 }
0x106d   :  { %v4383_v1 = vpop.f32.mrb[26].mxu1 }
0x106e   :  { %v5549_v5 = vadd.f32 %v4383_v1, %v3936_v0  ;;  %v2038_v7 = vpop.f32.mrb[27].mxu1 }
0x106f   :  { %v5551_v4 = vadd.f32 %v3936_v0, %v2038_v7 }
0x1070   :  { %2158 = vrot.lane.b32.xlu0 %v5549_v5, %s5079_s11  ;;  %v2051_v39 = vmul.f32 %v5555_v38, %v5549_v5  ;;  %v2052_v44 = vmul.f32 %v5569_v43, %v5549_v5  ;;  %v2053_v47 = vmul.f32 %v5575_v46, %v5549_v5  ;;  %v2054_v50 = vmul.f32 %v5585_v49, %v5549_v5 }
0x1071   :  { %2056 = vrot.lane.b32.xlu1 %v5551_v4, %s5079_s11  ;;  %v2047_v40 = vmul.f32 %v5555_v38, %v5551_v4  ;;  %v2048_v45 = vmul.f32 %v5569_v43, %v5551_v4  ;;  %v2049_v48 = vmul.f32 %v5575_v46, %v5551_v4  ;;  %v2050_v52 = vmul.f32 %v5585_v49, %v5551_v4 }
0x1072   :  { %4394 = vmatprep.mubr.msk.f32.mxu0 %vm101_vm0, %v2051_v39 }
0x1073   :  { %4386 = vmatprep.mubr.msk.f32.mxu1 %vm101_vm0, %v2047_v40 }
0x10e2   :  { %v2159_v41 = vpop.permute.xlu0 %2158 }
0x10e3   :  { %4392 = vmatprep.subr.msk.mxu0 %vm101_vm0, %v2159_v41  ;;  %v2057_v42 = vpop.permute.xlu1 %2056 }
0x10e4   :  { %4384 = vmatprep.subr.msk.mxu1 %vm101_vm0, %v2057_v42  ;;  %4393 = vmatpush3.xpose.msk.msra.mxu0 %vm101_vm0, %v2159_v41 }
0x10e5   :  { %4385 = vmatpush3.xpose.msk.msra.mxu1 %vm101_vm0, %v2057_v42 }
0x10e7   :  { %4395 = vmatmul.mubr.msk.f32.vlgmr.msra.gmra.mrb[22].mxu0 %vm101_vm0, %v2052_v44 }
0x10e8   :  { %4387 = vmatmul.mubr.msk.f32.vlgmr.msra.gmra.mrb[28].mxu1 %vm101_vm0, %v2048_v45  ;;  %4397 = vmatprep.mubr.msk.f32.mxu0 %vm101_vm0, %v2053_v47 }
0x10e9   :  { %4389 = vmatprep.mubr.msk.f32.mxu1 %vm101_vm0, %v2049_v48 }
0x10eb   :  { %4398 = vmatmul.mubr.msk.f32.gmra.mrb[24].mxu0 %vm101_vm0, %v2054_v50 }
0x10ec   :  { %4390 = vmatmul.mubr.msk.f32.gmra.mrb[30].mxu1 %vm101_vm0, %v2050_v52 }
0x11ba   :  { %v4396_v53 = vpop.f32.mrb[22].mxu0 }
0x11bb   :  { %v4388_v54 = vpop.f32.mrb[28].mxu1  ;;  %v2240_v17 = vpop.f32.mrb[23].mxu0  ;;  %v2274_v55 = vsel %vm395_vm1, %v4396_v53, -inf }
0x11bc   :  { %2275 = vmax.xlane.f32.xlu0 %v2274_v55  ;;  %v2138_v56 = vpop.f32.mrb[29].mxu1  ;;  %v2271_v57 = vsel %vm395_vm1, %v2240_v17, -inf  ;;  %v2262_v30 = vsel %vm395_vm1, %v4388_v54, -inf }
0x11bd   :  { %2272 = vmax.xlane.f32.xlu1 %v2271_v57  ;;  %v2259_v35 = vsel %vm395_vm1, %v2138_v56, -inf  ;;  %v4751_v57 = vpack.i.bf16 %v5525_v3, %v5520_v63 }
0x11be   :  { %v4399_v10 = vpop.f32.mrb[24].mxu0 }
0x11bf   :  { %v4391_v58 = vpop.f32.mrb[30].mxu1  ;;  %v2250_v28 = vpop.f32.mrb[25].mxu0  ;;  %v2280_v22 = vsel %vm395_vm1, %v4399_v10, -inf }
0x11c0   :  { %2263 = vmax.xlane.f32.xlu0 %v2262_v30  ;;  %v2148_v32 = vpop.f32.mrb[31].mxu1  ;;  %v2268_v18 = vsel %vm395_vm1, %v4391_v58, -inf  ;;  %v2277_v36 = vsel %vm395_vm1, %v2250_v28, -inf }
0x11c1   :  { %2260 = vmax.xlane.f32.xlu1 %v2259_v35  ;;  %v2265_v2 = vsel %vm395_vm1, %v2148_v32, -inf }
0x11c4   :  { %2269 = vmax.xlane.f32.xlu0 %v2268_v18 }
0x11c5   :  { %2266 = vmax.xlane.f32.xlu1 %v2265_v2 }
0x11c8   :  { %2281 = vmax.xlane.f32.xlu0 %v2280_v22 }
0x11c9   :  { %2278 = vmax.xlane.f32.xlu1 %v2277_v36 }
0x1249   :  { %v2276_v51 = vpop.xlane.xlu0 %2275 }
0x124a   :  { %v2288_v11 = vsub.f32 %v4396_v53, %v2276_v51  ;;  %v2273_v59 = vpop.xlane.xlu1 %2272 }
0x124b   :  { %v2287_v60 = vsub.f32 %v2240_v17, %v2273_v59 }
0x124c   :  { %v2301_v61 = vmul.f32 1.442695, %v2288_v11 }
0x124d   :  { %v2299_v62 = vmul.f32 1.442695, %v2287_v60  ;;  %v2264_v25 = vpop.xlane.xlu0 %2263 }
0x124e   :  { %4867 = vpow2.f32 %v2301_v61  ;;  %v2284_v8 = vsub.f32 %v4388_v54, %v2264_v25  ;;  %v2261_v9 = vpop.xlane.xlu1 %2260 }
0x124f   :  { %4869 = vpow2.f32 %v2299_v62  ;;  %v2283_v12 = vsub.f32 %v2138_v56, %v2261_v9 }
0x1250   :  { %v2293_v14 = vmul.f32 1.442695, %v2284_v8 }
0x1251   :  { %v2291_v15 = vmul.f32 1.442695, %v2283_v12  ;;  %v2270_v16 = vpop.xlane.xlu0 %2269 }
0x1252   :  { %4871 = vpow2.f32 %v2293_v14  ;;  %v2267_v19 = vpop.xlane.xlu1 %2266  ;;  %v2286_v20 = vsub.f32 %v4391_v58, %v2270_v16 }
0x1253   :  { %4873 = vpow2.f32 %v2291_v15  ;;  %v2285_v21 = vsub.f32 %v2148_v32, %v2267_v19 }
0x1254   :  { %v2297_v34 = vmul.f32 1.442695, %v2286_v20 }
0x1255   :  { %v2282_v23 = vpop.xlane.xlu0 %2281  ;;  %v2295_v7 = vmul.f32 1.442695, %v2285_v21 }
0x1256   :  { %v2290_v26 = vsub.f32 %v4399_v10, %v2282_v23  ;;  %v2279_v27 = vpop.xlane.xlu1 %2278  ;;  %v4756_v10 = vpack.i.bf16 %v5537_v6, %v5532_v24 }
0x1257   :  { %v2289_v29 = vsub.f32 %v2250_v28, %v2279_v27 }
0x1258   :  { %v5601_v33 = vpop.eup %4867  ;;  %v2305_v0 = vmul.f32 1.442695, %v2290_v26 }
0x1259   :  { %v4870_v1 = vpop.eup %4869  ;;  %v2303_v39 = vmul.f32 1.442695, %v2289_v29  ;;  %v2322_v40 = vsel %vm395_vm1, %v5601_v33, 0.0 }
0x125a   :  { %4875 = vpow2.f32 %v2305_v0  ;;  %2323 = vadd.xlane.f32.xlu0 %v2322_v40  ;;  %v2319_v41 = vsel %vm395_vm1, %v4870_v1, 0.0 }
0x125b   :  { %4877 = vpow2.f32 %v2303_v39  ;;  %2320 = vadd.xlane.f32.xlu1 %v2319_v41 }
0x125c   :  { %v4872_v42 = vpop.eup %4871  ;;  %4879 = vpow2.f32 %v2297_v34 }
0x125d   :  { %v4874_v44 = vpop.eup %4873  ;;  %4881 = vpow2.f32 %v2295_v7  ;;  %v2310_v45 = vsel %vm395_vm1, %v4872_v42, 0.0 }
0x125e   :  { %2311 = vadd.xlane.f32.xlu0 %v2310_v45  ;;  %v2307_v47 = vsel %vm395_vm1, %v4874_v44, 0.0 }
0x125f   :  { %2308 = vadd.xlane.f32.xlu1 %v2307_v47 }
0x1264   :  { %v4876_v48 = vpop.eup %4875 }
0x1265   :  { %v4878_v50 = vpop.eup %4877  ;;  %v2328_v52 = vsel %vm395_vm1, %v4876_v48, 0.0 }
0x1266   :  { %v4880_v53 = vpop.eup %4879  ;;  %2329 = vadd.xlane.f32.xlu0 %v2328_v52  ;;  %v2325_v54 = vsel %vm395_vm1, %v4878_v50, 0.0 }
0x1267   :  { %v4882_v17 = vpop.eup %4881  ;;  %2326 = vadd.xlane.f32.xlu1 %v2325_v54  ;;  %v2316_v55 = vsel %vm395_vm1, %v4880_v53, 0.0 }
0x1268   :  { %v2313_v56 = vsel %vm395_vm1, %v4882_v17, 0.0 }
0x126a   :  { %2317 = vadd.xlane.f32.xlu0 %v2316_v55 }
0x126b   :  { %2314 = vadd.xlane.f32.xlu1 %v2313_v56 }
0x127c   :  { %2347 = vrot.lane.b32.xlu1 %v5551_v4, %s5080_s12 }
0x1280   :  { %2447 = vrot.lane.b32.xlu0 %v5549_v5, %s5080_s12  ;;  %4752 = vrot.lane.b32.xlu1 %v4751_v57, %s5081_s15 }
0x1284   :  { %4757 = vrot.lane.b32.xlu1 %v4756_v10, %s5081_s15  ;;  %v4951_v10 = vld [vmem:[#allocation7] sm:$0xff] }
0x12e7   :  { %v2324_v58 = vpop.xlane.xlu0 %2323 }
0x12e8   :  { %v2321_v28 = vpop.xlane.xlu1 %2320 }
0x12e9   :  { %4883 = vrcp.f32 %v2321_v28 }
0x12eb   :  { %v2312_v32 = vpop.xlane.xlu0 %2311 }
0x12ec   :  { %v2309_v30 = vpop.xlane.xlu1 %2308 }
0x12ed   :  { %4885 = vrcp.f32 %v2309_v30 }
0x12ee   :  { %4887 = vrcp.f32 %v2324_v58  ;;  %v3961_v58 = vld [vmem:[#allocation8 + $0x11] ss:$0 sm:$0xff] }
0x12ef   :  { %4889 = vrcp.f32 %v2312_v32 }
0x12f3   :  { %v4884_v4 = vpop.eup %4883  ;;  %v2330_v5 = vpop.xlane.xlu0 %2329 }
0x12f4   :  { %4891 = vrcp.f32 %v2330_v5  ;;  %v2327_v35 = vpop.xlane.xlu1 %2326  ;;  %v2343_v63 = vmul.f32 %v4884_v4, %v4870_v1 }
0x12f5   :  { %4893 = vrcp.f32 %v2327_v35 }
0x12f6   :  { %4410 = vmatprep.mubr.msk.f32.mxu0 %vm395_vm1, %v2343_v63 }
0x12f7   :  { %v4886_v3 = vpop.eup %4885  ;;  %v2318_v24 = vpop.xlane.xlu0 %2317 }
0x12f8   :  { %4895 = vrcp.f32 %v2318_v24  ;;  %v2315_v6 = vpop.xlane.xlu1 %2314  ;;  %v2339_v18 = vmul.f32 %v4886_v3, %v4874_v44  ;;  %v4888_v2 = vpop.eup %4887  ;;  %v3966_v24 = vld [vmem:[%s5857_s3 + $0x68] sm:$0xff] }
0x12f9   :  { %4897 = vrcp.f32 %v2315_v6  ;;  %v4890_v22 = vpop.eup %4889  ;;  %v2344_v51 = vmul.f32 %v4888_v2, %v5601_v33  ;;  %v3967_v6 = vld [vmem:[%s5857_s3 + $0x80] sm:$0xff] }
0x12fa   :  { %4402 = vmatprep.mubr.msk.f32.mxu1 %vm395_vm1, %v2339_v18  ;;  %v2340_v59 = vmul.f32 %v4890_v22, %v4872_v42  ;;  %v5652_v18 = vpack.i.bf16 %v3967_v6, %v3966_v24 }
0x12fb   :  { %v2448_v36 = vpop.permute.xlu0 %2447 }
0x12fc   :  { %4408 = vmatprep.subr.mxu0 %v2448_v36  ;;  %v2348_v11 = vpop.permute.xlu1 %2347 }
0x12fd   :  { %4400 = vmatprep.subr.mxu1 %v2348_v11  ;;  %4409 = vmatpush3.msra.mxu0 %v2448_v36 }
0x12fe   :  { %v4892_v60 = vpop.eup %4891  ;;  %4401 = vmatpush3.msra.mxu1 %v2348_v11  ;;  %4411 = vmatmul.mubr.msk.f32.vlgmr.msra.gmra.mrb[26].mxu0 %vm395_vm1, %v2344_v51 }
0x12ff   :  { %v4894_v61 = vpop.eup %4893  ;;  %4403 = vmatmul.mubr.msk.f32.vlgmr.msra.gmra.mrb[32].mxu1 %vm395_vm1, %v2340_v59  ;;  %v2346_v25 = vmul.f32 %v4892_v60, %v4876_v48 }
0x1300   :  { %v2345_v62 = vmul.f32 %v4894_v61, %v4878_v50  ;;  %v4753_v15 = vpop.permute.xlu1 %4752 }
0x1301   :  { %v4755_v16 = vunpack.i.h.bf16 %v4753_v15  ;;  %v4754_v19 = vunpack.i.l.bf16 %v4753_v15 }
0x1302   :  { %v4896_v8 = vpop.eup %4895  ;;  %4413 = vmatprep.mubr.msk.f32.mxu0 %vm395_vm1, %v2345_v62 }
0x1303   :  { %v4898_v9 = vpop.eup %4897  ;;  %4414 = vmatmul.mubr.msk.f32.gmra.mrb[28].mxu0 %vm395_vm1, %v2346_v25  ;;  %v2342_v14 = vmul.f32 %v4896_v8, %v4880_v53  ;;  %v4625_v20 = vpack.c.bf16 %v4755_v16, %v4754_v19  ;;  %v4633_v16 = vpack.c.bf16 %v3967_v6, %v3966_v24 }
0x1304   :  { %v2341_v12 = vmul.f32 %v4898_v9, %v4882_v17  ;;  %v4758_v21 = vpop.permute.xlu1 %4757  ;;  %v3968_v9 = vld [vmem:[%s5857_s3 + $0x98] sm:$0xff] }
0x1305   :  { %v4760_v23 = vunpack.i.h.bf16 %v4758_v21  ;;  %v4759_v26 = vunpack.i.l.bf16 %v4758_v21  ;;  %4626 = vmatprep.subr.bf16.mxu1 %v4625_v20  ;;  %4634 = vmatprep.subr.bf16.mxu0 %v4633_v16 }
0x1306   :  { %4405 = vmatprep.mubr.msk.f32.mxu1 %vm395_vm1, %v2341_v12  ;;  %4628 = vmatpush3.bf16.msra.mxu1 %v4625_v20  ;;  %v3969_v12 = vld [vmem:[%s5857_s3 + $0xb0] sm:$0xff] }
0x1307   :  { %4406 = vmatmul.mubr.msk.f32.gmra.mrb[34].mxu1 %vm395_vm1, %v2342_v14  ;;  %v4629_v27 = vpack.c.bf16 %v4760_v23, %v4759_v26  ;;  %v5664_v15 = vpack.i.bf16 %v3969_v12, %v3968_v9  ;;  %4636 = vmatpush3.bf16.msra.mxu0 %v4633_v16  ;;  %v4637_v19 = vpack.c.bf16 %v3969_v12, %v3968_v9 }
0x1309   :  { %4630 = vmatprep.subr.bf16.mxu1 %v4629_v27  ;;  %4638 = vmatprep.subr.bf16.mxu0 %v4637_v19 }
0x130a   :  { %4632 = vmatpush3.bf16.msra.mxu1 %v4629_v27 }
0x130b   :  { %4640 = vmatpush3.bf16.msra.mxu0 %v4637_v19 }
0x13d1   :  { %v4412_v29 = vpop.f32.mrb[26].mxu0 }
0x13d2   :  { %v2552_v33 = vmul.f32 %v5569_v43, %v4412_v29  ;;  %v4404_v34 = vpop.f32.mrb[32].mxu1  ;;  %v2528_v0 = vpop.f32.mrb[27].mxu0 }
0x13d3   :  { %v2548_v1 = vmul.f32 %v5569_v43, %v4404_v34  ;;  %v2551_v7 = vmul.f32 %v5555_v38, %v2528_v0  ;;  %v2428_v39 = vpop.f32.mrb[33].mxu1 }
0x13d4   :  { %v2547_v40 = vmul.f32 %v5555_v38, %v2428_v39 }
0x13d5   :  { %v2556_v41 = vadd.f32 %v2552_v33, %v2551_v7 }
0x13d6   :  { %v2555_v42 = vadd.f32 %v2548_v1, %v2547_v40  ;;  %v4415_v44 = vpop.f32.mrb[28].mxu0  ;;  %v4952_v40 = vld [vmem:[#allocation7 + $0x8] sm:$0xff] }
0x13d7   :  { %v2538_v45 = vpop.f32.mrb[29].mxu0  ;;  %v2554_v48 = vmul.f32 %v5585_v49, %v4415_v44 }
0x13d8   :  { %v2553_v47 = vmul.f32 %v5575_v46, %v2538_v45 }
0x13da   :  { %v2558_v50 = vadd.f32 %v2556_v41, %v2553_v47  ;;  %v4407_v52 = vpop.f32.mrb[34].mxu1  ;;  %v4953_v41 = vld [vmem:[#allocation7 + $0x10] sm:$0xff]  ;;  %v4954_v47 = vld [vmem:[#allocation7 + $0x18] sm:$0xff] }
0x13db   :  { %v2438_v53 = vpop.f32.mrb[35].mxu1  ;;  %v2550_v55 = vmul.f32 %v5585_v49, %v4407_v52 }
0x13dc   :  { %v2560_v54 = vadd.f32 %v2558_v50, %v2554_v48  ;;  %v2549_v17 = vmul.f32 %v5575_v46, %v2438_v53  ;;  %v3965_v50 = vld [vmem:[#allocation8 + $0x18] ss:$0 sm:$0xff] }
0x13de   :  { %v2557_v56 = vadd.f32 %v2555_v42, %v2549_v17  ;;  %v3964_v42 = vld [vmem:[#allocation8 + $0x17] ss:$0 sm:$0xff]  ;;  %v3973_v17 = vld [vmem:[#allocation8 + $0x13] ss:$0 sm:$0xff] }
0x13e0   :  { %v2559_v57 = vadd.f32 %v2557_v56, %v2550_v55 }
0x13e2   :  { %4424 = vmatprep.mubr.msk.f32.mxu1 %vm101_vm0, %v2559_v57 }
0x13e3   :  { %4425 = vmatmul.mubr.msk.f32.vlgmr.msra.gmra.mrb[36].mxu1 %vm101_vm0, %v2560_v54 }
0x13e4   :  { %4446 = vmatprep.mubr.msk.f32.mxu1 %vm101_vm0, %v4951_v10 }
0x14b6   :  { %v4426_v28 = vpop.f32.mrb[36].mxu1 }
0x14b7   :  { %v2664_v30 = vadd.f32 %v4426_v28, %v3961_v58  ;;  %v2658_v32 = vpop.f32.mrb[37].mxu1 }
0x14b8   :  { %v2659_v4 = vadd.f32 %v3961_v58, %v2658_v32 }
0x14b9   :  { %v2668_v5 = vadd.f32 %v2664_v30, %v5543_v37 }
0x14ba   :  { %v2667_v35 = vadd.f32 %v2659_v4, %v5541_v13 }
0x14bb   :  { %v2674_v63 = vsel %vm101_vm0, %v2668_v5, 0.0 }
0x14bc   :  { %2675 = vadd.xlane.f32.xlu1 %v2674_v63  ;;  %v2671_v3 = vsel %vm101_vm0, %v2667_v35, 0.0 }
0x14bd   :  { %2672 = vadd.xlane.f32.xlu0 %v2671_v3  ;;  %v3970_v3 = vld [vmem:[#allocation8 + $0x12] ss:$0 sm:$0xff] }
0x14cd   :  { %4762 = vrot.lane.b32.xlu1 %v5652_v18, %s5079_s11 }
0x1549   :  { %v2676_v13 = vpop.xlane.xlu1 %2675 }
0x154a   :  { %v2678_v37 = vmul.f32 0.03125, %v2676_v13  ;;  %v2673_v2 = vpop.xlane.xlu0 %2672 }
0x154b   :  { %v2677_v22 = vmul.f32 0.03125, %v2673_v2 }
0x154c   :  { %v2680_v36 = vsub.f32 %v2668_v5, %v2678_v37 }
0x154d   :  { %v2679_v51 = vsub.f32 %v2667_v35, %v2677_v22  ;;  %v4763_v62 = vpop.permute.xlu1 %4762 }
0x154e   :  { %v2682_v11 = vmul.f32 %v2680_v36, %v2680_v36  ;;  %v4765_v25 = vunpack.i.h.bf16 %v4763_v62  ;;  %v4764_v8 = vunpack.i.l.bf16 %v4763_v62 }
0x154f   :  { %v2681_v60 = vmul.f32 %v2679_v51, %v2679_v51 }
0x1550   :  { %v2686_v59 = vsel %vm101_vm0, %v2682_v11, 0.0  ;;  %v4641_v14 = vpack.c.bf16 %v4765_v25, %v4764_v8 }
0x1551   :  { %2687 = vadd.xlane.f32.xlu0 %v2686_v59  ;;  %v2683_v61 = vsel %vm101_vm0, %v2681_v60, 0.0 }
0x1552   :  { %4642 = vmatprep.subr.bf16.mxu1 %v4641_v14 }
0x1553   :  { %4644 = vmatpush3.bf16.msra.mxu1 %v4641_v14 }
0x1555   :  { %2684 = vadd.xlane.f32.xlu0 %v2683_v61 }
0x156b   :  { %4767 = vrot.lane.b32.xlu0 %v5664_v15, %s5079_s11 }
0x15de   :  { %v2688_v20 = vpop.xlane.xlu0 %2687 }
0x15df   :  { %v2690_v21 = vmul.f32 0.03125, %v2688_v20 }
0x15e1   :  { %v2692_v23 = vadd.f32 1e-05, %v2690_v21 }
0x15e2   :  { %v2685_v26 = vpop.xlane.xlu0 %2684 }
0x15e3   :  { %4899 = vrsqrt.f32 %v2692_v23  ;;  %v2689_v27 = vmul.f32 0.03125, %v2685_v26 }
0x15e5   :  { %v2691_v29 = vadd.f32 1e-05, %v2689_v27 }
0x15e6   :  { %v4768_v33 = vpop.permute.xlu0 %4767 }
0x15e7   :  { %4901 = vrsqrt.f32 %v2691_v29  ;;  %v4770_v34 = vunpack.i.h.bf16 %v4768_v33  ;;  %v4769_v0 = vunpack.i.l.bf16 %v4768_v33 }
0x15e9   :  { %v4645_v1 = vpack.c.bf16 %v4770_v34, %v4769_v0 }
0x15eb   :  { %4646 = vmatprep.subr.bf16.mxu1 %v4645_v1 }
0x15ec   :  { %4648 = vmatpush3.bf16.msra.mxu1 %v4645_v1 }
0x15ed   :  { %v4900_v7 = vpop.eup %4899 }
0x15ee   :  { %v2696_v39 = vmul.f32 %v4900_v7, %v2680_v36 }
0x15ef   :  { %4447 = vmatmul.mubr.msk.f32.vlgmr.msra.gmra.mrb[38].mxu1 %vm101_vm0, %v4952_v40 }
0x15f0   :  { %4449 = vmatprep.mubr.msk.f32.mxu1 %vm101_vm0, %v4953_v41  ;;  %v2702_v48 = vmul.f32 %v3964_v42, %v2696_v39 }
0x15f1   :  { %v4902_v44 = vpop.eup %4901 }
0x15f2   :  { %v2695_v45 = vmul.f32 %v4902_v44, %v2679_v51  ;;  %v5673_v54 = vadd.f32 %v3965_v50, %v2702_v48 }
0x15f3   :  { %4450 = vmatmul.mubr.msk.f32.gmra.mrb[40].mxu1 %vm101_vm0, %v4954_v47 }
0x15f4   :  { %v2701_v52 = vmul.f32 %v3964_v42, %v2695_v45 }
0x15f6   :  { %v5671_v53 = vadd.f32 %v3965_v50, %v2701_v52 }
0x15f8   :  { %4435 = vmatprep.mubr.msk.f32.mxu0 %vm101_vm0, %v5671_v53 }
0x15f9   :  { %4436 = vmatmul.mubr.msk.f32.vlgmr.msra.gmra.mrb[30].mxu0 %vm101_vm0, %v5673_v54 }
0x16c2   :  { %v4448_v55 = vpop.f32.mrb[38].mxu1 }
0x16c3   :  { %v5679_v56 = vadd.f32 %v4448_v55, %v3973_v17  ;;  %v2886_v57 = vpop.f32.mrb[39].mxu1 }
0x16c4   :  { %v5681_v10 = vadd.f32 %v3973_v17, %v2886_v57 }
0x16c6   :  { %v4771_v58 = vpack.i.bf16 %v5679_v56, %v5681_v10  ;;  %v4649_v28 = vpack.c.bf16 %v5679_v56, %v5681_v10  ;;  %v4451_v30 = vpop.f32.mrb[40].mxu1 }
0x16c7   :  { %v5687_v32 = vadd.f32 %v4451_v30, %v3973_v17  ;;  %v2896_v4 = vpop.f32.mrb[41].mxu1 }
0x16c8   :  { %v5689_v5 = vadd.f32 %v3973_v17, %v2896_v4  ;;  %4651 = vmatprep.subr.msk.bf16.mxu0 %vm5369_vm2, %v4649_v28 }
0x16c9   :  { %4654 = vmatpush3.bf16.xpose.msk.msra.mxu0 %vm5369_vm2, %v4649_v28 }
0x16ca   :  { %v4776_v35 = vpack.i.bf16 %v5687_v32, %v5689_v5  ;;  %v4655_v63 = vpack.c.bf16 %v5687_v32, %v5689_v5 }
0x16cc   :  { %v4437_v24 = vpop.f32.mrb[30].mxu0  ;;  %4657 = vmatprep.subr.msk.bf16.mxu1 %vm5369_vm2, %v4655_v63 }
0x16cd   :  { %v2796_v6 = vadd.f32 %v4437_v24, %v3970_v3  ;;  %v2790_v13 = vpop.f32.mrb[31].mxu0  ;;  %4660 = vmatpush3.bf16.xpose.msk.msra.mxu1 %vm5369_vm2, %v4655_v63 }
0x16ce   :  { %v2791_v37 = vadd.f32 %v3970_v3, %v2790_v13 }
0x16cf   :  { %v2909_v2 = vmul.f32 %v5555_v38, %v2796_v6  ;;  %v2910_v51 = vmul.f32 %v5569_v43, %v2796_v6  ;;  %v2911_v31 = vmul.f32 %v5575_v46, %v2796_v6  ;;  %v2912_v60 = vmul.f32 %v5585_v49, %v2796_v6 }
0x16d0   :  { %v2906_v22 = vmul.f32 %v5569_v43, %v2791_v37  ;;  %v2905_v36 = vmul.f32 %v5555_v38, %v2791_v37  ;;  %v2907_v11 = vmul.f32 %v5575_v46, %v2791_v37  ;;  %v2908_v59 = vmul.f32 %v5585_v49, %v2791_v37 }
0x16d1   :  { %4466 = vmatprep.mubr.msk.f32.mxu1 %vm101_vm0, %v2909_v2 }
0x16d2   :  { %4456 = vmatprep.mubr.msk.f32.mxu0 %vm101_vm0, %v2905_v36 }
0x16d3   :  { %4457 = vmatmul.mubr.msk.f32.vlgmr.msra.gmra.mrb[32].mxu0 %vm101_vm0, %v2906_v22 }
0x16d4   :  { %4459 = vmatprep.mubr.msk.f32.mxu0 %vm101_vm0, %v2907_v11  ;;  %4467 = vmatmul.mubr.msk.f32.vlgmr.msra.gmra.mrb[42].mxu1 %vm101_vm0, %v2910_v51 }
0x16d5   :  { %4469 = vmatprep.mubr.msk.f32.mxu1 %vm101_vm0, %v2911_v31 }
0x16d7   :  { %4460 = vmatmul.mubr.msk.f32.gmra.mrb[34].mxu0 %vm101_vm0, %v2908_v59 }
0x16d8   :  { %4470 = vmatmul.mubr.msk.f32.gmra.mrb[44].mxu1 %vm101_vm0, %v2912_v60 }
0x17a6   :  { %v4458_v61 = vpop.f32.mrb[32].mxu0 }
0x17a7   :  { %v2997_v62 = vpop.f32.mrb[33].mxu0  ;;  %v4468_v25 = vpop.f32.mrb[42].mxu1  ;;  %v3122_v21 = vsel %vm1269_vm3, %v4458_v61, -inf }
0x17a8   :  { %v3100_v8 = vpop.f32.mrb[43].mxu1  ;;  %v3134_v9 = vsel %vm1269_vm3, %v4468_v25, -inf  ;;  %v3119_v23 = vsel %vm1269_vm3, %v2997_v62, -inf }
0x17a9   :  { %3135 = vmax.xlane.f32.xlu0 %v3134_v9  ;;  %v3131_v12 = vsel %vm1269_vm3, %v3100_v8, -inf }
0x17aa   :  { %3132 = vmax.xlane.f32.xlu1 %v3131_v12  ;;  %v4461_v14 = vpop.f32.mrb[34].mxu0 }
0x17ab   :  { %v3007_v16 = vpop.f32.mrb[35].mxu0  ;;  %v4471_v19 = vpop.f32.mrb[44].mxu1  ;;  %v3128_v26 = vsel %vm1269_vm3, %v4461_v14, -inf }
0x17ac   :  { %v3110_v20 = vpop.f32.mrb[45].mxu1  ;;  %v3125_v27 = vsel %vm1269_vm3, %v3007_v16, -inf  ;;  %v3140_v29 = vsel %vm1269_vm3, %v4471_v19, -inf }
0x17ad   :  { %3123 = vmax.xlane.f32.xlu0 %v3122_v21  ;;  %v3137_v33 = vsel %vm1269_vm3, %v3110_v20, -inf }
0x17ae   :  { %3120 = vmax.xlane.f32.xlu1 %v3119_v23 }
0x17b1   :  { %3129 = vmax.xlane.f32.xlu0 %v3128_v26 }
0x17b2   :  { %3126 = vmax.xlane.f32.xlu1 %v3125_v27 }
0x17b5   :  { %3141 = vmax.xlane.f32.xlu0 %v3140_v29 }
0x17b6   :  { %3138 = vmax.xlane.f32.xlu1 %v3137_v33 }
0x1836   :  { %v3136_v34 = vpop.xlane.xlu0 %3135 }
0x1837   :  { %v3148_v0 = vsub.f32 %v4468_v25, %v3136_v34  ;;  %v3133_v1 = vpop.xlane.xlu1 %3132 }
0x1838   :  { %v3147_v7 = vsub.f32 %v3100_v8, %v3133_v1 }
0x1839   :  { %v3161_v39 = vmul.f32 1.442695, %v3148_v0 }
0x183a   :  { %v3159_v40 = vmul.f32 1.442695, %v3147_v7  ;;  %v3124_v41 = vpop.xlane.xlu0 %3123 }
0x183b   :  { %4903 = vpow2.f32 %v3161_v39  ;;  %v3144_v42 = vsub.f32 %v4458_v61, %v3124_v41  ;;  %v3121_v44 = vpop.xlane.xlu1 %3120 }
0x183c   :  { %4905 = vpow2.f32 %v3159_v40  ;;  %v3143_v45 = vsub.f32 %v2997_v62, %v3121_v44 }
0x183d   :  { %v3153_v47 = vmul.f32 1.442695, %v3144_v42 }
0x183e   :  { %v3151_v48 = vmul.f32 1.442695, %v3143_v45  ;;  %v3130_v50 = vpop.xlane.xlu0 %3129 }
0x183f   :  { %4907 = vpow2.f32 %v3153_v47  ;;  %v3127_v52 = vpop.xlane.xlu1 %3126  ;;  %v3146_v17 = vsub.f32 %v4461_v14, %v3130_v50 }
0x1840   :  { %4909 = vpow2.f32 %v3151_v48  ;;  %v3145_v55 = vsub.f32 %v3007_v16, %v3127_v52 }
0x1841   :  { %v3157_v3 = vmul.f32 1.442695, %v3146_v17 }
0x1842   :  { %v3142_v57 = vpop.xlane.xlu0 %3141  ;;  %v3155_v13 = vmul.f32 1.442695, %v3145_v55 }
0x1843   :  { %v3150_v28 = vsub.f32 %v4471_v19, %v3142_v57  ;;  %v3139_v30 = vpop.xlane.xlu1 %3138 }
0x1844   :  { %v3149_v4 = vsub.f32 %v3110_v20, %v3139_v30 }
0x1845   :  { %v5727_v63 = vpop.eup %4903  ;;  %v3165_v24 = vmul.f32 1.442695, %v3150_v28 }
0x1846   :  { %v4906_v6 = vpop.eup %4905  ;;  %v3163_v37 = vmul.f32 1.442695, %v3149_v4  ;;  %v3182_v2 = vsel %vm1269_vm3, %v5727_v63, 0.0 }
0x1847   :  { %4911 = vpow2.f32 %v3165_v24  ;;  %3183 = vadd.xlane.f32.xlu0 %v3182_v2  ;;  %v3179_v22 = vsel %vm1269_vm3, %v4906_v6, 0.0 }
0x1848   :  { %4913 = vpow2.f32 %v3163_v37  ;;  %3180 = vadd.xlane.f32.xlu1 %v3179_v22 }
0x1849   :  { %v5732_v36 = vpop.eup %4907  ;;  %4915 = vpow2.f32 %v3157_v3 }
0x184a   :  { %v4910_v51 = vpop.eup %4909  ;;  %4917 = vpow2.f32 %v3155_v13  ;;  %v3170_v11 = vsel %vm1269_vm3, %v5732_v36, 0.0 }
0x184b   :  { %3171 = vadd.xlane.f32.xlu0 %v3170_v11  ;;  %v3167_v31 = vsel %vm1269_vm3, %v4910_v51, 0.0 }
0x184c   :  { %3168 = vadd.xlane.f32.xlu1 %v3167_v31 }
0x1851   :  { %v5737_v59 = vpop.eup %4911 }
0x1852   :  { %v4914_v60 = vpop.eup %4913  ;;  %v3188_v61 = vsel %vm1269_vm3, %v5737_v59, 0.0 }
0x1853   :  { %v4916_v62 = vpop.eup %4915  ;;  %3189 = vadd.xlane.f32.xlu0 %v3188_v61  ;;  %v3185_v25 = vsel %vm1269_vm3, %v4914_v60, 0.0 }
0x1854   :  { %v4918_v8 = vpop.eup %4917  ;;  %3186 = vadd.xlane.f32.xlu1 %v3185_v25  ;;  %v3176_v9 = vsel %vm1269_vm3, %v4916_v62, 0.0 }
0x1855   :  { %v3173_v12 = vsel %vm1269_vm3, %v4918_v8, 0.0 }
0x1857   :  { %3177 = vadd.xlane.f32.xlu0 %v3176_v9 }
0x1858   :  { %3174 = vadd.xlane.f32.xlu1 %v3173_v12 }
0x1869   :  { %4772 = vrot.lane.b32.xlu1 %v4771_v58, %s5079_s11 }
0x186d   :  { %4777 = vrot.lane.b32.xlu0 %v4776_v35, %s5079_s11  ;;  %4782 = vrot.lane.b32.xlu1 %v5652_v18, %s5081_s15 }
0x1871   :  { %4787 = vrot.lane.b32.xlu1 %v5664_v15, %s5081_s15  ;;  %s5082_s15 = smov [#allocation10]  }
0x1872   :  { %s3851_s17 = sshll.u32 %s5082_s15, 4  ;;  %s3852_s17 = int_to_ptr.vmem [resolvable:$true] %s3851_s17 }
0x1873   :  { %s5043_s18 = scalar_lea.vmem %s3852_s17, 256  ;;  %p5048_p5 = scmp.lt.s32.totalorder %s3852_s17, %s3852_s17 }
0x1874   :  { %p5044_p4 = scmp.ne.s32.totalorder %s3852_s17, %s5043_s18  ;;  %p5049_p6 = scmp.lt.s32.totalorder %s5043_s18, %s5043_s18 }
0x1876   :  { %p5050_p7 = por %p5049_p6, %p5048_p5 }
0x1878   :  { %p5051_p8 = pnand %p5050_p7, %p5044_p4 }
0x18d4   :  { %v3184_v16 = vpop.xlane.xlu0 %3183 }
0x18d5   :  { %v3181_v14 = vpop.xlane.xlu1 %3180 }
0x18d6   :  { %4919 = vrcp.f32 %v3181_v14 }
0x18d8   :  { %v3172_v20 = vpop.xlane.xlu0 %3171 }
0x18d9   :  { %v3169_v19 = vpop.xlane.xlu1 %3168 }
0x18da   :  { %4921 = vrcp.f32 %v3169_v19 }
0x18db   :  { %4923 = vrcp.f32 %v3184_v16 }
0x18dc   :  { %4925 = vrcp.f32 %v3172_v20 }
0x18e0   :  { %v4920_v21 = vpop.eup %4919  ;;  %v3190_v56 = vpop.xlane.xlu0 %3189 }
0x18e1   :  { %v3187_v10 = vpop.xlane.xlu1 %3186  ;;  %v3203_v58 = vmul.f32 %v4920_v21, %v4906_v6 }
0x18e2   :  { %4927 = vrcp.f32 %v3187_v10 }
0x18e3   :  { %4486 = vmatprep.mubr.msk.f32.mxu1 %vm1269_vm3, %v3203_v58  ;;  %4929 = vrcp.f32 %v3190_v56 }
0x18e4   :  { %v4922_v32 = vpop.eup %4921  ;;  %v3178_v18 = vpop.xlane.xlu0 %3177 }
0x18e5   :  { %v3175_v5 = vpop.xlane.xlu1 %3174  ;;  %v3199_v15 = vmul.f32 %v4922_v32, %v4910_v51  ;;  %v4924_v34 = vpop.eup %4923 }
0x18e6   :  { %4931 = vrcp.f32 %v3175_v5  ;;  %v4926_v1 = vpop.eup %4925  ;;  %v3204_v41 = vmul.f32 %v4924_v34, %v5727_v63  ;;  %v4008_v34 = vld [vmem:[%s5857_s3 + $0x88] sm:$0xff] }
0x18e7   :  { %4933 = vrcp.f32 %v3178_v18  ;;  %4476 = vmatprep.mubr.msk.f32.mxu0 %vm1269_vm3, %v3199_v15  ;;  %v3200_v44 = vmul.f32 %v4926_v1, %v5732_v36  ;;  %v4009_v1 = vld [vmem:[%s5857_s3 + $0xa0] sm:$0xff] }
0x18e8   :  { %v4778_v35 = vpop.permute.xlu0 %4777 }
0x18e9   :  { %v4780_v23 = vunpack.i.h.bf16 %v4778_v35  ;;  %v4779_v26 = vunpack.i.l.bf16 %v4778_v35  ;;  %v4773_v27 = vpop.permute.xlu1 %4772 }
0x18ea   :  { %v4775_v29 = vunpack.i.h.bf16 %v4773_v27  ;;  %v4774_v33 = vunpack.i.l.bf16 %v4773_v27 }
0x18eb   :  { %v4665_v0 = vpack.c.bf16 %v4780_v23, %v4779_v26 }
0x18ec   :  { %v4661_v7 = vpack.c.bf16 %v4775_v29, %v4774_v33  ;;  %v4928_v39 = vpop.eup %4927 }
0x18ed   :  { %4666 = vmatprep.subr.bf16.mxu1 %v4665_v0  ;;  %v4930_v40 = vpop.eup %4929  ;;  %v3205_v45 = vmul.f32 %v4928_v39, %v4914_v60  ;;  %v4783_v17 = vpop.permute.xlu1 %4782 }
0x18ee   :  { %4662 = vmatprep.subr.bf16.mxu0 %v4661_v7  ;;  %4668 = vmatpush3.bf16.msra.mxu1 %v4665_v0  ;;  %v3206_v50 = vmul.f32 %v4930_v40, %v5737_v59  ;;  %v4785_v55 = vunpack.i.h.bf16 %v4783_v17  ;;  %v4784_v57 = vunpack.i.l.bf16 %v4783_v17  ;;  %v4014_v40 = vld [vmem:[%s5858_s4 + $0x40] sm:$0xff] }
0x18ef   :  { %4664 = vmatpush3.bf16.msra.mxu0 %v4661_v7  ;;  %v4010_v7 = vld [vmem:[%s5857_s3 + $0xb8] sm:$0xff] }
0x18f0   :  { %v4932_v42 = vpop.eup %4931  ;;  %v4669_v28 = vpack.c.bf16 %v4785_v55, %v4784_v57  ;;  %v4681_v39 = vpack.c.bf16 %v4010_v7, %v4009_v1  ;;  %v4025_v1 = vld [vmem:[#allocation8 + $0x1b] ss:$0 sm:$0xff] }
0x18f1   :  { %v4934_v47 = vpop.eup %4933  ;;  %4487 = vmatmul.mubr.msk.f32.vlgmr.msra.gmra.mrb[46].mxu1 %vm1269_vm3, %v3204_v41  ;;  %v3201_v48 = vmul.f32 %v4932_v42, %v4918_v8  ;;  %v4788_v30 = vpop.permute.xlu1 %4787  ;;  %v4015_v41 = vld [vmem:[%s5858_s4 + $0x48] sm:$0xff]  ;;  %v4016_v42 = vld [vmem:[%s5858_s4 + $0x50] sm:$0xff] }
0x18f2   :  { %4477 = vmatmul.mubr.msk.f32.vlgmr.msra.gmra.mrb[36].mxu0 %vm1269_vm3, %v3200_v44  ;;  %4489 = vmatprep.mubr.msk.f32.mxu1 %vm1269_vm3, %v3205_v45  ;;  %v3202_v52 = vmul.f32 %v4934_v47, %v4916_v62  ;;  %v4790_v4 = vunpack.i.h.bf16 %v4788_v30  ;;  %v4789_v63 = vunpack.i.l.bf16 %v4788_v30  ;;  %v4685_v44 = vpack.c.bf16 %v4015_v41, %v4014_v40  ;;  %v4017_v45 = vld [vmem:[%s5858_s4 + $0x58] sm:$0xff]  ;;  %v4026_v40 = vld [vmem:[#allocation8 + $0x1c] ss:$0 sm:$0xff] }
0x18f3   :  { %4479 = vmatprep.mubr.msk.f32.mxu0 %vm1269_vm3, %v3201_v48  ;;  %4670 = vmatprep.subr.bf16.mxu0 %v4669_v28  ;;  %v4689_v47 = vpack.c.bf16 %v4017_v45, %v4016_v42  ;;  %v4018_v48 = vld [vmem:[%s5858_s4 + $0x60] sm:$0xff] }
0x18f4   :  { %4672 = vmatpush3.bf16.msra.mxu0 %v4669_v28  ;;  %v4673_v3 = vpack.c.bf16 %v4790_v4, %v4789_v63 }
0x18f5   :  { %4490 = vmatmul.mubr.msk.f32.gmra.mrb[48].mxu1 %vm1269_vm3, %v3206_v50  ;;  %v4019_v50 = vld [vmem:[%s5858_s4 + $0x68] sm:$0xff] }
0x18f6   :  { %4480 = vmatmul.mubr.msk.f32.gmra.mrb[38].mxu0 %vm1269_vm3, %v3202_v52  ;;  %4674 = vmatprep.subr.bf16.mxu0 %v4673_v3  ;;  %v4693_v52 = vpack.c.bf16 %v4019_v50, %v4018_v48 }
0x18f8   :  { %4676 = vmatpush3.bf16.msra.mxu0 %v4673_v3  ;;  %v4005_v3 = vld [vmem:[#allocation8 + $0x19] ss:$0 sm:$0xff] }
0x18f9   :  { %4686 = vmatprep.subr.bf16.mxu0 %v4685_v44 }
0x19c4   :  { %v4488_v24 = vpop.f32.mrb[46].mxu1 }
0x19c5   :  { %v3418_v6 = vmul.f32 %v5569_v43, %v4488_v24  ;;  %v3394_v13 = vpop.f32.mrb[47].mxu1  ;;  %v4478_v37 = vpop.f32.mrb[36].mxu0 }
0x19c6   :  { %v3417_v2 = vmul.f32 %v5555_v38, %v3394_v13  ;;  %v3414_v22 = vmul.f32 %v5569_v43, %v4478_v37  ;;  %v3291_v36 = vpop.f32.mrb[37].mxu0 }
0x19c7   :  { %v3413_v51 = vmul.f32 %v5555_v38, %v3291_v36  ;;  %v4002_v38 = vld [vmem:[#allocation8 + $0x14] ss:$0 sm:$0xff] }
0x19c8   :  { %v3422_v11 = vadd.f32 %v3418_v6, %v3417_v2  ;;  %v4491_v31 = vpop.f32.mrb[48].mxu1  ;;  %v4006_v6 = vld [vmem:[#allocation8 + $0x1a] ss:$0 sm:$0xff] }
0x19c9   :  { %v3421_v59 = vadd.f32 %v3414_v22, %v3413_v51  ;;  %v3404_v60 = vpop.f32.mrb[49].mxu1  ;;  %v4481_v61 = vpop.f32.mrb[38].mxu0  ;;  %v3420_v9 = vmul.f32 %v5585_v49, %v4491_v31  ;;  %v4021_v31 = vld [vmem:[%s5858_s4 + $0x78] sm:$0xff] }
0x19ca   :  { %v3419_v62 = vmul.f32 %v5575_v46, %v3404_v60  ;;  %v3301_v25 = vpop.f32.mrb[39].mxu0  ;;  %v3416_v14 = vmul.f32 %v5585_v49, %v4481_v61  ;;  %v4011_v60 = vld [vmem:[#allocation8 + $0x15] ss:$0 sm:$0xff] }
0x19cb   :  { %v3415_v8 = vmul.f32 %v5575_v46, %v3301_v25 }
0x19cc   :  { %v3424_v12 = vadd.f32 %v3422_v11, %v3419_v62  ;;  %v4020_v11 = vld [vmem:[%s5858_s4 + $0x70] sm:$0xff] }
0x19cd   :  { %v3423_v16 = vadd.f32 %v3421_v59, %v3415_v8  ;;  %v4697_v59 = vpack.c.bf16 %v4021_v31, %v4020_v11  ;;  %v4027_v11 = vld [vmem:[%s5860_s6] ss:$0 sm:$0xff] }
0x19ce   :  { %v3426_v43 = vadd.f32 %v3424_v12, %v3420_v9 }
0x19cf   :  { %v3425_v19 = vadd.f32 %v3423_v16, %v3416_v14  ;;  %v4022_v14 = vld [vmem:[#allocation8 + $0x16] ss:$0 sm:$0xff] }
0x19d1   :  { %4500 = vmatprep.mubr.msk.f32.mxu0 %vm101_vm0, %v3425_v19 }
0x19d2   :  { %4501 = vmatmul.mubr.msk.f32.vlgmr.msra.gmra.mrb[40].mxu0 %vm101_vm0, %v3426_v43 }
0x19d3   :  { %4688 = vmatpush3.bf16.msra.mxu0 %v4685_v44 }
0x19d4   :  { %4690 = vmatprep.subr.bf16.mxu0 %v4689_v47 }
0x19d7   :  { %4692 = vmatpush3.bf16.msra.mxu0 %v4689_v47 }
0x19d8   :  { %4694 = vmatprep.subr.bf16.mxu0 %v4693_v52 }
0x19db   :  { %4696 = vmatpush3.bf16.msra.mxu0 %v4693_v52 }
0x19dc   :  { %4698 = vmatprep.subr.bf16.mxu0 %v4697_v59 }
0x19df   :  { %4700 = vmatpush3.bf16.msra.mxu0 %v4697_v59 }
0x1aa5   :  { %v4502_v20 = vpop.f32.mrb[40].mxu0 }
0x1aa6   :  { %v3530_v21 = vadd.f32 %v4502_v20, %v4002_v38  ;;  %v3524_v56 = vpop.f32.mrb[41].mxu0 }
0x1aa7   :  { %v3525_v10 = vadd.f32 %v4002_v38, %v3524_v56 }
0x1aa8   :  { %v3534_v58 = vadd.f32 %v3530_v21, %v5673_v54 }
0x1aa9   :  { %v3533_v46 = vadd.f32 %v3525_v10, %v5671_v53  ;;  %v4007_v53 = vld [vmem:[%s5857_s3 + $0x70] sm:$0xff] }
0x1aaa   :  { %v3540_v32 = vsel %vm101_vm0, %v3534_v58, 0.0  ;;  %v4677_v0 = vpack.c.bf16 %v4008_v34, %v4007_v53 }
0x1aab   :  { %3541 = vadd.xlane.f32.xlu1 %v3540_v32  ;;  %v3537_v49 = vsel %vm101_vm0, %v3533_v46, 0.0 }
0x1aac   :  { %3538 = vadd.xlane.f32.xlu0 %v3537_v49  ;;  %4678 = vmatprep.subr.bf16.mxu1 %v4677_v0 }
0x1aad   :  { %4680 = vmatpush3.bf16.msra.mxu1 %v4677_v0 }
0x1aae   :  { %4682 = vmatprep.subr.bf16.mxu1 %v4681_v39 }
0x1ab1   :  { %4684 = vmatpush3.bf16.msra.mxu1 %v4681_v39 }
0x1b38   :  { %v3542_v18 = vpop.xlane.xlu1 %3541 }
0x1b39   :  { %v3544_v5 = vmul.f32 0.03125, %v3542_v18  ;;  %v3539_v15 = vpop.xlane.xlu0 %3538 }
0x1b3a   :  { %v3543_v35 = vmul.f32 0.03125, %v3539_v15 }
0x1b3b   :  { %v3546_v23 = vsub.f32 %v3534_v58, %v3544_v5 }
0x1b3c   :  { %v3545_v26 = vsub.f32 %v3533_v46, %v3543_v35 }
0x1b3d   :  { %v3548_v33 = vmul.f32 %v3546_v23, %v3546_v23 }
0x1b3e   :  { %v3547_v27 = vmul.f32 %v3545_v26, %v3545_v26 }
0x1b3f   :  { %v3552_v54 = vsel %vm101_vm0, %v3548_v33, 0.0 }
0x1b40   :  { %v3549_v29 = vsel %vm101_vm0, %v3547_v27, 0.0 }
0x1b41   :  { %3550 = vadd.xlane.f32.xlu0 %v3549_v29 }
0x1b45   :  { %3553 = vadd.xlane.f32.xlu0 %v3552_v54 }
0x1bce   :  { %v3551_v17 = vpop.xlane.xlu0 %3550 }
0x1bcf   :  { %v3555_v55 = vmul.f32 0.03125, %v3551_v17 }
0x1bd1   :  { %v3557_v57 = vadd.f32 1e-05, %v3555_v55 }
0x1bd2   :  { %v3554_v28 = vpop.xlane.xlu0 %3553 }
0x1bd3   :  { %4935 = vrsqrt.f32 %v3557_v57  ;;  %v3556_v30 = vmul.f32 0.03125, %v3554_v28 }
0x1bd5   :  { %v3558_v4 = vadd.f32 1e-05, %v3556_v30 }
0x1bd7   :  { %4937 = vrsqrt.f32 %v3558_v4 }
0x1bdd   :  { %v4936_v63 = vpop.eup %4935 }
0x1bde   :  { %v3561_v24 = vmul.f32 %v4936_v63, %v3545_v26 }
0x1be0   :  { %v3567_v13 = vmul.f32 %v4005_v3, %v3561_v24 }
0x1be1   :  { %v4938_v37 = vpop.eup %4937 }
0x1be2   :  { %v3562_v2 = vmul.f32 %v4938_v37, %v3546_v23  ;;  %v3573_v22 = vadd.f32 %v4006_v6, %v3567_v13 }
0x1be4   :  { %v3568_v36 = vmul.f32 %v4005_v3, %v3562_v2  ;;  %4511 = vmatprep.mubr.msk.f32.mxu1 %vm101_vm0, %v3573_v22 }
0x1be6   :  { %v3574_v51 = vadd.f32 %v4006_v6, %v3568_v36 }
0x1be8   :  { %4512 = vmatmul.mubr.msk.f32.vlgmr.msra.gmra.mrb[50].mxu1 %vm101_vm0, %v3574_v51 }
0x1cbb   :  { %v4513_v61 = vpop.f32.mrb[50].mxu1 }
0x1cbc   :  { %v3662_v62 = vadd.f32 %v4513_v61, %v4011_v60  ;;  %v3656_v25 = vpop.f32.mrb[51].mxu1  ;;  %v4028_v61 = vld [vmem:[%s5860_s6 + $0x1] ss:$0 sm:$0xff] }
0x1cbd   :  { %v3657_v8 = vadd.f32 %v4011_v60, %v3656_v25 }
0x1cbe   :  { %v3666_v12 = vmax.f32 %v3662_v62, 0.0 }
0x1cbf   :  { %v3665_v9 = vmax.f32 %v3657_v8, 0.0 }
0x1cc1   :  { %4530 = vmatprep.mubr.msk.f32.mxu0 %vm1831_vm4, %v3665_v9 }
0x1cc2   :  { %4531 = vmatmul.mubr.msk.f32.vlgmr.msra.gmra.mrb[42].mxu0 %vm1831_vm4, %v3666_v12 }
0x1d95   :  { %v4532_v16 = vpop.f32.mrb[42].mxu0 }
0x1d96   :  { %v3759_v43 = vadd.f32 %v4532_v16, %v4022_v14  ;;  %v3753_v19 = vpop.f32.mrb[43].mxu0 }
0x1d97   :  { %v3754_v38 = vadd.f32 %v4022_v14, %v3753_v19 }
0x1d98   :  { %v3763_v20 = vadd.f32 %v3759_v43, %v3574_v51 }
0x1d99   :  { %v3762_v21 = vadd.f32 %v3754_v38, %v3573_v22 }
0x1d9a   :  { %v3769_v56 = vsel %vm101_vm0, %v3763_v20, 0.0 }
0x1d9b   :  { %3770 = vadd.xlane.f32.xlu0 %v3769_v56  ;;  %v3766_v10 = vsel %vm101_vm0, %v3762_v21, 0.0 }
0x1d9c   :  { %3767 = vadd.xlane.f32.xlu1 %v3766_v10 }
0x1e28   :  { %v3771_v58 = vpop.xlane.xlu0 %3770 }
0x1e29   :  { %v3773_v46 = vmul.f32 0.03125, %v3771_v58  ;;  %v3768_v32 = vpop.xlane.xlu1 %3767 }
0x1e2a   :  { %v3772_v49 = vmul.f32 0.03125, %v3768_v32 }
0x1e2b   :  { %v3775_v18 = vsub.f32 %v3763_v20, %v3773_v46 }
0x1e2c   :  { %v3774_v5 = vsub.f32 %v3762_v21, %v3772_v49 }
0x1e2d   :  { %v3777_v15 = vmul.f32 %v3775_v18, %v3775_v18 }
0x1e2e   :  { %v3776_v35 = vmul.f32 %v3774_v5, %v3774_v5 }
0x1e2f   :  { %v3781_v23 = vsel %vm101_vm0, %v3777_v15, 0.0 }
0x1e30   :  { %3782 = vadd.xlane.f32.xlu0 %v3781_v23  ;;  %v3778_v26 = vsel %vm101_vm0, %v3776_v35, 0.0 }
0x1e31   :  { %3779 = vadd.xlane.f32.xlu1 %v3778_v26 }
0x1ebd   :  { %v3783_v27 = vpop.xlane.xlu0 %3782 }
0x1ebe   :  { %v3785_v29 = vmul.f32 0.03125, %v3783_v27  ;;  %v3780_v33 = vpop.xlane.xlu1 %3779 }
0x1ebf   :  { %v3784_v54 = vmul.f32 0.03125, %v3780_v33 }
0x1ec0   :  { %v3787_v53 = vadd.f32 1e-05, %v3785_v29 }
0x1ec1   :  { %v3786_v34 = vadd.f32 1e-05, %v3784_v54 }
0x1ec2   :  { %4939 = vrsqrt.f32 %v3787_v53 }
0x1ec3   :  { %4941 = vrsqrt.f32 %v3786_v34 }
0x1ecc   :  { %v4940_v0 = vpop.eup %4939 }
0x1ecd   :  { %v4942_v7 = vpop.eup %4941  ;;  %v3791_v39 = vmul.f32 %v4940_v0, %v3775_v18 }
0x1ece   :  { %v3790_v41 = vmul.f32 %v4942_v7, %v3774_v5 }
0x1ecf   :  { %v3797_v42 = vmul.f32 %v4025_v1, %v3791_v39 }
0x1ed0   :  { %v3796_v44 = vmul.f32 %v4025_v1, %v3790_v41 }
0x1ed1   :  { %v3803_v45 = vadd.f32 %v4026_v40, %v3797_v42 }
0x1ed2   :  { %v3802_v47 = vadd.f32 %v4026_v40, %v3796_v44 }
0x1ed3   :  { %v3809_v48 = vsel %vm101_vm0, %v3803_v45, 0.0 }
0x1ed4   :  { %3810 = vadd.xlane.f32.xlu0 %v3809_v48  ;;  %v3806_v50 = vsel %vm101_vm0, %v3802_v47, 0.0 }
0x1ed5   :  { %3807 = vadd.xlane.f32.xlu1 %v3806_v50 }
0x1f61   :  { %v3811_v52 = vpop.xlane.xlu0 %3810 }
0x1f62   :  { %v3813_v17 = vmul.f32 0.03125, %v3811_v52  ;;  %v3808_v55 = vpop.xlane.xlu1 %3807 }
0x1f63   :  { %v3812_v57 = vmul.f32 0.03125, %v3808_v55 }
0x1f64   :  { %v3815_v28 = vsub.f32 %v3803_v45, %v3813_v17 }
0x1f65   :  { %v3814_v30 = vsub.f32 %v3802_v47, %v3812_v57 }
0x1f66   :  { %v3817_v4 = vmul.f32 %v3815_v28, %v3815_v28 }
0x1f67   :  { %v3816_v63 = vmul.f32 %v3814_v30, %v3814_v30 }
0x1f68   :  { %v3821_v3 = vsel %vm101_vm0, %v3817_v4, 0.0 }
0x1f69   :  { %3822 = vadd.xlane.f32.xlu0 %v3821_v3  ;;  %v3818_v24 = vsel %vm101_vm0, %v3816_v63, 0.0 }
0x1f6a   :  { %3819 = vadd.xlane.f32.xlu1 %v3818_v24 }
0x1ff6   :  { %v3823_v6 = vpop.xlane.xlu0 %3822 }
0x1ff7   :  { %v3825_v13 = vmul.f32 0.03125, %v3823_v6  ;;  %v3820_v37 = vpop.xlane.xlu1 %3819 }
0x1ff8   :  { %v3824_v2 = vmul.f32 0.03125, %v3820_v37 }
0x1ff9   :  { %v3827_v22 = vadd.f32 1e-05, %v3825_v13 }
0x1ffa   :  { %v3826_v36 = vadd.f32 1e-05, %v3824_v2 }
0x1ffb   :  { %4943 = vrsqrt.f32 %v3827_v22 }
0x1ffc   :  { %4945 = vrsqrt.f32 %v3826_v36 }
0x2005   :  { %v4944_v51 = vpop.eup %4943 }
0x2006   :  { %v4946_v31 = vpop.eup %4945  ;;  %v3831_v59 = vmul.f32 %v4944_v51, %v3815_v28 }
0x2007   :  { %v3830_v60 = vmul.f32 %v4946_v31, %v3814_v30 }
0x2008   :  { %v3837_v62 = vmul.f32 %v4027_v11, %v3831_v59 }
0x2009   :  { %v3836_v25 = vmul.f32 %v4027_v11, %v3830_v60 }
0x200a   :  { %v3843_v8 = vadd.f32 %v4028_v61, %v3837_v62 }
0x200b   :  { %v3842_v9 = vadd.f32 %v4028_v61, %v3836_v25 }
0x200c   :  { %3845 = vst.msk [vmem:[#allocation10 + $0x8] sm:$0xff] %vm101_vm0, %v3843_v8 }
0x200d   :  { %3844 = vst.msk [vmem:[#allocation10] sm:$0xff] %vm101_vm0, %v3842_v9 }
0x200e   :  { %5054 = shalt.err (!%p5051_p8)
}
0x200f   :  { %s5055_s20 = scalar_lea.hbm %s5861_s7, 256 }
0x2010   :  { %p5056_p9 = scmp.ne.s32.totalorder %s5861_s7, %s5055_s20  ;;  %p5059_p10 = scmp.lt.u32.totalorder %s5055_s20, %s5861_s7 }
0x2012   :  { %p5061_p11 = pnand %p5059_p10, %p5056_p9 }
0x2014   :  { %5064 = shalt.err (!%p5061_p11)
}
0x2015   :  { %3857 = dma.vmem_to_hbm [thread:$0]  %s3852_s17, 256, %s5861_s7, [#allocation4], %s5075_s13, %s5075_s13, %s5076_s14  }
0x2016   :  { %5071 = dma.done.wait [#allocation4], 256  }
0x2017   :  { %5072 = vsyncadd [#allocation4], 4294967040 }
0x2018   :  { %3861 = vsyncpa [#allocation3], 1 }
0x2019   :  { %3862 = vsyncpa [#allocation6], 1 }
0x201a   :  { %3863 = vsyncpa [#allocation9], 1 }
0x201b   :  { %3864 = vsyncpa [#allocation4], 1 }

</bundles_post_ra>
